<compile_context>
chip_gen: v6e
topology: v6e:2x2x1
jax: 0.10.0
libtpu: 0.0.40
codegen_flags: <defaults>
</compile_context>

<pallas_src>
import jax
import jax.numpy as jnp
from jax.experimental import pallas as pl
from jax.experimental.pallas import tpu as pltpu


B = 8          # batch (small example)
C = 1024       # feature channels, fixed by the module
P0_PAD = 1024  # PriorDiscriminator l0: 1000 -> 1024 (lane-dense)
P1_PAD = 256   # PriorDiscriminator l1: 200  -> 256  (lane-dense)
N_CHUNK = 2    # grid steps over p0w columns / p1w rows
CHUNK = P0_PAD // N_CHUNK            # 512

# Packed small-parameter row buffer layout (lanes of the (1, ROWS_W) buffer).
ROWS_W = 640
L0W_LO, L0W_HI = 0, 32               # globalinfo.l0 weight (32,)
L0B_LANE = 32                        # globalinfo.l0 bias
L2B_LANE = 64                        # priorinfo.l2 bias
P1B_LO, P1B_HI = 128, 128 + P1_PAD   # priorinfo.l1 bias (zero-padded to 256)
P2W_LO, P2W_HI = 384, 384 + P1_PAD   # priorinfo.l2 weight (zero-padded to 256)


# ----------------------------- kernel helpers ------------------------------

def _softplus(x):
    # numerically stable softplus = log(1 + exp(x)), kept in f32.
    return jnp.maximum(x, 0.0) + jnp.log1p(jnp.exp(-jnp.abs(x)))


# ------------------------------- the kernel --------------------------------

def deepmi_kernel(
    x2_ref,     # (2B, 1024) bf16   rows [0:B] = uniform prior, [B:2B] = gt
    part_ref,   # (B, 1024)  bf16   part_feature_g
    permm_ref,  # (B, B)     f32    one-hot permutation matrix (randperm)
    w1g_ref,    # (1024, 128) bf16  c1 weight, gt half, transposed
    w1p_ref,    # (1024, 128) bf16  c1 weight, part half, transposed
    w2_ref,     # (128, 64)   bf16  c2 weight transposed
    w3_ref,     # (64, 32)    bf16  c3 weight transposed
    rows_ref,   # (1, 640)    f32   packed small params (see layout above)
    p0w_ref,    # (1024, 512) bf16  priorinfo.l0 weight^T, column chunk k
    p0b_ref,    # (1, 512)    f32   priorinfo.l0 bias, chunk k
    p1w_ref,    # (512, 256)  bf16  priorinfo.l1 weight^T, row chunk k
    out_ref,    # (1, 1)      f32   scalar loss
    acc_ref,    # VMEM (2B, 256) f32  l1 pre-activation accumulator
    gterm_ref,  # VMEM (1, 1)    f32  GLOBAL term from step 0
):
    k = pl.program_id(0)
    b = part_ref.shape[0]

    # --- step 0: GlobalinfolossNet1024 (both evaluations fused) --------------
    @pl.when(k == 0)
    def _global_net():
        acc_ref[...] = jnp.zeros_like(acc_ref)
        gt_bf = x2_ref[b:, :]                                     # (B, 1024)
        # cat([gt, c]) @ W1^T == gt @ W1g^T + c @ W1p^T.  The gt half is shared
        # by the positive/negative paths; the permutation commutes with the
        # linear c1, so it is applied to the (B,128) activations instead.
        hg = jnp.dot(gt_bf, w1g_ref[...],
                     preferred_element_type=jnp.float32)          # (B, 128)
        hc_pos = jnp.dot(part_ref[...], w1p_ref[...],
                         preferred_element_type=jnp.float32)      # (B, 128)
        hc_neg = jnp.dot(permm_ref[...], hc_pos,
                         preferred_element_type=jnp.float32)      # = hc_pos[perm]
        h = jnp.maximum(jnp.concatenate([hg + hc_pos, hg + hc_neg], axis=0),
                        0.0)                                      # (2B, 128)
        h = jnp.maximum(jnp.dot(h.astype(jnp.bfloat16), w2_ref[...],
                                preferred_element_type=jnp.float32), 0.0)
        h = jnp.maximum(jnp.dot(h.astype(jnp.bfloat16), w3_ref[...],
                                preferred_element_type=jnp.float32), 0.0)
        l0w = rows_ref[:, L0W_LO:L0W_HI]                          # (1, 32)
        l0b = rows_ref[:, L0B_LANE:L0B_LANE + 1]                  # (1, 1)
        # N=1 head: VPU multiply + lane reduce instead of an MXU pass.
        scores = jnp.sum(h * l0w, axis=-1, keepdims=True) + l0b   # (2B, 1)
        ej = jnp.mean(-_softplus(-scores[:b]), keepdims=True)     # (1, 1)
        em = jnp.mean(_softplus(scores[b:]), keepdims=True)
        gterm_ref[...] = (em - ej) * 1.0

    # --- every step: PriorDiscriminator1024 column/row chunk -----------------
    # l0 ReLU is columnwise, so chunking p0w columns is exact; the matching
    # p1w row chunk accumulates the l1 pre-activation.
    hp = jnp.dot(x2_ref[...], p0w_ref[...],
                 preferred_element_type=jnp.float32) + p0b_ref[...]
    hp = jnp.maximum(hp, 0.0)                                     # (2B, 512)
    acc_ref[...] += jnp.dot(hp.astype(jnp.bfloat16), p1w_ref[...],
                            preferred_element_type=jnp.float32)   # (2B, 256)

    # --- last step: finish l1 + l2 and combine ------------------------------
    @pl.when(k == pl.num_programs(0) - 1)
    def _finalize():
        p1b = rows_ref[:, P1B_LO:P1B_HI]                          # (1, 256)
        p2w = rows_ref[:, P2W_LO:P2W_HI]                          # (1, 256)
        l2b = rows_ref[:, L2B_LANE:L2B_LANE + 1]                  # (1, 1)
        hp2 = jnp.maximum(acc_ref[...] + p1b, 0.0)                # (2B, 256)
        z = jnp.sum(hp2 * p2w, axis=-1, keepdims=True) + l2b      # (2B, 1)
        # log(sigmoid(z)) = -softplus(-z); log(1 - sigmoid(z)) = -softplus(z)
        term_a = jnp.mean(-_softplus(-z[:b]), keepdims=True)      # prior rows
        term_b = jnp.mean(-_softplus(z[b:]), keepdims=True)       # gt rows
        prior_term = -(term_a + term_b) * 0.1
        out_ref[...] = gterm_ref[...] + prior_term


# ------------------------------ python wrapper ------------------------------

def init_params(key):
    """Kernel-ready params: PyTorch-style U(+-1/sqrt(fan_in)) init, weights
    pre-transposed to (C_in, C_out), zero-padded lane-dense, matmul weights in
    bf16, small vectors packed into one (1, 640) f32 row buffer."""

    def u(k, shape, fan_in):
        bound = 1.0 / (fan_in ** 0.5)
        return jax.random.uniform(k, shape, jnp.float32, -bound, bound)

    ks = jax.random.split(key, 12)
    # GlobalinfolossNet1024 (conv1d k=1, no bias); c1 split into gt/part halves
    w1g = u(ks[0], (C, 128), 2 * C).astype(jnp.bfloat16)
    w1p = u(ks[1], (C, 128), 2 * C).astype(jnp.bfloat16)
    w2 = u(ks[2], (128, 64), 128).astype(jnp.bfloat16)
    w3 = u(ks[3], (64, 32), 64).astype(jnp.bfloat16)
    l0w = u(ks[4], (32,), 32)
    l0b = u(ks[5], (), 32)
    # PriorDiscriminator1024 (Linear layers), zero-padded lane-dense
    p0w = jnp.zeros((C, P0_PAD), jnp.float32).at[:, :1000].set(
        u(ks[6], (C, 1000), C)).astype(jnp.bfloat16)
    p0b = jnp.zeros((1, P0_PAD), jnp.float32).at[:, :1000].set(
        u(ks[7], (1000,), C))
    p1w = jnp.zeros((P0_PAD, P1_PAD), jnp.float32).at[:1000, :200].set(
        u(ks[8], (1000, 200), 1000)).astype(jnp.bfloat16)
    p1b = u(ks[9], (200,), 1000)
    p2w = u(ks[10], (200,), 200)
    p2b = u(ks[11], (), 200)
    # Packed small-parameter row buffer (padded lanes stay exactly zero and
    # contribute nothing through the ReLU chain / final reductions).
    rows = jnp.zeros((1, ROWS_W), jnp.float32)
    rows = rows.at[0, L0W_LO:L0W_HI].set(l0w)
    rows = rows.at[0, L0B_LANE].set(l0b)
    rows = rows.at[0, L2B_LANE].set(p2b)
    rows = rows.at[0, P1B_LO:P1B_LO + 200].set(p1b)
    rows = rows.at[0, P2W_LO:P2W_LO + 200].set(p2w)
    return {"w1g": w1g, "w1p": w1p, "w2": w2, "w3": w3,
            "p0w": p0w, "p0b": p0b, "p1w": p1w, "rows": rows}


@jax.jit
def deep_mi_loss(part_feature_g, gt_feature_g, params, rng_key):
    b, c = part_feature_g.shape
    k_perm, k_prior = jax.random.split(rng_key)

    # torch.randperm: passed as a tiny one-hot matrix applied in-kernel to the
    # (B,128) hidden activations (linear c1 commutes with the row permutation).
    perm = jax.random.permutation(k_perm, b)
    perm_mat = jax.nn.one_hot(perm, b, dtype=jnp.float32)         # (B, B)
    # torch.rand_like: uniform prior drawn host-side (HW PRNG not portable to
    # the interpret harness); stacked with gt into one bf16 (2B, C) operand.
    prior = jax.random.uniform(k_prior, (b, c), jnp.float32)
    x2 = jnp.concatenate(
        [prior, gt_feature_g.astype(jnp.float32)], axis=0).astype(jnp.bfloat16)
    part_bf = part_feature_g.astype(jnp.bfloat16)

    const = lambda bs: pl.BlockSpec(bs, lambda k: (0, 0))
    in_specs = [
        const((2 * b, c)),                                   # x2
        const((b, c)),                                       # part
        const((b, b)),                                       # perm_mat
        const((c, 128)),                                     # w1g
        const((c, 128)),                                     # w1p
        const((128, 64)),                                    # w2
        const((64, 32)),                                     # w3
        const((1, ROWS_W)),                                  # rows
        pl.BlockSpec((c, CHUNK), lambda k: (0, k)),          # p0w chunk
        pl.BlockSpec((1, CHUNK), lambda k: (0, k)),          # p0b chunk
        pl.BlockSpec((CHUNK, P1_PAD), lambda k: (k, 0)),     # p1w chunk
    ]

    out = pl.pallas_call(
        deepmi_kernel,
        out_shape=jax.ShapeDtypeStruct((1, 1), jnp.float32),
        grid=(N_CHUNK,),
        in_specs=in_specs,
        out_specs=pl.BlockSpec((1, 1), lambda k: (0, 0)),
        scratch_shapes=[
            pltpu.VMEM((2 * b, P1_PAD), jnp.float32),        # l1 pre-act acc
            pltpu.VMEM((1, 1), jnp.float32),                 # GLOBAL term
        ],
        cost_estimate=pl.CostEstimate(
            flops=47_000_000, transcendentals=256, bytes_accessed=3_300_000),
    )(x2, part_bf, perm_mat, params["w1g"], params["w1p"], params["w2"],
      params["w3"], params["rows"], params["p0w"], params["p0b"],
      params["p1w"])
    return out[0, 0]


if __name__ == "__main__":
    key = jax.random.PRNGKey(0)
    k_part, k_gt, k_params, k_fwd = jax.random.split(key, 4)

    part_feature_g = jax.random.normal(k_part, (B, C), jnp.float32)
    gt_feature_g = jax.random.normal(k_gt, (B, C), jnp.float32)
    params = init_params(k_params)

    tot = deep_mi_loss(part_feature_g, gt_feature_g, params, k_fwd)
    tot = jax.block_until_ready(tot)
    assert tot.shape == () and bool(jnp.isfinite(tot))
    print("KERNEL_OK")
</pallas_src>

<mosaic_0001>
module attributes {stable_mosaic.version = 11 : i64} {
  func.func @deepmi_kernel(%arg0: i32, %arg1: memref<16x1024xbf16, #tpu.memory_space<vmem>>, %arg2: memref<8x1024xbf16, #tpu.memory_space<vmem>>, %arg3: memref<8x8xf32, #tpu.memory_space<vmem>>, %arg4: memref<1024x128xbf16, #tpu.memory_space<vmem>>, %arg5: memref<1024x128xbf16, #tpu.memory_space<vmem>>, %arg6: memref<128x64xbf16, #tpu.memory_space<vmem>>, %arg7: memref<64x32xbf16, #tpu.memory_space<vmem>>, %arg8: memref<1x640xf32, #tpu.memory_space<vmem>>, %arg9: memref<1024x512xbf16, #tpu.memory_space<vmem>>, %arg10: memref<1x512xf32, #tpu.memory_space<vmem>>, %arg11: memref<512x256xbf16, #tpu.memory_space<vmem>>, %arg12: memref<1x1xf32, #tpu.memory_space<vmem>>, %arg13: memref<16x256xf32, #tpu.memory_space<vmem>>, %arg14: memref<1x1xf32, #tpu.memory_space<vmem>>) attributes {dimension_semantics = [#tpu.dimension_semantics<arbitrary>], iteration_bounds = array<i64: 2>, scalar_prefetch = 0 : i64, scratch_operands = 2 : i64, tpu.core_type = #tpu.core_type<tc>, window_params = [{pipeline_mode = #tpu.pipeline_mode<synchronous>, transform_indices = @transform_0, window_bounds = array<i64: 16, 1024>}, {pipeline_mode = #tpu.pipeline_mode<synchronous>, transform_indices = @transform_1, window_bounds = array<i64: 8, 1024>}, {pipeline_mode = #tpu.pipeline_mode<synchronous>, transform_indices = @transform_2, window_bounds = array<i64: 8, 8>}, {pipeline_mode = #tpu.pipeline_mode<synchronous>, transform_indices = @transform_3, window_bounds = array<i64: 1024, 128>}, {pipeline_mode = #tpu.pipeline_mode<synchronous>, transform_indices = @transform_4, window_bounds = array<i64: 1024, 128>}, {pipeline_mode = #tpu.pipeline_mode<synchronous>, transform_indices = @transform_5, window_bounds = array<i64: 128, 64>}, {pipeline_mode = #tpu.pipeline_mode<synchronous>, transform_indices = @transform_6, window_bounds = array<i64: 64, 32>}, {pipeline_mode = #tpu.pipeline_mode<synchronous>, transform_indices = @transform_7, window_bounds = array<i64: 1, 640>}, {transform_indices = @transform_8, window_bounds = array<i64: 1024, 512>}, {transform_indices = @transform_9, window_bounds = array<i64: 1, 512>}, {transform_indices = @transform_10, window_bounds = array<i64: 512, 256>}, {pipeline_mode = #tpu.pipeline_mode<synchronous>, transform_indices = @transform_11, window_bounds = array<i64: 1, 1>}]} {
    %c0_i32 = arith.constant 0 : i32
    %0 = arith.cmpi eq, %arg0, %c0_i32 : i32
    %1 = arith.extui %0 : i1 to i32
    %c0_i32_0 = arith.constant 0 : i32
    %2 = arith.cmpi ne, %1, %c0_i32_0 : i32
    scf.if %2 {
      %cst_15 = arith.constant 0.000000e+00 : f32
      %20 = vector.broadcast %cst_15 : f32 to vector<16x256xf32>
      %c0_16 = arith.constant 0 : index
      %c0_17 = arith.constant 0 : index
      %21 = vector.load %arg13[%c0_16, %c0_17] : memref<16x256xf32, #tpu.memory_space<vmem>>, vector<16x256xf32>
      tpu.vector_store %arg13[%c0_16, %c0_17], %20 {strides = array<i32>} : memref<16x256xf32, #tpu.memory_space<vmem>>, vector<16x256xf32>,
      %c8 = arith.constant 8 : index
      %c0_18 = arith.constant 0 : index
      %22 = vector.load %arg1[%c8, %c0_18] : memref<16x1024xbf16, #tpu.memory_space<vmem>>, vector<8x1024xbf16>
      %c0_19 = arith.constant 0 : index
      %c0_20 = arith.constant 0 : index
      %23 = vector.load %arg4[%c0_19, %c0_20] : memref<1024x128xbf16, #tpu.memory_space<vmem>>, vector<1024x128xbf16>
      %cst_21 = arith.constant dense<0.000000e+00> : vector<8x128xf32>
      %24 = tpu.matmul %22, %23, %cst_21 {dimension_numbers = #tpu.dot_dimension_numbers<[1], [0], [0], [1], [0, 0, 1, 1], [], []>} : vector<8x1024xbf16>, vector<1024x128xbf16>, vector<8x128xf32> -> vector<8x128xf32>
      %c0_22 = arith.constant 0 : index
      %c0_23 = arith.constant 0 : index
      %25 = vector.load %arg2[%c0_22, %c0_23] : memref<8x1024xbf16, #tpu.memory_space<vmem>>, vector<8x1024xbf16>
      %c0_24 = arith.constant 0 : index
      %c0_25 = arith.constant 0 : index
      %26 = vector.load %arg5[%c0_24, %c0_25] : memref<1024x128xbf16, #tpu.memory_space<vmem>>, vector<1024x128xbf16>
      %cst_26 = arith.constant dense<0.000000e+00> : vector<8x128xf32>
      %27 = tpu.matmul %25, %26, %cst_26 {dimension_numbers = #tpu.dot_dimension_numbers<[1], [0], [0], [1], [0, 0, 1, 1], [], []>} : vector<8x1024xbf16>, vector<1024x128xbf16>, vector<8x128xf32> -> vector<8x128xf32>
      %c0_27 = arith.constant 0 : index
      %c0_28 = arith.constant 0 : index
      %28 = vector.load %arg3[%c0_27, %c0_28] : memref<8x8xf32, #tpu.memory_space<vmem>>, vector<8x8xf32>
      %cst_29 = arith.constant dense<0.000000e+00> : vector<8x128xf32>
      %29 = tpu.matmul %28, %27, %cst_29 {dimension_numbers = #tpu.dot_dimension_numbers<[1], [0], [0], [1], [0, 0, 1, 1], [], []>} : vector<8x8xf32>, vector<8x128xf32>, vector<8x128xf32> -> vector<8x128xf32>
      %30 = arith.addf %24, %27 : vector<8x128xf32>
      %31 = arith.addf %24, %29 : vector<8x128xf32>
      %32 = tpu.concatenate %30, %31 in 0 : vector<8x128xf32>, vector<8x128xf32> -> vector<16x128xf32>
      %cst_30 = arith.constant 0.000000e+00 : f32
      %33 = vector.broadcast %cst_30 : f32 to vector<16x128xf32>
      %34 = arith.maximumf %32, %33 : vector<16x128xf32>
      %35 = arith.truncf %34 : vector<16x128xf32> to vector<16x128xbf16>
      %c0_31 = arith.constant 0 : index
      %c0_32 = arith.constant 0 : index
      %36 = vector.load %arg6[%c0_31, %c0_32] : memref<128x64xbf16, #tpu.memory_space<vmem>>, vector<128x64xbf16>
      %cst_33 = arith.constant dense<0.000000e+00> : vector<16x64xf32>
      %37 = tpu.matmul %35, %36, %cst_33 {dimension_numbers = #tpu.dot_dimension_numbers<[1], [0], [0], [1], [0, 0, 1, 1], [], []>} : vector<16x128xbf16>, vector<128x64xbf16>, vector<16x64xf32> -> vector<16x64xf32>
      %cst_34 = arith.constant 0.000000e+00 : f32
      %38 = vector.broadcast %cst_34 : f32 to vector<16x64xf32>
      %39 = arith.maximumf %37, %38 : vector<16x64xf32>
      %40 = arith.truncf %39 : vector<16x64xf32> to vector<16x64xbf16>
      %c0_35 = arith.constant 0 : index
      %c0_36 = arith.constant 0 : index
      %41 = vector.load %arg7[%c0_35, %c0_36] : memref<64x32xbf16, #tpu.memory_space<vmem>>, vector<64x32xbf16>
      %cst_37 = arith.constant dense<0.000000e+00> : vector<16x32xf32>
      %42 = tpu.matmul %40, %41, %cst_37 {dimension_numbers = #tpu.dot_dimension_numbers<[1], [0], [0], [1], [0, 0, 1, 1], [], []>} : vector<16x64xbf16>, vector<64x32xbf16>, vector<16x32xf32> -> vector<16x32xf32>
      %cst_38 = arith.constant 0.000000e+00 : f32
      %43 = vector.broadcast %cst_38 : f32 to vector<16x32xf32>
      %44 = arith.maximumf %42, %43 : vector<16x32xf32>
      %c0_39 = arith.constant 0 : index
      %c0_40 = arith.constant 0 : index
      %45 = vector.load %arg8[%c0_39, %c0_40] : memref<1x640xf32, #tpu.memory_space<vmem>>, vector<1x32xf32>
      %c0_41 = arith.constant 0 : index
      %c32 = arith.constant 32 : index
      %46 = vector.load %arg8[%c0_41, %c32] : memref<1x640xf32, #tpu.memory_space<vmem>>, vector<1x1xf32>
      %47 = vector.broadcast %45 : vector<1x32xf32> to vector<16x32xf32>
      %48 = arith.mulf %44, %47 : vector<16x32xf32>
      %cst_42 = arith.constant dense<0.000000e+00> : vector<16xf32>
      %49 = vector.multi_reduction <add>, %48, %cst_42 [1] : vector<16x32xf32> to vector<16xf32>
      %50 = vector.shape_cast %49 : vector<16xf32> to vector<16x1xf32>
      %51 = vector.broadcast %46 : vector<1x1xf32> to vector<16x1xf32>
      %52 = arith.addf %50, %51 : vector<16x1xf32>
      %53 = vector.extract_strided_slice %52 {offsets = [0, 0], sizes = [8, 1], strides = [1, 1]} : vector<16x1xf32> to vector<8x1xf32>
      %cst_43 = arith.constant 0.000000e+00 : f32
      %54 = vector.broadcast %cst_43 : f32 to vector<8x1xf32>
      %55 = arith.subf %54, %53 : vector<8x1xf32>
      %cst_44 = arith.constant 0.000000e+00 : f32
      %56 = vector.broadcast %cst_44 : f32 to vector<8x1xf32>
      %57 = arith.maximumf %55, %56 : vector<8x1xf32>
      %58 = math.absf %55 : vector<8x1xf32>
      %cst_45 = arith.constant 0.000000e+00 : f32
      %59 = vector.broadcast %cst_45 : f32 to vector<8x1xf32>
      %60 = arith.subf %59, %58 : vector<8x1xf32>
      %61 = math.exp %60 : vector<8x1xf32>
      %62 = math.log1p %61 : vector<8x1xf32>
      %63 = arith.addf %57, %62 : vector<8x1xf32>
      %cst_46 = arith.constant 0.000000e+00 : f32
      %64 = vector.broadcast %cst_46 : f32 to vector<8x1xf32>
      %65 = arith.subf %64, %63 : vector<8x1xf32>
      %66 = vector.shape_cast %65 : vector<8x1xf32> to vector<1x8x1xf32>
      %cst_47 = arith.constant dense<0.000000e+00> : vector<1xf32>
      %67 = vector.multi_reduction <add>, %66, %cst_47 [1, 2] : vector<1x8x1xf32> to vector<1xf32>
      %68 = vector.shape_cast %67 : vector<1xf32> to vector<1x1x1xf32>
      %69 = vector.extract %68[0, 0, 0] : f32 from vector<1x1x1xf32>
      %70 = vector.broadcast %69 : f32 to vector<1x1xf32>
      %cst_48 = arith.constant 8.000000e+00 : f32
      %71 = vector.broadcast %cst_48 : f32 to vector<1x1xf32>
      %72 = arith.divf %70, %71 : vector<1x1xf32>
      %73 = vector.extract_strided_slice %52 {offsets = [8, 0], sizes = [8, 1], strides = [1, 1]} : vector<16x1xf32> to vector<8x1xf32>
      %cst_49 = arith.constant 0.000000e+00 : f32
      %74 = vector.broadcast %cst_49 : f32 to vector<8x1xf32>
      %75 = arith.maximumf %73, %74 : vector<8x1xf32>
      %76 = math.absf %73 : vector<8x1xf32>
      %cst_50 = arith.constant 0.000000e+00 : f32
      %77 = vector.broadcast %cst_50 : f32 to vector<8x1xf32>
      %78 = arith.subf %77, %76 : vector<8x1xf32>
      %79 = math.exp %78 : vector<8x1xf32>
      %80 = math.log1p %79 : vector<8x1xf32>
      %81 = arith.addf %75, %80 : vector<8x1xf32>
      %82 = vector.shape_cast %81 : vector<8x1xf32> to vector<1x8x1xf32>
      %cst_51 = arith.constant dense<0.000000e+00> : vector<1xf32>
      %83 = vector.multi_reduction <add>, %82, %cst_51 [1, 2] : vector<1x8x1xf32> to vector<1xf32>
      %84 = vector.shape_cast %83 : vector<1xf32> to vector<1x1x1xf32>
      %85 = vector.extract %84[0, 0, 0] : f32 from vector<1x1x1xf32>
      %86 = vector.broadcast %85 : f32 to vector<1x1xf32>
      %cst_52 = arith.constant 8.000000e+00 : f32
      %87 = vector.broadcast %cst_52 : f32 to vector<1x1xf32>
      %88 = arith.divf %86, %87 : vector<1x1xf32>
      %89 = arith.subf %88, %72 : vector<1x1xf32>
      %cst_53 = arith.constant 1.000000e+00 : f32
      %90 = vector.broadcast %cst_53 : f32 to vector<1x1xf32>
      %91 = arith.mulf %89, %90 : vector<1x1xf32>
      %c0_54 = arith.constant 0 : index
      %c0_55 = arith.constant 0 : index
      %92 = vector.load %arg14[%c0_54, %c0_55] : memref<1x1xf32, #tpu.memory_space<vmem>>, vector<1x1xf32>
      tpu.vector_store %arg14[%c0_54, %c0_55], %91 {strides = array<i32>} : memref<1x1xf32, #tpu.memory_space<vmem>>, vector<1x1xf32>,
    } else {
    }
    %c0 = arith.constant 0 : index
    %c0_1 = arith.constant 0 : index
    %3 = vector.load %arg1[%c0, %c0_1] : memref<16x1024xbf16, #tpu.memory_space<vmem>>, vector<16x1024xbf16>
    %c0_2 = arith.constant 0 : index
    %c0_3 = arith.constant 0 : index
    %4 = vector.load %arg9[%c0_2, %c0_3] : memref<1024x512xbf16, #tpu.memory_space<vmem>>, vector<1024x512xbf16>
    %cst = arith.constant dense<0.000000e+00> : vector<16x512xf32>
    %5 = tpu.matmul %3, %4, %cst {dimension_numbers = #tpu.dot_dimension_numbers<[1], [0], [0], [1], [0, 0, 1, 1], [], []>} : vector<16x1024xbf16>, vector<1024x512xbf16>, vector<16x512xf32> -> vector<16x512xf32>
    %c0_4 = arith.constant 0 : index
    %c0_5 = arith.constant 0 : index
    %6 = vector.load %arg10[%c0_4, %c0_5] : memref<1x512xf32, #tpu.memory_space<vmem>>, vector<1x512xf32>
    %7 = vector.broadcast %6 : vector<1x512xf32> to vector<16x512xf32>
    %8 = arith.addf %5, %7 : vector<16x512xf32>
    %cst_6 = arith.constant 0.000000e+00 : f32
    %9 = vector.broadcast %cst_6 : f32 to vector<16x512xf32>
    %10 = arith.maximumf %8, %9 : vector<16x512xf32>
    %c0_7 = arith.constant 0 : index
    %c0_8 = arith.constant 0 : index
    %11 = vector.load %arg13[%c0_7, %c0_8] : memref<16x256xf32, #tpu.memory_space<vmem>>, vector<16x256xf32>
    %12 = arith.truncf %10 : vector<16x512xf32> to vector<16x512xbf16>
    %c0_9 = arith.constant 0 : index
    %c0_10 = arith.constant 0 : index
    %13 = vector.load %arg11[%c0_9, %c0_10] : memref<512x256xbf16, #tpu.memory_space<vmem>>, vector<512x256xbf16>
    %cst_11 = arith.constant dense<0.000000e+00> : vector<16x256xf32>
    %14 = tpu.matmul %12, %13, %cst_11 {dimension_numbers = #tpu.dot_dimension_numbers<[1], [0], [0], [1], [0, 0, 1, 1], [], []>} : vector<16x512xbf16>, vector<512x256xbf16>, vector<16x256xf32> -> vector<16x256xf32>
    %15 = arith.addf %11, %14 : vector<16x256xf32>
    %c0_12 = arith.constant 0 : index
    %c0_13 = arith.constant 0 : index
    %16 = vector.load %arg13[%c0_12, %c0_13] : memref<16x256xf32, #tpu.memory_space<vmem>>, vector<16x256xf32>
    tpu.vector_store %arg13[%c0_12, %c0_13], %15 {strides = array<i32>} : memref<16x256xf32, #tpu.memory_space<vmem>>, vector<16x256xf32>,
    %c1_i32 = arith.constant 1 : i32
    %17 = arith.cmpi eq, %arg0, %c1_i32 : i32
    %18 = arith.extui %17 : i1 to i32
    %c0_i32_14 = arith.constant 0 : i32
    %19 = arith.cmpi ne, %18, %c0_i32_14 : i32
    scf.if %19 {
      %c0_15 = arith.constant 0 : index
      %c128 = arith.constant 128 : index
      %20 = vector.load %arg8[%c0_15, %c128] : memref<1x640xf32, #tpu.memory_space<vmem>>, vector<1x256xf32>
      %c0_16 = arith.constant 0 : index
      %c384 = arith.constant 384 : index
      %21 = vector.load %arg8[%c0_16, %c384] : memref<1x640xf32, #tpu.memory_space<vmem>>, vector<1x256xf32>
      %c0_17 = arith.constant 0 : index
      %c64 = arith.constant 64 : index
      %22 = vector.load %arg8[%c0_17, %c64] : memref<1x640xf32, #tpu.memory_space<vmem>>, vector<1x1xf32>
      %c0_18 = arith.constant 0 : index
      %c0_19 = arith.constant 0 : index
      %23 = vector.load %arg13[%c0_18, %c0_19] : memref<16x256xf32, #tpu.memory_space<vmem>>, vector<16x256xf32>
      %24 = vector.broadcast %20 : vector<1x256xf32> to vector<16x256xf32>
      %25 = arith.addf %23, %24 : vector<16x256xf32>
      %cst_20 = arith.constant 0.000000e+00 : f32
      %26 = vector.broadcast %cst_20 : f32 to vector<16x256xf32>
      %27 = arith.maximumf %25, %26 : vector<16x256xf32>
      %28 = vector.broadcast %21 : vector<1x256xf32> to vector<16x256xf32>
      %29 = arith.mulf %27, %28 : vector<16x256xf32>
      %cst_21 = arith.constant dense<0.000000e+00> : vector<16xf32>
      %30 = vector.multi_reduction <add>, %29, %cst_21 [1] : vector<16x256xf32> to vector<16xf32>
      %31 = vector.shape_cast %30 : vector<16xf32> to vector<16x1xf32>
      %32 = vector.broadcast %22 : vector<1x1xf32> to vector<16x1xf32>
      %33 = arith.addf %31, %32 : vector<16x1xf32>
      %34 = vector.extract_strided_slice %33 {offsets = [0, 0], sizes = [8, 1], strides = [1, 1]} : vector<16x1xf32> to vector<8x1xf32>
      %cst_22 = arith.constant 0.000000e+00 : f32
      %35 = vector.broadcast %cst_22 : f32 to vector<8x1xf32>
      %36 = arith.subf %35, %34 : vector<8x1xf32>
      %cst_23 = arith.constant 0.000000e+00 : f32
      %37 = vector.broadcast %cst_23 : f32 to vector<8x1xf32>
      %38 = arith.maximumf %36, %37 : vector<8x1xf32>
      %39 = math.absf %36 : vector<8x1xf32>
      %cst_24 = arith.constant 0.000000e+00 : f32
      %40 = vector.broadcast %cst_24 : f32 to vector<8x1xf32>
      %41 = arith.subf %40, %39 : vector<8x1xf32>
      %42 = math.exp %41 : vector<8x1xf32>
      %43 = math.log1p %42 : vector<8x1xf32>
      %44 = arith.addf %38, %43 : vector<8x1xf32>
      %cst_25 = arith.constant 0.000000e+00 : f32
      %45 = vector.broadcast %cst_25 : f32 to vector<8x1xf32>
      %46 = arith.subf %45, %44 : vector<8x1xf32>
      %47 = vector.shape_cast %46 : vector<8x1xf32> to vector<1x8x1xf32>
      %cst_26 = arith.constant dense<0.000000e+00> : vector<1xf32>
      %48 = vector.multi_reduction <add>, %47, %cst_26 [1, 2] : vector<1x8x1xf32> to vector<1xf32>
      %49 = vector.shape_cast %48 : vector<1xf32> to vector<1x1x1xf32>
      %50 = vector.extract %49[0, 0, 0] : f32 from vector<1x1x1xf32>
      %51 = vector.broadcast %50 : f32 to vector<1x1xf32>
      %cst_27 = arith.constant 8.000000e+00 : f32
      %52 = vector.broadcast %cst_27 : f32 to vector<1x1xf32>
      %53 = arith.divf %51, %52 : vector<1x1xf32>
      %54 = vector.extract_strided_slice %33 {offsets = [8, 0], sizes = [8, 1], strides = [1, 1]} : vector<16x1xf32> to vector<8x1xf32>
      %cst_28 = arith.constant 0.000000e+00 : f32
      %55 = vector.broadcast %cst_28 : f32 to vector<8x1xf32>
      %56 = arith.maximumf %54, %55 : vector<8x1xf32>
      %57 = math.absf %54 : vector<8x1xf32>
      %cst_29 = arith.constant 0.000000e+00 : f32
      %58 = vector.broadcast %cst_29 : f32 to vector<8x1xf32>
      %59 = arith.subf %58, %57 : vector<8x1xf32>
      %60 = math.exp %59 : vector<8x1xf32>
      %61 = math.log1p %60 : vector<8x1xf32>
      %62 = arith.addf %56, %61 : vector<8x1xf32>
      %cst_30 = arith.constant 0.000000e+00 : f32
      %63 = vector.broadcast %cst_30 : f32 to vector<8x1xf32>
      %64 = arith.subf %63, %62 : vector<8x1xf32>
      %65 = vector.shape_cast %64 : vector<8x1xf32> to vector<1x8x1xf32>
      %cst_31 = arith.constant dense<0.000000e+00> : vector<1xf32>
      %66 = vector.multi_reduction <add>, %65, %cst_31 [1, 2] : vector<1x8x1xf32> to vector<1xf32>
      %67 = vector.shape_cast %66 : vector<1xf32> to vector<1x1x1xf32>
      %68 = vector.extract %67[0, 0, 0] : f32 from vector<1x1x1xf32>
      %69 = vector.broadcast %68 : f32 to vector<1x1xf32>
      %cst_32 = arith.constant 8.000000e+00 : f32
      %70 = vector.broadcast %cst_32 : f32 to vector<1x1xf32>
      %71 = arith.divf %69, %70 : vector<1x1xf32>
      %72 = arith.addf %53, %71 : vector<1x1xf32>
      %cst_33 = arith.constant 0.000000e+00 : f32
      %73 = vector.broadcast %cst_33 : f32 to vector<1x1xf32>
      %74 = arith.subf %73, %72 : vector<1x1xf32>
      %cst_34 = arith.constant 1.000000e-01 : f32
      %75 = vector.broadcast %cst_34 : f32 to vector<1x1xf32>
      %76 = arith.mulf %74, %75 : vector<1x1xf32>
      %c0_35 = arith.constant 0 : index
      %c0_36 = arith.constant 0 : index
      %77 = vector.load %arg14[%c0_35, %c0_36] : memref<1x1xf32, #tpu.memory_space<vmem>>, vector<1x1xf32>
      %78 = arith.addf %77, %76 : vector<1x1xf32>
      %c0_37 = arith.constant 0 : index
      %c0_38 = arith.constant 0 : index
      %79 = vector.load %arg12[%c0_37, %c0_38] : memref<1x1xf32, #tpu.memory_space<vmem>>, vector<1x1xf32>
      tpu.vector_store %arg12[%c0_37, %c0_38], %78 {strides = array<i32>} : memref<1x1xf32, #tpu.memory_space<vmem>>, vector<1x1xf32>,
    } else {
    }
    return
  }
  func.func @transform_0(%arg0: i32) -> (i32, i32) {
    %c0_i32 = arith.constant 0 : i32
    %c0_i32_0 = arith.constant 0 : i32
    %c0_i32_1 = arith.constant 0 : i32
    return %c0_i32, %c0_i32_0 : i32, i32
  }
  func.func @transform_1(%arg0: i32) -> (i32, i32) {
    %c0_i32 = arith.constant 0 : i32
    %c0_i32_0 = arith.constant 0 : i32
    %c0_i32_1 = arith.constant 0 : i32
    return %c0_i32, %c0_i32_0 : i32, i32
  }
  func.func @transform_2(%arg0: i32) -> (i32, i32) {
    %c0_i32 = arith.constant 0 : i32
    %c0_i32_0 = arith.constant 0 : i32
    %c0_i32_1 = arith.constant 0 : i32
    return %c0_i32, %c0_i32_0 : i32, i32
  }
  func.func @transform_3(%arg0: i32) -> (i32, i32) {
    %c0_i32 = arith.constant 0 : i32
    %c0_i32_0 = arith.constant 0 : i32
    %c0_i32_1 = arith.constant 0 : i32
    return %c0_i32, %c0_i32_0 : i32, i32
  }
  func.func @transform_4(%arg0: i32) -> (i32, i32) {
    %c0_i32 = arith.constant 0 : i32
    %c0_i32_0 = arith.constant 0 : i32
    %c0_i32_1 = arith.constant 0 : i32
    return %c0_i32, %c0_i32_0 : i32, i32
  }
  func.func @transform_5(%arg0: i32) -> (i32, i32) {
    %c0_i32 = arith.constant 0 : i32
    %c0_i32_0 = arith.constant 0 : i32
    %c0_i32_1 = arith.constant 0 : i32
    return %c0_i32, %c0_i32_0 : i32, i32
  }
  func.func @transform_6(%arg0: i32) -> (i32, i32) {
    %c0_i32 = arith.constant 0 : i32
    %c0_i32_0 = arith.constant 0 : i32
    %c0_i32_1 = arith.constant 0 : i32
    return %c0_i32, %c0_i32_0 : i32, i32
  }
  func.func @transform_7(%arg0: i32) -> (i32, i32) {
    %c0_i32 = arith.constant 0 : i32
    %c0_i32_0 = arith.constant 0 : i32
    %c0_i32_1 = arith.constant 0 : i32
    return %c0_i32, %c0_i32_0 : i32, i32
  }
  func.func @transform_8(%arg0: i32) -> (i32, i32) {
    %c0_i32 = arith.constant 0 : i32
    %c0_i32_0 = arith.constant 0 : i32
    return %c0_i32, %arg0 : i32, i32
  }
  func.func @transform_9(%arg0: i32) -> (i32, i32) {
    %c0_i32 = arith.constant 0 : i32
    %c0_i32_0 = arith.constant 0 : i32
    return %c0_i32, %arg0 : i32, i32
  }
  func.func @transform_10(%arg0: i32) -> (i32, i32) {
    %c0_i32 = arith.constant 0 : i32
    %c0_i32_0 = arith.constant 0 : i32
    return %arg0, %c0_i32 : i32, i32
  }
  func.func @transform_11(%arg0: i32) -> (i32, i32) {
    %c0_i32 = arith.constant 0 : i32
    %c0_i32_0 = arith.constant 0 : i32
    %c0_i32_1 = arith.constant 0 : i32
    return %c0_i32, %c0_i32_0 : i32, i32
  }
}

</mosaic_0001>

<bundles_post_ra>
// kernel: deep_mi_loss.1
= control target key start
LH: loop header
LB: loop body
LE: loop exit
PB: predicated region body
PF: predicated region fallthrough
CT: control target
= control target key end

     0   :  { %s7563_s0 = inlined_call_operand.vmem [shape: bf16[16,1024], index: 0, kind: input, shape index: {}]   ;;  %s7564_s1 = inlined_call_operand.vmem [shape: bf16[8,1024], index: 1, kind: input, shape index: {}]   ;;  %s7565_s2 = inlined_call_operand.vmem [shape: f32[8,8], index: 2, kind: input, shape index: {}]   ;;  %s7566_s3 = inlined_call_operand.hbm [shape: bf16[1024,128], index: 3, kind: input, shape index: {}]   ;;  %s7567_s4 = inlined_call_operand.hbm [shape: bf16[1024,128], index: 4, kind: input, shape index: {}]   ;;  %s7568_s5 = inlined_call_operand.vmem [shape: bf16[128,64], index: 5, kind: input, shape index: {}]   ;;  %s7569_s6 = inlined_call_operand.vmem [shape: bf16[64,32], index: 6, kind: input, shape index: {}]   ;;  %s7570_s7 = inlined_call_operand.hbm [shape: f32[1,640], index: 7, kind: input, shape index: {}]   ;;  %s7571_s8 = inlined_call_operand.hbm [shape: bf16[1024,1024], index: 8, kind: input, shape index: {}]   ;;  %s7572_s9 = inlined_call_operand.hbm [shape: f32[1,1024], index: 9, kind: input, shape index: {}]   ;;  %s7573_s10 = inlined_call_operand.hbm [shape: bf16[1024,256], index: 10, kind: input, shape index: {}]   ;;  %s7574_s11 = inlined_call_operand.hbm [shape: f32[1,1], index: 11, kind: output, shape index: {}]  }
   0x1   :  { %7587 = sst [smem:[#allocation24_spill]] %s7565_s2 }
   0x2   :  { %7588 = sst [smem:[#allocation25_spill]] %s7568_s5 }
   0x3   :  { %7589 = sst [smem:[#allocation26_spill]] %s7569_s6 }
   0x4   :  { %7590 = sst [smem:[#allocation27_spill]] %s7574_s11 }
   0x5   :  { %16 = vsyncpa [#allocation5], 0 }
   0x6   :  { %17 = vsyncpa [#allocation8], 0 }
   0x7   :  { %18 = vsyncpa [#allocation11], 0 }
   0x8   :  { %20 = vsyncpa [#allocation11 + $0x1], 0 }
   0x9   :  { %21 = vsyncpa [#allocation14], 0 }
   0xa   :  { %23 = vsyncpa [#allocation14 + $0x1], 0 }
   0xb   :  { %24 = vsyncpa [#allocation6], 0  ;;  %s6817_s17 = smov 0   ;;  %s6819_s18 = smov 0  }
   0xc   :  { %s6821_s19 = smov 0   ;;  %s6823_s20 = smov 0  }
   0xd LB: > { %7591 = sst [smem:[#allocation21_spill]] %s6733_s19  ;;  %s6836_s21 = sadd.s32 4294967295, %s6737_s20   ;;  %s6737_s20 = sphi %s6823_s20, %s7615_s20   ;;  %s6733_s19 = sphi %s6821_s19, %s7620_s19   ;;  %s6729_s18 = sphi %s6819_s18, %s7619_s18   ;;  %s6725_s17 = sphi %s6817_s17, %s7618_s17  }
   0xe   : > { %s6839_s22 = sadd.s32 1, %s6737_s20   ;;  %s205_s24 = sadd.s32 1, %s6733_s19 }
   0xf   : > { %7592 = sst [smem:[#allocation22_spill]] %s6839_s22  ;;  %s202_s23 = ssub.s32 %s6737_s20, %s6839_s22 }
  0x10   : > { %p203_p0 = scmp.eq.s32.totalorder %s202_s23, 0  ;;  %p212_p1 = scmp.ne.s32.totalorder %s6733_s19, %s6729_s18 }
  0x11   : > { %p213_p2 = scmp.eq.s32.totalorder %s6737_s20, 0  ;;  %p218_p3 = scmp.ne.s32.totalorder %s6729_s18, %s6725_s17 }
  0x12   : > { %s6849_s25 = scalar_select %p203_p0, %s6733_s19, %s205_s24  }
  0x13   : > { %p6851_p4 = por %p213_p2, %p212_p1  ;;  %p7575_p5 = scmp.eq.s32.totalorder %s6836_s21, 0 }
  0x14   : > { %7593 = sst [smem:[#allocation23_spill]] %s6849_s25  ;;  %p4994_p6 = scmp.ge.s32.totalorder %s6737_s20, 1 }
  0x15   : > { %p302_p7 = scmp.lt.s32.totalorder %s6737_s20, 3  ;;  %p6860_p8 = por %p7575_p5, %p218_p3 }
  0x16   : > { %s6739_s29 = smov [#allocation7]   ;;  %p5796_p13 = scmp.lt.s32.totalorder %s6737_s20, 2 }
  0x17   : > { %s7595_s27 = scalar_select %p6860_p8, 1, 0 }
  0x18   : > { %p6865_p10 = pnand %p4994_p6, %p302_p7  ;;  %s336_s30 = sshll.u32 %s6739_s29, 4  ;;  %s337_s30 = int_to_ptr.vmem [resolvable:$true] %s336_s30 }
  0x19   : > { %s367_s13 = sand.u32 1, %s6737_s20   ;;  %s6880_s14 = sand.u32 1, %s6733_s19  }
  0x1a   : > { %s7596_s28 = scalar_select %p6865_p10, 1, 0 }
  0x1b   : > { %p5773_p11 = pneg %p6865_p10  ;;  %p6884_p0 = pnand %p5796_p13, %p6851_p4 }
  0x1c   : > { %s6512_s16 = scalar_lea.vmem %s337_s30, 8192  ;;  %p6520_p7 = scmp.lt.s32.totalorder %s337_s30, %s337_s30 }
  0x1d   : > { %p6873_p12 = pnand %p5773_p11, %p7575_p5  ;;  %p6513_p2 = scmp.ne.s32.totalorder %s337_s30, %s6512_s16 }
  0x1e   : > { %p6521_p11 = scmp.lt.s32.totalorder %s6512_s16, %s6512_s16 }
  0x1f   : > { %s7597_s12 = scalar_select %p6873_p12, 1, 0 }
  0x20   : > { %p7581_p1 = pneg %p6873_p12  ;;  %p6522_p9 = por %p6521_p11, %p6520_p7 }
  0x22   : > { %p6515_p3 = pnand %p6513_p2, %p7581_p1 }
  0x24   : > { %p6516_p6 = pneg %p6515_p3 }
  0x26   : > { %p6523_p5 = pnand %p6522_p9, %p6516_p6 }
  0x28   : > { %6526 = shalt.err (!%p6523_p5)
}
  0x29   : > { %s7586_s17 = smov 64   ;;  %s6741_s23 = smov 4  }
  0x2a   : > { %5779 = dma.hbm_to_vmem [thread:$0]  (!%p6873_p12), %s7567_s4, 8192, %s337_s30, [#allocation8], %s7586_s17, %s7586_s17, %s6741_s23  }
  0x2b   : > { %s4999_s29 = sshll.u32 %s6880_s14, 11  ;;  %s5510_s25 = sshll.u32 %s6737_s20, 8 }
  0x2c   : > { %s6906_s22 = scalar_lea.hbm %s7571_s8, %s5510_s25  ;;  %s371_s11 = scalar_lea.vmem [#allocation10], %s4999_s29 }
  0x2d   : > { %s378_s6 = sshll.u32 %s371_s11, 4  ;;  %s6910_s2 = scalar_lea.sflag [#allocation11], %s367_s13  ;;  %s6908_s6 = int_to_ptr.vmem [resolvable:$true] %s378_s6 }
  0x2e   : > { %s6527_s5 = scalar_lea.hbm %s6906_s22, 32768  ;;  %p6916_p5 = pneg %p6884_p0 }
  0x2f   : > { %p6528_p4 = scmp.ne.s32.totalorder %s6906_s22, %s6527_s5  ;;  %s6532_s24 = scalar_lea.hbm %s7571_s8, 65536 }
  0x30   : > { %p6533_p2 = scmp.lt.s32.totalorder %s6906_s22, %s7571_s8  ;;  %p6534_p3 = scmp.lt.s32.totalorder %s6532_s24, %s6527_s5 }
  0x31   : > { %p6530_p9 = pnand %p6916_p5, %p6528_p4 }
  0x32   : > { %p6535_p6 = por %p6534_p3, %p6533_p2 }
  0x33   : > { %p6531_p13 = pneg %p6530_p9 }
  0x35   : > { %p6536_p7 = pnand %p6535_p6, %p6531_p13 }
  0x37   : > { %6539 = shalt.err (!%p6536_p7)
}
  0x38   : > { %s6540_s13 = scalar_lea.vmem %s6908_s6, 32768  ;;  %s6742_s29 = smov [#allocation10]  }
  0x39   : > { %p6541_p11 = scmp.ne.s32.totalorder %s6908_s6, %s6540_s13  ;;  %s6545_s16 = sshll.u32 %s6742_s29, 4  ;;  %s6546_s16 = int_to_ptr.vmem [resolvable:$false] %s6545_s16 }
  0x3a   : > { %s6547_s19 = scalar_lea.vmem %s6546_s16, 65536  ;;  %p6548_p1 = scmp.lt.s32.totalorder %s6908_s6, %s6546_s16 }
  0x3b   : > { %p6543_p4 = pnand %p6541_p11, %p6916_p5  ;;  %p6549_p8 = scmp.lt.s32.totalorder %s6547_s19, %s6540_s13 }
  0x3d   : > { %p6544_p9 = pneg %p6543_p4  ;;  %p6550_p10 = por %p6549_p8, %p6548_p1 }
  0x3f   : > { %p6551_p12 = pnand %p6550_p10, %p6544_p9 }
  0x41   : > { %6554 = shalt.err (!%p6551_p12)
}
  0x42   : > { %s6743_s5 = smov 512   ;;  %s6744_s25 = smov 256  }
  0x43   : > { %s6745_s24 = smov 16   ;;  %s6746_s11 = smov [#allocation4]  }
  0x44   : > { %5786 = dma.hbm_to_vmem [thread:$0]  (!%p6884_p0), %s6906_s22, 32768, %s6908_s6, %s6910_s2, %s6743_s5, %s6744_s25, %s6745_s24  }
  0x45   : > { %s323_s26 = sshll.u32 %s6746_s11, 4  ;;  %s6747_s29 = smov [#allocation9]   ;;  %s324_s26 = int_to_ptr.vmem [resolvable:$true] %s323_s26 }
  0x46   : > { %s356_s17 = sshll.u32 %s6747_s29, 4  ;;  %s6566_s16 = scalar_lea.vmem %s324_s26, 8192  ;;  %s357_s17 = int_to_ptr.vmem [resolvable:$true] %s356_s17 }
  0x47   : > { %p6567_p13 = scmp.ne.s32.totalorder %s324_s26, %s6566_s16  ;;  %p7600_p8 = scmp.ne.s32.totalorder %s7597_s12, 0 }
  0x48   : > { %p6574_p2 = scmp.lt.s32.totalorder %s324_s26, %s324_s26  ;;  %p6575_p3 = scmp.lt.s32.totalorder %s6566_s16, %s6566_s16 }
  0x49   : > { %p7601_p10 = pneg %p7600_p8 }
  0x4a   : > { %p6576_p6 = por %p6575_p3, %p6574_p2 }
  0x4b   : > { %p6569_p12 = pnand %p6567_p13, %p7601_p10 }
  0x4d   : > { %p6570_p1 = pneg %p6569_p12 }
  0x4f   : > { %p6577_p7 = pnand %p6576_p6, %p6570_p1 }
  0x51   : > { %6580 = shalt.err (!%p6577_p7)
}
  0x52   : > { %s7602_s6 = smov 64   ;;  %s5002_s19 = sshll.u32 %s6880_s14, 2 }
  0x53   : > { %5776 = dma.hbm_to_vmem [thread:$0]  (!%p7600_p8), %s7566_s3, 8192, %s324_s26, [#allocation5], %s7602_s6, %s7602_s6, %s6741_s23  }
  0x54   : > { %s6592_s5 = scalar_lea.vmem %s357_s17, 80  ;;  %p7603_p4 = pmov %p7601_p10 }
  0x55   : > { %p6593_p11 = scmp.ne.s32.totalorder %s357_s17, %s6592_s5  ;;  %s6599_s25 = scalar_lea.vmem %s357_s17, 96 }
  0x56   : > { %p6600_p10 = scmp.lt.s32.totalorder %s357_s17, %s357_s17  ;;  %p6601_p12 = scmp.lt.s32.totalorder %s6599_s25, %s6592_s5 }
  0x57   : > { %p6595_p9 = pnand %p6593_p11, %p7603_p4 }
  0x58   : > { %p6602_p1 = por %p6601_p12, %p6600_p10 }
  0x59   : > { %p6596_p13 = pneg %p6595_p9 }
  0x5b   : > { %p6603_p2 = pnand %p6602_p1, %p6596_p13 }
  0x5d   : > { %6606 = shalt.err (!%p6603_p2)
}
  0x5e   : > { %5782 = dma.hbm_to_vmem [thread:$0]  (!%p7600_p8), %s7570_s7, 80, %s357_s17, [#allocation8]  }
  0x5f   : > { %s5511_s23 = sshll.u32 %s6737_s20, 6  ;;  %s392_s6 = scalar_lea.vmem [#allocation12], %s5002_s19 }
  0x60   : > { %s398_s16 = scalar_lea.hbm %s7572_s9, %s5511_s23  ;;  %s400_s22 = sshll.u32 %s392_s6, 4  ;;  %s401_s22 = int_to_ptr.vmem [resolvable:$true] %s400_s22 }
  0x61   : > { %s6607_s13 = scalar_lea.hbm %s398_s16, 64  ;;  %s6612_s25 = scalar_lea.hbm %s7572_s9, 128 }
  0x62   : > { %p6608_p3 = scmp.ne.s32.totalorder %s398_s16, %s6607_s13  ;;  %p6613_p8 = scmp.lt.s32.totalorder %s398_s16, %s7572_s9 }
  0x63   : > { %p6614_p11 = scmp.lt.s32.totalorder %s6612_s25, %s6607_s13 }
  0x64   : > { %p6610_p6 = pnand %p6608_p3, %p6916_p5 }
  0x65   : > { %p6615_p4 = por %p6614_p11, %p6613_p8 }
  0x66   : > { %p6611_p7 = pneg %p6610_p6 }
  0x68   : > { %p6616_p9 = pnand %p6615_p4, %p6611_p7 }
  0x6a   : > { %6619 = shalt.err (!%p6616_p9)
}
  0x6b   : > { %s6620_s17 = scalar_lea.vmem %s401_s22, 64  ;;  %s6748_s19 = smov [#allocation12]  }
  0x6c   : > { %p6621_p13 = scmp.ne.s32.totalorder %s401_s22, %s6620_s17  ;;  %s6625_s23 = sshll.u32 %s6748_s19, 4  ;;  %s6626_s23 = int_to_ptr.vmem [resolvable:$false] %s6625_s23 }
  0x6d   : > { %s6627_s26 = scalar_lea.vmem %s6626_s23, 128  ;;  %p6628_p1 = scmp.lt.s32.totalorder %s401_s22, %s6626_s23 }
  0x6e   : > { %p6623_p10 = pnand %p6621_p13, %p6916_p5  ;;  %p6629_p2 = scmp.lt.s32.totalorder %s6627_s26, %s6620_s17 }
  0x70   : > { %p6624_p12 = pneg %p6623_p10  ;;  %p6630_p3 = por %p6629_p2, %p6628_p1 }
  0x72   : > { %p6631_p6 = pnand %p6630_p3, %p6624_p12 }
  0x74   : > { %6634 = shalt.err (!%p6631_p6)
}
  0x75   : > { %5789 = dma.hbm_to_vmem [thread:$0]  (!%p6884_p0), %s398_s16, 64, %s401_s22, %s6910_s2  }
  0x76   : > { %s5005_s29 = sshll.u32 %s6880_s14, 9  ;;  %s5513_s6 = sshll.u32 %s6737_s20, 13 }
  0x77   : > { %s6981_s5 = scalar_lea.hbm %s7573_s10, %s5513_s6  ;;  %s411_s25 = scalar_lea.vmem [#allocation13], %s5005_s29 }
  0x78   : > { %s419_s24 = sshll.u32 %s411_s25, 4  ;;  %s408_s11 = scalar_lea.sflag [#allocation14], %s6880_s14  ;;  %s6983_s24 = int_to_ptr.vmem [resolvable:$true] %s419_s24 }
  0x79   : > { %s6635_s17 = scalar_lea.hbm %s6981_s5, 8192  ;;  %s6640_s16 = scalar_lea.hbm %s7573_s10, 16384 }
  0x7a   : > { %p6636_p7 = scmp.ne.s32.totalorder %s6981_s5, %s6635_s17  ;;  %p6641_p4 = scmp.lt.s32.totalorder %s6981_s5, %s7573_s10 }
  0x7b   : > { %p6642_p9 = scmp.lt.s32.totalorder %s6640_s16, %s6635_s17 }
  0x7c   : > { %p6638_p8 = pnand %p6636_p7, %p6916_p5 }
  0x7d   : > { %p6643_p13 = por %p6642_p9, %p6641_p4 }
  0x7e   : > { %p6639_p11 = pneg %p6638_p8 }
  0x80   : > { %p6644_p10 = pnand %p6643_p13, %p6639_p11 }
  0x82   : > { %6647 = shalt.err (!%p6644_p10)
}
  0x83   : > { %s6648_s23 = scalar_lea.vmem %s6983_s24, 8192  ;;  %s6749_s26 = smov [#allocation13]  }
  0x84   : > { %p6649_p12 = scmp.ne.s32.totalorder %s6983_s24, %s6648_s23  ;;  %s6653_s29 = sshll.u32 %s6749_s26, 4  ;;  %s6654_s29 = int_to_ptr.vmem [resolvable:$false] %s6653_s29 }
  0x85   : > { %s6655_s6 = scalar_lea.vmem %s6654_s29, 16384  ;;  %p6656_p3 = scmp.lt.s32.totalorder %s6983_s24, %s6654_s29 }
  0x86   : > { %p6651_p1 = pnand %p6649_p12, %p6916_p5  ;;  %p6657_p6 = scmp.lt.s32.totalorder %s6655_s6, %s6648_s23 }
  0x88   : > { %p6652_p2 = pneg %p6651_p1  ;;  %p6658_p7 = por %p6657_p6, %p6656_p3 }
  0x8a   : > { %p6659_p8 = pnand %p6658_p7, %p6652_p2 }
  0x8c   : > { %6662 = shalt.err (!%p6659_p8)
}
  0x8d   : > { %s6750_s13 = smov 128   ;;  %s6751_s12 = smov 8  }
  0x8e   : > { %5792 = dma.hbm_to_vmem [thread:$0]  (!%p6884_p0), %s6981_s5, 8192, %s6983_s24, %s408_s11, %s6750_s13, %s6750_s13, %s6751_s12  }
  0x8f   : > { %p7604_p5 = scmp.ne.s32.totalorder %s7596_s28, 0 }
  0x90   : > { %p7605_p11 = scmp.eq.s32.totalorder (!%p7604_p5), %s6836_s21, 0 }
  0x91   : > { %431 = sbr.rel (%p7604_p5) target bundleno = 2830 (0xb0e), region = 64 }
  0x96   : > { %6704 = dma.done.wait (%p7605_p11), [#allocation5], 8192   ;;  %p7606_p4 = pmov %p7605_p11 }
  0x98   : > { %6706 = vsyncadd (%p7606_p4), [#allocation5], 4294959104  ;;  %p7607_p9 = pmov %p7606_p4 }
  0x99   : > { %p7608_p13 = pmov %p7606_p4 }
  0x9a   : > { %6708 = dma.done.wait (%p7607_p9), [#allocation8], 8272  }
  0x9b   : > { %6710 = vsyncadd (%p7608_p13), [#allocation8], 4294959024  ;;  %s445_s14 = sand.u32 1, %s6836_s21   ;;  %s447_s15 = sand.u32 1, %s6729_s18  }
  0x9c   : > { %s5013_s30 = sshll.u32 %s447_s15, 11  ;;  %s446_s28 = scalar_lea.sflag [#allocation11], %s445_s14 }
  0x9d   : > { %s7020_s5 = scalar_lea.vmem [#allocation10], %s5013_s30  ;;  %p7609_p0 = scmp.ne.s32.totalorder %s7595_s27, 0 }
  0x9f   : > { %6712 = dma.done.wait (%p7609_p0), %s446_s28, 32832  }
  0xa0   : > { %6714 = vsyncadd (%p7609_p0), %s446_s28, 4294934464  ;;  %s5014_s25 = sshll.u32 %s447_s15, 2  ;;  %s5015_s24 = sshll.u32 %s447_s15, 9 }
  0xa1   : > { %s7026_s11 = scalar_lea.vmem [#allocation12], %s5014_s25  ;;  %s464_s17 = scalar_lea.sflag [#allocation14], %s447_s15 }
  0xa2   : > { %s7028_s2 = scalar_lea.vmem [#allocation13], %s5015_s24 }
  0xa3   : > { %6716 = dma.done.wait (%p7609_p0), %s464_s17, 8192  }
  0xa4   : > { %6718 = vsyncadd (%p7609_p0), %s464_s17, 4294959104  ;;  %p7610_p10 = scmp.ne.s32.totalorder %s6836_s21, 0 }
  0xa5   : > { %s7611_s27 = sld [smem:[#allocation25_spill]] (!%p7610_p10)  ;;  %s6754_s12 = smov (!%p7610_p10), 96  }
  0xa6   : > { %518 = sbr.rel (%p7610_p10) target bundleno = 1612 (0x64c), region = 92  ;;  %s7612_s30 = sld [smem:[#allocation24_spill]] (!%p7610_p10) }
  0xa7   : > { %s7613_s22 = sld [smem:[#allocation26_spill]] (!%p7610_p10) }
  0xab   : > { %v5849_v0 = vld [vmem:[#allocation4 + $0x78] sm:$0xff]   ;;  %v5853_v4 = vld [vmem:[#allocation4 + $0x70] sm:$0xff]   ;;  %v5857_v8 = vld [vmem:[#allocation4 + $0x68] sm:$0xff]   ;;  %vm6753_vm0 = vmmov 0   ;;  %vm1932_vm1 = vcmask 64512   ;;  %vm2151_vm2 = vcmask 523264  }
  0xac   : > { %v5850_v1 = vld [vmem:[#allocation4 + $0xf8] sm:$0xff]   ;;  %5514 = vmatprep.subr.bf16.mxu0 %v5849_v0  ;;  %v5854_v5 = vld [vmem:[#allocation4 + $0xf0] sm:$0xff]   ;;  %v5858_v9 = vld [vmem:[#allocation4 + $0xe8] sm:$0xff]   ;;  %vm2207_vm3 = vcmask 261120   ;;  %vm2237_vm6 = vcmask 7168   ;;  %vm2283_vm7 = vcmask 0  }
  0xad   : > { %v5851_v2 = vld [vmem:[#allocation4 + $0x38] sm:$0xff]   ;;  %5536 = vmatprep.subr.bf16.mxu1 %v5850_v1  ;;  %v5855_v6 = vld [vmem:[#allocation4 + $0x30] sm:$0xff]   ;;  %v5859_v10 = vld [vmem:[#allocation4 + $0x28] sm:$0xff]  }
  0xae   : > { %v5852_v3 = vld [vmem:[#allocation4 + $0xb8] sm:$0xff]   ;;  %5515 = vmatpush3.bf16.msra.mxu0 %v5851_v2  ;;  %v5856_v7 = vld [vmem:[#allocation4 + $0xb0] sm:$0xff]   ;;  %v5860_v11 = vld [vmem:[#allocation4 + $0xa8] sm:$0xff]  }
  0xaf   : > { %5537 = vmatpush3.bf16.msra.mxu1 %v5852_v3  ;;  %5516 = vmatprep.subr.bf16.mxu0 %v5853_v4  ;;  %v5861_v12 = vld [vmem:[#allocation4 + $0x60] sm:$0xff]   ;;  %v5865_v16 = vld [vmem:[#allocation4 + $0x58] sm:$0xff]   ;;  %v5869_v20 = vld [vmem:[#allocation4 + $0x50] sm:$0xff]  }
  0xb0   : > { %5538 = vmatprep.subr.bf16.mxu1 %v5854_v5  ;;  %v5862_v13 = vld [vmem:[#allocation4 + $0xe0] sm:$0xff]   ;;  %v5866_v17 = vld [vmem:[#allocation4 + $0xd8] sm:$0xff]   ;;  %v5870_v21 = vld [vmem:[#allocation4 + $0xd0] sm:$0xff]  }
  0xb1   : > { %v5863_v14 = vld [vmem:[#allocation4 + $0x20] sm:$0xff]   ;;  %v5867_v18 = vld [vmem:[#allocation4 + $0x18] sm:$0xff]   ;;  %v5871_v22 = vld [vmem:[#allocation4 + $0x10] sm:$0xff]  }
  0xb2   : > { %5517 = vmatpush3.bf16.msra.mxu0 %v5855_v6  ;;  %v5864_v15 = vld [vmem:[#allocation4 + $0xa0] sm:$0xff]   ;;  %v5868_v19 = vld [vmem:[#allocation4 + $0x98] sm:$0xff]   ;;  %v5872_v23 = vld [vmem:[#allocation4 + $0x90] sm:$0xff]  }
  0xb3   : > { %5539 = vmatpush3.bf16.msra.mxu1 %v5856_v7  ;;  %5518 = vmatprep.subr.bf16.mxu0 %v5857_v8  ;;  %v5873_v24 = vld [vmem:[#allocation4 + $0x48] sm:$0xff]   ;;  %v5877_v28 = vld [vmem:[#allocation4 + $0x40] sm:$0xff]   ;;  %v5885_v38 = vld [vmem:[#allocation4 + $0x178] sm:$0xff]  }
  0xb4   : > { %5540 = vmatprep.subr.bf16.mxu1 %v5858_v9  ;;  %v5874_v25 = vld [vmem:[#allocation4 + $0xc8] sm:$0xff]   ;;  %v5878_v29 = vld [vmem:[#allocation4 + $0xc0] sm:$0xff]   ;;  %v5886_v39 = vld [vmem:[#allocation4 + $0x1f8] sm:$0xff]  }
  0xb5   : > { %v5875_v26 = vld [vmem:[#allocation4 + $0x8] sm:$0xff]   ;;  %v5879_v30 = vld [vmem:[#allocation4] sm:$0xff]   ;;  %v5887_v40 = vld [vmem:[#allocation4 + $0x138] sm:$0xff]  }
  0xb6   : > { %5519 = vmatpush3.bf16.msra.mxu0 %v5859_v10  ;;  %v5876_v27 = vld [vmem:[#allocation4 + $0x88] sm:$0xff]   ;;  %v5880_v31 = vld [vmem:[#allocation4 + $0x80] sm:$0xff]   ;;  %v5888_v41 = vld [vmem:[#allocation4 + $0x1b8] sm:$0xff]  }
  0xb7   : > { %5541 = vmatpush3.bf16.msra.mxu1 %v5860_v11  ;;  %5520 = vmatprep.subr.bf16.mxu0 %v5861_v12  ;;  %v523_v32 = vld [vmem:[%s7563_s0 + $0x20] sm:$0xff]  ;;  %v524_v33 = vld [vmem:[%s7563_s0 + $0x28] sm:$0xff]  ;;  %v5889_v42 = vld [vmem:[#allocation4 + $0x170] sm:$0xff]  }
  0xb8   : > { %5542 = vmatprep.subr.bf16.mxu1 %v5862_v13  ;;  %v5017_v34 = vcombine.low %v523_v32, %v523_v32  ;;  %v5018_v35 = vcombine.high %v523_v32, %v523_v32  ;;  %v5019_v36 = vcombine.low %v524_v33, %v524_v33  ;;  %v5020_v37 = vcombine.high %v524_v33, %v524_v33  ;;  %v5890_v43 = vld [vmem:[#allocation4 + $0x1f0] sm:$0xff]   ;;  %v5893_v46 = vld [vmem:[#allocation4 + $0x168] sm:$0xff]   ;;  %v5897_v50 = vld [vmem:[#allocation4 + $0x160] sm:$0xff]  }
  0xb9   : > { %v5891_v44 = vld [vmem:[#allocation4 + $0x130] sm:$0xff]   ;;  %v5894_v47 = vld [vmem:[#allocation4 + $0x1e8] sm:$0xff]   ;;  %v5898_v51 = vld [vmem:[#allocation4 + $0x1e0] sm:$0xff]  }
  0xba   : > { %5521 = vmatpush3.bf16.msra.mxu0 %v5863_v14  ;;  %1099 = vmatprep.mubr.bf16.mxu0 %v5018_v35  ;;  %v5892_v45 = vld [vmem:[#allocation4 + $0x1b0] sm:$0xff]   ;;  %v5895_v48 = vld [vmem:[#allocation4 + $0x128] sm:$0xff]   ;;  %v5899_v52 = vld [vmem:[#allocation4 + $0x120] sm:$0xff]  }
  0xbb   : > { %5543 = vmatpush3.bf16.msra.mxu1 %v5864_v15  ;;  %5522 = vmatprep.subr.bf16.mxu0 %v5865_v16  ;;  %v5896_v49 = vld [vmem:[#allocation4 + $0x1a8] sm:$0xff]   ;;  %v5900_v53 = vld [vmem:[#allocation4 + $0x1a0] sm:$0xff]   ;;  %v5901_v54 = vld [vmem:[#allocation4 + $0x158] sm:$0xff]  }
  0xbc   : > { %5544 = vmatprep.subr.bf16.mxu1 %v5866_v17  ;;  %1139 = vmatprep.mubr.bf16.mxu1 %v5020_v37  ;;  %v5902_v55 = vld [vmem:[#allocation4 + $0x1d8] sm:$0xff]   ;;  %v5905_v58 = vld [vmem:[#allocation4 + $0x150] sm:$0xff]   ;;  %v5909_v62 = vld [vmem:[#allocation4 + $0x148] sm:$0xff]  }
  0xbd   : > { %v5903_v56 = vld [vmem:[#allocation4 + $0x118] sm:$0xff]   ;;  %v5906_v59 = vld [vmem:[#allocation4 + $0x1d0] sm:$0xff]   ;;  %v5910_v63 = vld [vmem:[#allocation4 + $0x1c8] sm:$0xff]  }
  0xbe   : > { %5523 = vmatpush3.bf16.msra.mxu0 %v5867_v18  ;;  %v5904_v57 = vld [vmem:[#allocation4 + $0x198] sm:$0xff]   ;;  %v5907_v60 = vld [vmem:[#allocation4 + $0x110] sm:$0xff]   ;;  %v5911_v0 = vld [vmem:[#allocation4 + $0x108] sm:$0xff]  }
  0xbf   : > { %5545 = vmatpush3.bf16.msra.mxu1 %v5868_v19  ;;  %5524 = vmatprep.subr.bf16.mxu0 %v5869_v20  ;;  %v5908_v61 = vld [vmem:[#allocation4 + $0x190] sm:$0xff]   ;;  %v5912_v1 = vld [vmem:[#allocation4 + $0x188] sm:$0xff]   ;;  %v5913_v2 = vld [vmem:[#allocation4 + $0x140] sm:$0xff]  }
  0xc0   : > { %5546 = vmatprep.subr.bf16.mxu1 %v5870_v21  ;;  %v5914_v3 = vld [vmem:[#allocation4 + $0x1c0] sm:$0xff]   ;;  %v525_v6 = vld [vmem:[%s7563_s0 + $0x30] sm:$0xff]  ;;  %v526_v9 = vld [vmem:[%s7563_s0 + $0x38] sm:$0xff] }
  0xc1   : > { %v5915_v4 = vld [vmem:[#allocation4 + $0x100] sm:$0xff]   ;;  %v5021_v7 = vcombine.low %v525_v6, %v525_v6  ;;  %v5022_v8 = vcombine.high %v525_v6, %v525_v6  ;;  %v5023_v10 = vcombine.low %v526_v9, %v526_v9  ;;  %v5024_v11 = vcombine.high %v526_v9, %v526_v9  ;;  %v5921_v12 = vld [vmem:[#allocation7 + $0x78] sm:$0xff]   ;;  %v5925_v16 = vld [vmem:[#allocation7 + $0x70] sm:$0xff]  }
  0xc2   : > { %5525 = vmatpush3.bf16.msra.mxu0 %v5871_v22  ;;  %v5916_v5 = vld [vmem:[#allocation4 + $0x180] sm:$0xff]   ;;  %v5922_v13 = vld [vmem:[#allocation7 + $0xf8] sm:$0xff]   ;;  %v5926_v17 = vld [vmem:[#allocation7 + $0xf0] sm:$0xff]  }
  0xc3   : > { %5547 = vmatpush3.bf16.msra.mxu1 %v5872_v23  ;;  %5526 = vmatprep.subr.bf16.mxu0 %v5873_v24  ;;  %v5923_v14 = vld [vmem:[#allocation7 + $0x38] sm:$0xff]   ;;  %v5927_v18 = vld [vmem:[#allocation7 + $0x30] sm:$0xff]   ;;  %v5929_v20 = vld [vmem:[#allocation7 + $0x68] sm:$0xff]  }
  0xc4   : > { %5548 = vmatprep.subr.bf16.mxu1 %v5874_v25  ;;  %v5924_v15 = vld [vmem:[#allocation7 + $0xb8] sm:$0xff]   ;;  %v5928_v19 = vld [vmem:[#allocation7 + $0xb0] sm:$0xff]   ;;  %v5930_v21 = vld [vmem:[#allocation7 + $0xe8] sm:$0xff]  }
  0xc5   : > { %v5931_v22 = vld [vmem:[#allocation7 + $0x28] sm:$0xff]   ;;  %v5933_v24 = vld [vmem:[#allocation7 + $0x60] sm:$0xff]   ;;  %v5941_v32 = vld [vmem:[#allocation7 + $0x50] sm:$0xff]  }
  0xc6   : > { %5527 = vmatpush3.bf16.msra.mxu0 %v5875_v26  ;;  %v5932_v23 = vld [vmem:[#allocation7 + $0xa8] sm:$0xff]   ;;  %v5934_v25 = vld [vmem:[#allocation7 + $0xe0] sm:$0xff]   ;;  %v5942_v33 = vld [vmem:[#allocation7 + $0xd0] sm:$0xff]  }
  0xc7   : > { %5549 = vmatpush3.bf16.msra.mxu1 %v5876_v27  ;;  %5528 = vmatprep.subr.bf16.mxu0 %v5877_v28  ;;  %v5935_v26 = vld [vmem:[#allocation7 + $0x20] sm:$0xff]   ;;  %v5937_v28 = vld [vmem:[#allocation7 + $0x58] sm:$0xff]   ;;  %v5944_v35 = vld [vmem:[#allocation7 + $0x90] sm:$0xff]  }
  0xc8   : > { %5550 = vmatprep.subr.bf16.mxu1 %v5878_v29  ;;  %v5936_v27 = vld [vmem:[#allocation7 + $0xa0] sm:$0xff]   ;;  %v5938_v29 = vld [vmem:[#allocation7 + $0xd8] sm:$0xff]   ;;  %v5946_v37 = vld [vmem:[#allocation7 + $0xc8] sm:$0xff]  }
  0xc9   : > { %v5977_v6 = vld [vmem:[#allocation7 + $0x150] sm:$0xff]  }
  0xca   : > { %5529 = vmatpush3.bf16.msra.mxu0 %v5879_v30  ;;  %v5939_v30 = vld [vmem:[#allocation7 + $0x18] sm:$0xff]   ;;  %v5980_v9 = vld [vmem:[#allocation7 + $0x190] sm:$0xff]  }
  0xcb   : > { %5551 = vmatpush3.bf16.msra.mxu1 %v5880_v31  ;;  %5558 = vmatprep.subr.bf16.mxu0 %v5885_v38  ;;  %v5940_v31 = vld [vmem:[#allocation7 + $0x98] sm:$0xff]   ;;  %v5947_v38 = vld [vmem:[#allocation7 + $0x8] sm:$0xff]  }
  0xcc   : > { %5580 = vmatprep.subr.bf16.mxu1 %v5886_v39  ;;  %v5948_v39 = vld [vmem:[#allocation7 + $0x88] sm:$0xff]  }
  0xcd   : > { %1100 = vmatmul.mubr.bf16.vlgmr.msra.gmra.mxu0 %v5017_v34  ;;  %v5943_v34 = vld [vmem:[#allocation7 + $0x10] sm:$0xff]  }
  0xce   : > { %1140 = vmatmul.mubr.bf16.vlgmr.msra.gmra.mxu1 %v5019_v36  ;;  %5559 = vmatpush3.bf16.msra.mxu0 %v5887_v40  ;;  %v5945_v36 = vld [vmem:[#allocation7 + $0x48] sm:$0xff]   ;;  %v5949_v40 = vld [vmem:[#allocation7 + $0x40] sm:$0xff]  }
  0xcf   : > { %5581 = vmatpush3.bf16.msra.mxu1 %v5888_v41  ;;  %5560 = vmatprep.subr.bf16.mxu0 %v5889_v42  ;;  %v5950_v41 = vld [vmem:[#allocation7 + $0xc0] sm:$0xff]  }
  0xd0   : > { %5582 = vmatprep.subr.bf16.mxu1 %v5890_v43  ;;  %1179 = vmatprep.mubr.bf16.mxu0 %v5022_v8  ;;  %v5951_v42 = vld [vmem:[#allocation7] sm:$0xff]   ;;  %v5979_v8 = vld [vmem:[#allocation7 + $0x110] sm:$0xff]  }
  0xd1   : > { %1219 = vmatprep.mubr.bf16.mxu1 %v5024_v11  ;;  %v5952_v43 = vld [vmem:[#allocation7 + $0x80] sm:$0xff]   ;;  %v5982_v11 = vld [vmem:[#allocation7 + $0x1c8] sm:$0xff]  }
  0xd2   : > { %5561 = vmatpush3.bf16.msra.mxu0 %v5891_v44  ;;  %v1227_v44 = vld [vmem:[%s7564_s1] sm:$0xff] }
  0xd3   : > { %5583 = vmatpush3.bf16.msra.mxu1 %v5892_v45  ;;  %5562 = vmatprep.subr.bf16.mxu0 %v5893_v46  ;;  %v1228_v45 = vld [vmem:[%s7564_s1 + $0x8] sm:$0xff]  ;;  %v5089_v46 = vcombine.low %v1227_v44, %v1227_v44 }
  0xd4   : > { %5584 = vmatprep.subr.bf16.mxu1 %v5894_v47  ;;  %v5090_v47 = vcombine.high %v1227_v44, %v1227_v44 }
  0xd6   : > { %5563 = vmatpush3.bf16.msra.mxu0 %v5895_v48  ;;  %v5091_v48 = vcombine.low %v1228_v45, %v1228_v45 }
  0xd7   : > { %5585 = vmatpush3.bf16.msra.mxu1 %v5896_v49  ;;  %5564 = vmatprep.subr.bf16.mxu0 %v5897_v50  ;;  %v5092_v49 = vcombine.high %v1228_v45, %v1228_v45  ;;  %v5957_v50 = vld [vmem:[#allocation7 + $0x178] sm:$0xff]  }
  0xd8   : > { %5586 = vmatprep.subr.bf16.mxu1 %v5898_v51  ;;  %v5958_v51 = vld [vmem:[#allocation7 + $0x1f8] sm:$0xff]  }
  0xda   : > { %5565 = vmatpush3.bf16.msra.mxu0 %v5899_v52  ;;  %v5959_v52 = vld [vmem:[#allocation7 + $0x138] sm:$0xff]  }
  0xdb   : > { %5587 = vmatpush3.bf16.msra.mxu1 %v5900_v53  ;;  %5566 = vmatprep.subr.bf16.mxu0 %v5901_v54  ;;  %v5960_v53 = vld [vmem:[#allocation7 + $0x1b8] sm:$0xff]   ;;  %v5961_v54 = vld [vmem:[#allocation7 + $0x170] sm:$0xff]  }
  0xdc   : > { %5588 = vmatprep.subr.bf16.mxu1 %v5902_v55  ;;  %v5962_v55 = vld [vmem:[#allocation7 + $0x1f0] sm:$0xff]  }
  0xde   : > { %5567 = vmatpush3.bf16.msra.mxu0 %v5903_v56  ;;  %v5963_v56 = vld [vmem:[#allocation7 + $0x130] sm:$0xff]  }
  0xdf   : > { %5589 = vmatpush3.bf16.msra.mxu1 %v5904_v57  ;;  %5568 = vmatprep.subr.bf16.mxu0 %v5905_v58  ;;  %v5964_v57 = vld [vmem:[#allocation7 + $0x1b0] sm:$0xff]   ;;  %v5965_v58 = vld [vmem:[#allocation7 + $0x168] sm:$0xff]  }
  0xe0   : > { %5590 = vmatprep.subr.bf16.mxu1 %v5906_v59  ;;  %v5966_v59 = vld [vmem:[#allocation7 + $0x1e8] sm:$0xff]  }
  0xe2   : > { %5569 = vmatpush3.bf16.msra.mxu0 %v5907_v60  ;;  %v5967_v60 = vld [vmem:[#allocation7 + $0x128] sm:$0xff]  }
  0xe3   : > { %5591 = vmatpush3.bf16.msra.mxu1 %v5908_v61  ;;  %5570 = vmatprep.subr.bf16.mxu0 %v5909_v62  ;;  %v5968_v61 = vld [vmem:[#allocation7 + $0x1a8] sm:$0xff]   ;;  %v5969_v62 = vld [vmem:[#allocation7 + $0x160] sm:$0xff]  }
  0xe4   : > { %5592 = vmatprep.subr.bf16.mxu1 %v5910_v63  ;;  %v5970_v63 = vld [vmem:[#allocation7 + $0x1e0] sm:$0xff]  }
  0xe6   : > { %5571 = vmatpush3.bf16.msra.mxu0 %v5911_v0  ;;  %v5971_v0 = vld [vmem:[#allocation7 + $0x120] sm:$0xff]  }
  0xe7   : > { %5593 = vmatpush3.bf16.msra.mxu1 %v5912_v1  ;;  %5572 = vmatprep.subr.bf16.mxu0 %v5913_v2  ;;  %v5972_v1 = vld [vmem:[#allocation7 + $0x1a0] sm:$0xff]   ;;  %v5973_v2 = vld [vmem:[#allocation7 + $0x158] sm:$0xff]  }
  0xe8   : > { %5594 = vmatprep.subr.bf16.mxu1 %v5914_v3  ;;  %v5974_v3 = vld [vmem:[#allocation7 + $0x1d8] sm:$0xff]  }
  0xea   : > { %5573 = vmatpush3.bf16.msra.mxu0 %v5915_v4  ;;  %v5975_v4 = vld [vmem:[#allocation7 + $0x118] sm:$0xff]  }
  0xeb   : > { %5595 = vmatpush3.bf16.msra.mxu1 %v5916_v5  ;;  %5602 = vmatprep.subr.bf16.mxu0 %v5921_v12  ;;  %v5976_v5 = vld [vmem:[#allocation7 + $0x198] sm:$0xff]   ;;  %v5983_v12 = vld [vmem:[#allocation7 + $0x108] sm:$0xff]  }
  0xec   : > { %5624 = vmatprep.subr.bf16.mxu1 %v5922_v13  ;;  %v5984_v13 = vld [vmem:[#allocation7 + $0x188] sm:$0xff]  }
  0xed   : > { %1180 = vmatmul.mubr.bf16.vlgmr.msra.gmra.mxu0 %v5021_v7  ;;  %v5978_v7 = vld [vmem:[#allocation7 + $0x1d0] sm:$0xff]  }
  0xee   : > { %1220 = vmatmul.mubr.bf16.vlgmr.msra.gmra.mxu1 %v5023_v10  ;;  %5603 = vmatpush3.bf16.msra.mxu0 %v5923_v14  ;;  %v5981_v10 = vld [vmem:[#allocation7 + $0x148] sm:$0xff]   ;;  %v5985_v14 = vld [vmem:[#allocation7 + $0x140] sm:$0xff]  }
  0xef   : > { %5625 = vmatpush3.bf16.msra.mxu1 %v5924_v15  ;;  %5604 = vmatprep.subr.bf16.mxu0 %v5925_v16  ;;  %v5986_v15 = vld [vmem:[#allocation7 + $0x1c0] sm:$0xff]  }
  0xf0   : > { %5626 = vmatprep.subr.bf16.mxu1 %v5926_v17  ;;  %1803 = vmatprep.mubr.bf16.mxu0 %v5090_v47  ;;  %v5987_v16 = vld [vmem:[#allocation7 + $0x100] sm:$0xff]  }
  0xf1   : > { %1843 = vmatprep.mubr.bf16.mxu1 %v5092_v49  ;;  %v5988_v17 = vld [vmem:[#allocation7 + $0x180] sm:$0xff]  }
  0xf2   : > { %5605 = vmatpush3.bf16.msra.mxu0 %v5927_v18  ;;  %v1229_v18 = vld [vmem:[%s7564_s1 + $0x10] sm:$0xff] }
  0xf3   : > { %5627 = vmatpush3.bf16.msra.mxu1 %v5928_v19  ;;  %5606 = vmatprep.subr.bf16.mxu0 %v5929_v20  ;;  %v1230_v19 = vld [vmem:[%s7564_s1 + $0x18] sm:$0xff]  ;;  %v5093_v20 = vcombine.low %v1229_v18, %v1229_v18 }
  0xf4   : > { %5628 = vmatprep.subr.bf16.mxu1 %v5930_v21  ;;  %v5094_v21 = vcombine.high %v1229_v18, %v1229_v18  ;;  %v6002_v18 = vld [vmem:[%s7613_s22 + $0x10] sm:$0xff]  }
  0xf6   : > { %5607 = vmatpush3.bf16.msra.mxu0 %v5931_v22  ;;  %v5095_v22 = vcombine.low %v1230_v19, %v1230_v19 }
  0xf7   : > { %5629 = vmatpush3.bf16.msra.mxu1 %v5932_v23  ;;  %5608 = vmatprep.subr.bf16.mxu0 %v5933_v24  ;;  %v5096_v23 = vcombine.high %v1230_v19, %v1230_v19  ;;  %v6752_v24 = vmov 0.0  }
  0xf8   : > { %5630 = vmatprep.subr.bf16.mxu1 %v5934_v25  ;;  %519 = vst [vmem:[#allocation2 + $0x10] sm:$0xff] %v6752_v24  ;;  %520 = vst [vmem:[#allocation2] sm:$0xff] %v6752_v24  ;;  %v5993_v25 = vld [vmem:[%s7611_s27 + $0x38] sm:$0xff]  }
  0xf9   : > { %521 = vst [vmem:[#allocation2 + $0x18] sm:$0xff] %v6752_v24  ;;  %522 = vst [vmem:[#allocation2 + $0x8] sm:$0xff] %v6752_v24 }
  0xfa   : > { %5609 = vmatpush3.bf16.msra.mxu0 %v5935_v26  ;;  %v5994_v26 = vld [vmem:[%s7611_s27 + $0x30] sm:$0xff]  }
  0xfb   : > { %5631 = vmatpush3.bf16.msra.mxu1 %v5936_v27  ;;  %5610 = vmatprep.subr.bf16.mxu0 %v5937_v28  ;;  %v5995_v27 = vld [vmem:[%s7611_s27 + $0x28] sm:$0xff]   ;;  %v5996_v28 = vld [vmem:[%s7611_s27 + $0x20] sm:$0xff]  }
  0xfc   : > { %5632 = vmatprep.subr.bf16.mxu1 %v5938_v29  ;;  %v5997_v29 = vld [vmem:[%s7611_s27 + $0x18] sm:$0xff]  }
  0xfe   : > { %5611 = vmatpush3.bf16.msra.mxu0 %v5939_v30  ;;  %v5998_v30 = vld [vmem:[%s7611_s27 + $0x10] sm:$0xff]  }
  0xff   : > { %5633 = vmatpush3.bf16.msra.mxu1 %v5940_v31  ;;  %5612 = vmatprep.subr.bf16.mxu0 %v5941_v32 }
 0x100   : > { %5634 = vmatprep.subr.bf16.mxu1 %v5942_v33 }
 0x102   : > { %5613 = vmatpush3.bf16.msra.mxu0 %v5943_v34 }
 0x103   : > { %5635 = vmatpush3.bf16.msra.mxu1 %v5944_v35  ;;  %5614 = vmatprep.subr.bf16.mxu0 %v5945_v36 }
 0x104   : > { %5636 = vmatprep.subr.bf16.mxu1 %v5946_v37 }
 0x106   : > { %5615 = vmatpush3.bf16.msra.mxu0 %v5947_v38 }
 0x107   : > { %5637 = vmatpush3.bf16.msra.mxu1 %v5948_v39  ;;  %5616 = vmatprep.subr.bf16.mxu0 %v5949_v40 }
 0x108   : > { %5638 = vmatprep.subr.bf16.mxu1 %v5950_v41 }
 0x10a   : > { %5617 = vmatpush3.bf16.msra.mxu0 %v5951_v42 }
 0x10b   : > { %5639 = vmatpush3.bf16.msra.mxu1 %v5952_v43  ;;  %5646 = vmatprep.subr.bf16.mxu0 %v5957_v50 }
 0x10c   : > { %5668 = vmatprep.subr.bf16.mxu1 %v5958_v51 }
 0x10d   : > { %1804 = vmatmul.mubr.bf16.vlgmr.msra.gmra.mxu0 %v5089_v46 }
 0x10e   : > { %1844 = vmatmul.mubr.bf16.vlgmr.msra.gmra.mxu1 %v5091_v48  ;;  %5647 = vmatpush3.bf16.msra.mxu0 %v5959_v52 }
 0x10f   : > { %5669 = vmatpush3.bf16.msra.mxu1 %v5960_v53  ;;  %5648 = vmatprep.subr.bf16.mxu0 %v5961_v54 }
 0x110   : > { %5670 = vmatprep.subr.bf16.mxu1 %v5962_v55  ;;  %1883 = vmatprep.mubr.bf16.mxu0 %v5094_v21 }
 0x111   : > { %1923 = vmatprep.mubr.bf16.mxu1 %v5096_v23 }
 0x112   : > { %5649 = vmatpush3.bf16.msra.mxu0 %v5963_v56 }
 0x113   : > { %5671 = vmatpush3.bf16.msra.mxu1 %v5964_v57  ;;  %5650 = vmatprep.subr.bf16.mxu0 %v5965_v58 }
 0x114   : > { %5672 = vmatprep.subr.bf16.mxu1 %v5966_v59 }
 0x116   : > { %5651 = vmatpush3.bf16.msra.mxu0 %v5967_v60 }
 0x117   : > { %5673 = vmatpush3.bf16.msra.mxu1 %v5968_v61  ;;  %5652 = vmatprep.subr.bf16.mxu0 %v5969_v62 }
 0x118   : > { %5674 = vmatprep.subr.bf16.mxu1 %v5970_v63 }
 0x11a   : > { %5653 = vmatpush3.bf16.msra.mxu0 %v5971_v0 }
 0x11b   : > { %5675 = vmatpush3.bf16.msra.mxu1 %v5972_v1  ;;  %5654 = vmatprep.subr.bf16.mxu0 %v5973_v2 }
 0x11c   : > { %5676 = vmatprep.subr.bf16.mxu1 %v5974_v3 }
 0x11e   : > { %5655 = vmatpush3.bf16.msra.mxu0 %v5975_v4 }
 0x11f   : > { %5677 = vmatpush3.bf16.msra.mxu1 %v5976_v5  ;;  %5656 = vmatprep.subr.bf16.mxu0 %v5977_v6 }
 0x120   : > { %5678 = vmatprep.subr.bf16.mxu1 %v5978_v7 }
 0x122   : > { %5657 = vmatpush3.bf16.msra.mxu0 %v5979_v8 }
 0x123   : > { %5679 = vmatpush3.bf16.msra.mxu1 %v5980_v9  ;;  %5658 = vmatprep.subr.bf16.mxu0 %v5981_v10 }
 0x124   : > { %5680 = vmatprep.subr.bf16.mxu1 %v5982_v11 }
 0x126   : > { %5659 = vmatpush3.bf16.msra.mxu0 %v5983_v12 }
 0x127   : > { %5681 = vmatpush3.bf16.msra.mxu1 %v5984_v13  ;;  %5660 = vmatprep.subr.bf16.mxu0 %v5985_v14  ;;  %v1931_v13 = vld [vmem:[%s7612_s30] sm:$0xff] }
 0x128   : > { %5682 = vmatprep.subr.bf16.mxu1 %v5986_v15  ;;  %v5999_v15 = vld [vmem:[%s7611_s27 + $0x8] sm:$0xff]  }
 0x12a   : > { %5661 = vmatpush3.bf16.msra.mxu0 %v5987_v16  ;;  %v6000_v16 = vld [vmem:[%s7611_s27] sm:$0xff]  }
 0x12b   : > { %5683 = vmatpush3.bf16.msra.mxu1 %v5988_v17  ;;  %5706 = vmatprep.subr.mxu0 %v6752_v24  ;;  %v6001_v17 = vld [vmem:[%s7613_s22 + $0x18] sm:$0xff]  }
 0x12c   : > { %5711 = vmatprep.subr.bf16.mxu1 %v6752_v24 }
 0x12d   : > { %1884 = vmatmul.mubr.bf16.vlgmr.msra.gmra.mxu0 %v5093_v20 }
 0x12e   : > { %1924 = vmatmul.mubr.bf16.vlgmr.msra.gmra.mxu1 %v5095_v22  ;;  %5708 = vmatprep.mubr.msk.f32.mxu0 %vm6753_vm0, %v6752_v24 }
 0x12f   : > { %5727 = vmatprep.mubr.msk.bf16.mxu1 %vm6753_vm0, %v6752_v24  ;;  %5712 = vmatpush3.bf16.msra.mxu1 %v5993_v25 }
 0x130   : > { %5713 = vmatprep.subr.bf16.mxu1 %v6752_v24 }
 0x133   : > { %5714 = vmatpush3.bf16.msra.mxu1 %v5994_v26  ;;  %v6003_v26 = vld [vmem:[%s7613_s22 + $0x8] sm:$0xff]  }
 0x134   : > { %5715 = vmatprep.subr.bf16.mxu1 %v6752_v24 }
 0x137   : > { %5716 = vmatpush3.bf16.msra.mxu1 %v5995_v27  ;;  %v6004_v27 = vld [vmem:[%s7613_s22] sm:$0xff]  }
 0x138   : > { %5717 = vmatprep.subr.bf16.mxu1 %v6752_v24 }
 0x13b   : > { %5718 = vmatpush3.bf16.msra.mxu1 %v5996_v28 }
 0x13c   : > { %5719 = vmatprep.subr.bf16.mxu1 %v6752_v24 }
 0x13f   : > { %5720 = vmatpush3.bf16.msra.mxu1 %v5997_v29 }
 0x140   : > { %5721 = vmatprep.subr.bf16.mxu1 %v6752_v24 }
 0x143   : > { %5722 = vmatpush3.bf16.msra.mxu1 %v5998_v30 }
 0x144   : > { %5723 = vmatprep.subr.bf16.mxu1 %v6752_v24 }
 0x147   : > { %5724 = vmatpush3.bf16.msra.mxu1 %v5999_v15 }
 0x148   : > { %5725 = vmatprep.subr.bf16.mxu1 %v6752_v24 }
 0x14b   : > { %5726 = vmatpush3.bf16.msra.mxu1 %v6000_v16 }
 0x18d   : > { %v5530_v31 = vpop.f32.mrf.mxu0 }
 0x18e   : > { %v5552_v32 = vpop.f32.mrf.mxu1 }
 0x18f   : > { %v5531_v33 = vpop.f32.mrf.mxu0 }
 0x190   : > { %v5553_v34 = vpop.f32.mrf.mxu1  ;;  %v5532_v35 = vadd.f32 %v5531_v33, %v5530_v31 }
 0x191   : > { %v5554_v36 = vadd.f32 %v5553_v34, %v5552_v32  ;;  %v5533_v37 = vpop.f32.mrf.mxu0 }
 0x192   : > { %v5555_v38 = vpop.f32.mrf.mxu1 }
 0x193   : > { %v1142_v39 = vadd.f32 %v5554_v36, %v5532_v35  ;;  %v5534_v40 = vpop.f32.mrf.mxu0  ;;  %v5175_v36 = vld [vmem:[#allocation9] ss:$0 sm:$0xff] }
 0x194   : > { %v5556_v41 = vpop.f32.mrf.mxu1 }
 0x1ad   : > { %v5574_v42 = vpop.f32.mrf.mxu0 }
 0x1ae   : > { %v5596_v43 = vpop.f32.mrf.mxu1 }
 0x1af   : > { %v5575_v44 = vpop.f32.mrf.mxu0 }
 0x1b0   : > { %v5597_v45 = vpop.f32.mrf.mxu1  ;;  %v5576_v46 = vadd.f32 %v5575_v44, %v5574_v42 }
 0x1b1   : > { %v5598_v47 = vadd.f32 %v5597_v45, %v5596_v43  ;;  %v5577_v48 = vpop.f32.mrf.mxu0 }
 0x1b2   : > { %v5599_v49 = vpop.f32.mrf.mxu1  ;;  %v1182_v50 = vadd.f32 %v5576_v46, %v1142_v39 }
 0x1b3   : > { %v5578_v51 = vpop.f32.mrf.mxu0 }
 0x1b4   : > { %v5600_v52 = vpop.f32.mrf.mxu1  ;;  %v1222_v53 = vadd.f32 %v5598_v47, %v1182_v50 }
 0x1cd   : > { %v5618_v54 = vpop.f32.mrf.mxu0 }
 0x1ce   : > { %v5640_v55 = vpop.f32.mrf.mxu1 }
 0x1cf   : > { %v5619_v56 = vpop.f32.mrf.mxu0 }
 0x1d0   : > { %v5641_v57 = vpop.f32.mrf.mxu1  ;;  %v5620_v62 = vadd.f32 %v5619_v56, %v5618_v54 }
 0x1d1   : > { %v5621_v58 = vpop.f32.mrf.mxu0  ;;  %v5642_v63 = vadd.f32 %v5641_v57, %v5640_v55 }
 0x1d2   : > { %v5643_v59 = vpop.f32.mrf.mxu1 }
 0x1d3   : > { %v5622_v60 = vpop.f32.mrf.mxu0  ;;  %v1846_v3 = vadd.f32 %v5642_v63, %v5620_v62 }
 0x1d4   : > { %v5644_v61 = vpop.f32.mrf.mxu1 }
 0x1ed   : > { %v5662_v0 = vpop.f32.mrf.mxu0 }
 0x1ee   : > { %v5684_v1 = vpop.f32.mrf.mxu1 }
 0x1ef   : > { %v5663_v2 = vpop.f32.mrf.mxu0 }
 0x1f0   : > { %v5664_v4 = vadd.f32 %v5663_v2, %v5662_v0  ;;  %v5685_v5 = vpop.f32.mrf.mxu1 }
 0x1f1   : > { %v5665_v6 = vpop.f32.mrf.mxu0  ;;  %v5686_v8 = vadd.f32 %v5685_v5, %v5684_v1 }
 0x1f2   : > { %v1886_v7 = vadd.f32 %v5664_v4, %v1846_v3  ;;  %v5687_v9 = vpop.f32.mrf.mxu1 }
 0x1f3   : > { %v5666_v10 = vpop.f32.mrf.mxu0 }
 0x1f4   : > { %v1926_v11 = vadd.f32 %v5686_v8, %v1886_v7  ;;  %v5688_v12 = vpop.f32.mrf.mxu1 }
 0x1f6   : > { %5707 = vmatpush3.msra.mxu0 %v1926_v11  ;;  %v2006_v14 = vadd.f32 %v1926_v11, %v1222_v53 }
 0x1f7   : > { %5709 = vmatmul.mubr.msk.f32.vlgmr.msra.gmra.mxu0 %vm1932_vm1, %v1931_v13  ;;  %5731 = vmatprep.subr.bf16.mxu0 %v6752_v24 }
 0x1f8   : > { %5739 = vmatprep.mubr.msk.bf16.mxu0 %vm6753_vm0, %v6752_v24  ;;  %5732 = vmatpush3.bf16.msra.mxu0 %v6001_v17  ;;  %v2008_v22 = vmax.f32 %v2006_v14, 0.0 }
 0x1f9   : > { %5733 = vmatprep.subr.bf16.mxu0 %v6752_v24 }
 0x1fc   : > { %5734 = vmatpush3.bf16.msra.mxu0 %v6002_v18 }
 0x1fd   : > { %5735 = vmatprep.subr.bf16.mxu0 %v6752_v24 }
 0x200   : > { %5736 = vmatpush3.bf16.msra.mxu0 %v6003_v26 }
 0x201   : > { %5737 = vmatprep.subr.bf16.mxu0 %v6752_v24 }
 0x204   : > { %5738 = vmatpush3.bf16.msra.mxu0 %v6004_v27 }
 0x2b7   : > { %v2002_v19 = vpop.f32.mrf.mxu0 }
 0x2b8   : > { %v2007_v20 = vadd.f32 %v2002_v19, %v1222_v53 }
 0x2b9   : > { %v5710_v21 = vpop.f32.mrf.mxu0 }
 0x2ba   : > { %v2009_v23 = vmax.f32 %v2007_v20, 0.0 }
 0x2bc   : > { %v2010_v25 = vpack.c.bf16 %v2009_v23, %v2008_v22 }
 0x2be   : > { %5728 = vmatmul.mubr.bf16.vlgmr.msra.gmra.mxu1 %v2010_v25 }
 0x37e   : > { %v2109_v28 = vpop.f32.mrf.mxu1 }
 0x37f   : > { %v2116_v31 = vmax.f32 %v2109_v28, 0.0 }
 0x380   : > { %v5729_v29 = vpop.f32.mrf.mxu1 }
 0x382   : > { %v2112_v30 = vpop.f32.mrf.mxu1 }
 0x383   : > { %v2117_v32 = vmax.f32 %v2112_v30, 0.0 }
 0x384   : > { %v5730_v33 = vpop.f32.mrf.mxu1 }
 0x385   : > { %v2118_v34 = vpack.c.bf16 %v2117_v32, %v2116_v31 }
 0x387   : > { %5740 = vmatmul.mubr.msk.bf16.vlgmr.msra.gmra.mxu0 %vm2151_vm2, %v2118_v34 }
 0x447   : > { %v2189_v35 = vpop.f32.mrf.mxu0 }
 0x448   : > { %v2196_v37 = vmax.f32 %v2189_v35, 0.0 }
 0x449   : > { %v5741_v38 = vpop.f32.mrf.mxu0 }
 0x44a   : > { %v2205_v24 = vmul.f32 %v5175_v36, %v2196_v37 }
 0x44b   : > { %v2192_v39 = vpop.f32.mrf.mxu0 }
 0x44c   : > { %v2197_v40 = vmax.f32 %v2192_v39, 0.0  ;;  %v2208_v41 = vsel %vm2207_vm3, %v2205_v24, 0.0 }
 0x44d   : > { %2209 = vadd.xlane.f32.xlu0 %v2208_v41  ;;  %v5742_v42 = vpop.f32.mrf.mxu0 }
 0x44e   : > { %v2206_v43 = vmul.f32 %v5175_v36, %v2197_v40 }
 0x450   : > { %v2211_v44 = vsel %vm2207_vm3, %v2206_v43, 0.0 }
 0x451   : > { %2212 = vadd.xlane.f32.xlu0 %v2211_v44 }
 0x4d6   : > { %v2210_v45 = vpop.xlane.xlu0 %2209 }
 0x4d7   : > { %v2214_v46 = vadd.f32 %v5175_v36, %v2210_v45 }
 0x4d9   : > { %v2216_v47 = vsub.f32 0.0, %v2214_v46 }
 0x4da   : > { %v2213_v48 = vpop.xlane.xlu0 %2212 }
 0x4db   : > { %v2218_v49 = vand.u32 2147483647, %v2216_v47  ;;  %v2215_v50 = vadd.f32 %v5175_v36, %v2213_v48  ;;  %v2217_v5 = vmax.f32 %v2216_v47, 0.0 }
 0x4dd   : > { %v2219_v51 = vsub.f32 0.0, %v2218_v49  ;;  %v2252_v52 = vand.u32 2147483647, %v2215_v50  ;;  %v2251_v13 = vmax.f32 %v2215_v50, 0.0 }
 0x4df   : > { %v2220_v53 = vmul.f32 1.442695, %v2219_v51  ;;  %v2253_v54 = vsub.f32 0.0, %v2252_v52 }
 0x4e1   : > { %6005 = vpow2.f32 %v2220_v53  ;;  %v2254_v55 = vmul.f32 1.442695, %v2253_v54 }
 0x4e3   : > { %6007 = vpow2.f32 %v2254_v55 }
 0x4ee   : > { %v6006_v56 = vpop.eup %6005 }
 0x4ef   : > { %v2222_v57 = vadd.f32 1.0, %v6006_v56  ;;  %v2225_v60 = vmul.f32 -0.5, %v6006_v56  ;;  %v2228_v63 = vand.u32 2147483647, %v6006_v56 }
 0x4f0   : > { %v6008_v58 = vpop.eup %6007 }
 0x4f1   : > { %6009 = vlog2.f32 %v2222_v57  ;;  %v2256_v59 = vadd.f32 1.0, %v6008_v58  ;;  %v2226_v61 = vadd.f32 1.0, %v2225_v60  ;;  %v2259_v62 = vmul.f32 -0.5, %v6008_v58 }
 0x4f2   : > { %vm2229_vm4 = vcmp.lt.f32.partialorder %v2228_v63, 0.0004427343  ;;  %v2262_v6 = vand.u32 2147483647, %v6008_v58 }
 0x4f3   : > { %6011 = vlog2.f32 %v2256_v59  ;;  %v2227_v2 = vmul.f32 %v6006_v56, %v2226_v61  ;;  %v2260_v3 = vadd.f32 1.0, %v2259_v62 }
 0x4f4   : > { %vm2263_vm5 = vcmp.lt.f32.partialorder %v2262_v6, 0.0004427343 }
 0x4f5   : > { %v2261_v10 = vmul.f32 %v6008_v58, %v2260_v3 }
 0x4fe   : > { %v6010_v0 = vpop.eup %6009 }
 0x4ff   : > { %v2224_v1 = vmul.f32 0.6931472, %v6010_v0 }
 0x500   : > { %v6012_v4 = vpop.eup %6011 }
 0x501   : > { %v2230_v7 = vsel %vm2229_vm4, %v2227_v2, %v2224_v1  ;;  %v2258_v8 = vmul.f32 0.6931472, %v6012_v4 }
 0x502   : > { %v2231_v9 = vadd.f32 %v2230_v7, %v2217_v5 }
 0x503   : > { %v2264_v12 = vsel %vm2263_vm5, %v2261_v10, %v2258_v8 }
 0x504   : > { %v2232_v11 = vsub.f32 0.0, %v2231_v9  ;;  %v2265_v14 = vadd.f32 %v2264_v12, %v2251_v13 }
 0x506   : > { %2234 = vrot.lane.b32.xlu1 %v2232_v11, %s6754_s12 }
 0x50a   : > { %2267 = vrot.lane.b32.xlu1 %v2265_v14, %s6754_s12 }
 0x578   : > { %v2235_v15 = vpop.permute.xlu1 %2234 }
 0x579   : > { %v2238_v16 = vsel %vm2237_vm6, %v2235_v15, 0.0 }
 0x57a   : > { %2239 = vadd.xlane.f32.xlu0 %v2238_v16 }
 0x57c   : > { %v2268_v17 = vpop.permute.xlu1 %2267 }
 0x57d   : > { %v2270_v18 = vsel %vm2237_vm6, %v2268_v17, 0.0 }
 0x57e   : > { %2271 = vadd.xlane.f32.xlu1 %v2270_v18 }
 0x603   : > { %v2240_v19 = vpop.xlane.xlu0 %2239 }
 0x604   : > { %v2241_v20 = vrot.slane %v2240_v19, 4 }
 0x606   : > { %v2242_v21 = vadd.f32 %v2241_v20, %v2240_v19 }
 0x607   : > { %v2272_v22 = vpop.xlane.xlu1 %2271 }
 0x608   : > { %v2243_v23 = vrot.slane %v2242_v21, 2  ;;  %v2273_v25 = vrot.slane %v2272_v22, 4 }
 0x60a   : > { %v2274_v26 = vadd.f32 %v2273_v25, %v2272_v22  ;;  %v2244_v27 = vadd.f32 %v2243_v23, %v2242_v21 }
 0x60c   : > { %v2275_v28 = vrot.slane %v2274_v26, 2  ;;  %v2245_v29 = vrot.slane %v2244_v27, 1 }
 0x60e   : > { %v2276_v30 = vadd.f32 %v2275_v28, %v2274_v26  ;;  %v2246_v31 = vadd.f32 %v2245_v29, %v2244_v27 }
 0x610   : > { %5743 = vpush %v2246_v31  ;;  %v2277_v32 = vrot.slane %v2276_v30, 1 }
 0x612   : > { %v2278_v33 = vadd.f32 %v2277_v32, %v2276_v30 }
 0x614   : > { %5745 = vpush %v2278_v33 }
 0x641   : > { %s5744_s14 = spop %5743 }
 0x642   : > { %v2248_v34 = vstv %s5744_s14 }
 0x643   : > { %v2250_v36 = vmul.f32 0.125, %v2248_v34 }
 0x645   : > { %s5746_s15 = spop %5745 }
 0x646   : > { %v2280_v35 = vstv %s5746_s15 }
 0x647   : > { %v2281_v37 = vmul.f32 0.125, %v2280_v35 }
 0x649   : > { %v2282_v38 = vsub.f32 %v2281_v37, %v2250_v36 }
 0x64b   : > { %2284 = vst.msk [vmem:[#allocation3] sm:$0x1] %vm2283_vm7, %v2282_v38 }
 0x64c PF: > { %v6013_v24 = vld [vmem:[%s7020_s5 + $0xe4] ss:$16 sps:$4 sm:$0xff]   ;;  %v6017_v40 = vld [vmem:[%s7020_s5 + $0xe0] ss:$16 sps:$4 sm:$0xff]   ;;  %p5504_p12 = scmp.ne.s32.totalorder %s6836_s21, 1 }
 0x64d   : > { %v6015_v39 = vld [vmem:[%s7020_s5 + $0x2e4] ss:$16 sps:$4 sm:$0xff]   ;;  %3891 = vmatprep.subr.bf16.mxu0 %v6013_v24  ;;  %v6018_v41 = vld [vmem:[%s7020_s5 + $0x2e0] ss:$16 sps:$4 sm:$0xff]  }
 0x64e   : > { %3934 = vmatprep.subr.bf16.mxu1 %v6015_v39  ;;  %v6019_v42 = vld [vmem:[%s7020_s5 + $0xc4] ss:$16 sps:$4 sm:$0xff]   ;;  %3892 = vmatpush1.bf16.msra.mxu0 %v6017_v40  ;;  %v6023_v44 = vld [vmem:[%s7020_s5 + $0xc0] ss:$16 sps:$4 sm:$0xff]  }
 0x64f   : > { %3935 = vmatpush1.bf16.msra.mxu1 %v6018_v41  ;;  %v6021_v43 = vld [vmem:[%s7020_s5 + $0x2c4] ss:$16 sps:$4 sm:$0xff]   ;;  %3893 = vmatprep.subr.bf16.mxu0 %v6019_v42  ;;  %v6024_v45 = vld [vmem:[%s7020_s5 + $0x2c0] ss:$16 sps:$4 sm:$0xff]  }
 0x650   : > { %3936 = vmatprep.subr.bf16.mxu1 %v6021_v43  ;;  %v6025_v46 = vld [vmem:[%s7020_s5 + $0xa4] ss:$16 sps:$4 sm:$0xff]   ;;  %v6029_v48 = vld [vmem:[%s7020_s5 + $0xa0] ss:$16 sps:$4 sm:$0xff]  }
 0x651   : > { %v6027_v47 = vld [vmem:[%s7020_s5 + $0x2a4] ss:$16 sps:$4 sm:$0xff]   ;;  %v6030_v49 = vld [vmem:[%s7020_s5 + $0x2a0] ss:$16 sps:$4 sm:$0xff]  }
 0x652   : > { %3894 = vmatpush1.bf16.msra.mxu0 %v6023_v44  ;;  %v6031_v50 = vld [vmem:[%s7020_s5 + $0x84] ss:$16 sps:$4 sm:$0xff]   ;;  %v6035_v52 = vld [vmem:[%s7020_s5 + $0x80] ss:$16 sps:$4 sm:$0xff]  }
 0x653   : > { %3937 = vmatpush1.bf16.msra.mxu1 %v6024_v45  ;;  %3895 = vmatprep.subr.bf16.mxu0 %v6025_v46  ;;  %v6033_v51 = vld [vmem:[%s7020_s5 + $0x284] ss:$16 sps:$4 sm:$0xff]   ;;  %v6036_v53 = vld [vmem:[%s7020_s5 + $0x280] ss:$16 sps:$4 sm:$0xff]  }
 0x654   : > { %3938 = vmatprep.subr.bf16.mxu1 %v6027_v47  ;;  %v6037_v54 = vld [vmem:[%s7020_s5 + $0x64] ss:$16 sps:$4 sm:$0xff]   ;;  %v6041_v56 = vld [vmem:[%s7020_s5 + $0x60] ss:$16 sps:$4 sm:$0xff]  }
 0x655   : > { %v6039_v55 = vld [vmem:[%s7020_s5 + $0x264] ss:$16 sps:$4 sm:$0xff]   ;;  %v6042_v57 = vld [vmem:[%s7020_s5 + $0x260] ss:$16 sps:$4 sm:$0xff]  }
 0x656   : > { %3896 = vmatpush1.bf16.msra.mxu0 %v6029_v48  ;;  %v6043_v58 = vld [vmem:[%s7020_s5 + $0x44] ss:$16 sps:$4 sm:$0xff]   ;;  %v6047_v60 = vld [vmem:[%s7020_s5 + $0x40] ss:$16 sps:$4 sm:$0xff]  }
 0x657   : > { %3939 = vmatpush1.bf16.msra.mxu1 %v6030_v49  ;;  %3897 = vmatprep.subr.bf16.mxu0 %v6031_v50  ;;  %v6045_v59 = vld [vmem:[%s7020_s5 + $0x244] ss:$16 sps:$4 sm:$0xff]   ;;  %v6048_v61 = vld [vmem:[%s7020_s5 + $0x240] ss:$16 sps:$4 sm:$0xff]  }
 0x658   : > { %3940 = vmatprep.subr.bf16.mxu1 %v6033_v51  ;;  %v6049_v62 = vld [vmem:[%s7020_s5 + $0x24] ss:$16 sps:$4 sm:$0xff]   ;;  %v6053_v0 = vld [vmem:[%s7020_s5 + $0x20] ss:$16 sps:$4 sm:$0xff]  }
 0x659   : > { %v6051_v63 = vld [vmem:[%s7020_s5 + $0x224] ss:$16 sps:$4 sm:$0xff]   ;;  %v6054_v1 = vld [vmem:[%s7020_s5 + $0x220] ss:$16 sps:$4 sm:$0xff]  }
 0x65a   : > { %3898 = vmatpush1.bf16.msra.mxu0 %v6035_v52  ;;  %v6055_v2 = vld [vmem:[%s7020_s5 + $0x4] ss:$16 sps:$4 sm:$0xff]   ;;  %v6059_v4 = vld [vmem:[%s7020_s5] ss:$16 sps:$4 sm:$0xff]  }
 0x65b   : > { %3941 = vmatpush1.bf16.msra.mxu1 %v6036_v53  ;;  %3899 = vmatprep.subr.bf16.mxu0 %v6037_v54  ;;  %v6057_v3 = vld [vmem:[%s7020_s5 + $0x204] ss:$16 sps:$4 sm:$0xff]   ;;  %v6060_v5 = vld [vmem:[%s7020_s5 + $0x200] ss:$16 sps:$4 sm:$0xff]  }
 0x65c   : > { %3942 = vmatprep.subr.bf16.mxu1 %v6039_v55  ;;  %v6061_v6 = vld [vmem:[%s7020_s5 + $0x1e4] ss:$16 sps:$4 sm:$0xff]   ;;  %v6065_v8 = vld [vmem:[%s7020_s5 + $0x1e0] ss:$16 sps:$4 sm:$0xff]  }
 0x65d   : > { %v6063_v7 = vld [vmem:[%s7020_s5 + $0x3e4] ss:$16 sps:$4 sm:$0xff]   ;;  %v6066_v9 = vld [vmem:[%s7020_s5 + $0x3e0] ss:$16 sps:$4 sm:$0xff]  }
 0x65e   : > { %3900 = vmatpush1.bf16.msra.mxu0 %v6041_v56  ;;  %v6067_v10 = vld [vmem:[%s7020_s5 + $0x1c4] ss:$16 sps:$4 sm:$0xff]   ;;  %v6071_v12 = vld [vmem:[%s7020_s5 + $0x1c0] ss:$16 sps:$4 sm:$0xff]  }
 0x65f   : > { %3943 = vmatpush1.bf16.msra.mxu1 %v6042_v57  ;;  %3901 = vmatprep.subr.bf16.mxu0 %v6043_v58  ;;  %v6069_v11 = vld [vmem:[%s7020_s5 + $0x3c4] ss:$16 sps:$4 sm:$0xff]   ;;  %v6072_v13 = vld [vmem:[%s7020_s5 + $0x3c0] ss:$16 sps:$4 sm:$0xff]  }
 0x660   : > { %3944 = vmatprep.subr.bf16.mxu1 %v6045_v59  ;;  %v6073_v14 = vld [vmem:[%s7020_s5 + $0x1a4] ss:$16 sps:$4 sm:$0xff]   ;;  %v6077_v16 = vld [vmem:[%s7020_s5 + $0x1a0] ss:$16 sps:$4 sm:$0xff]  }
 0x661   : > { %v6075_v15 = vld [vmem:[%s7020_s5 + $0x3a4] ss:$16 sps:$4 sm:$0xff]   ;;  %v6078_v17 = vld [vmem:[%s7020_s5 + $0x3a0] ss:$16 sps:$4 sm:$0xff]  }
 0x662   : > { %3902 = vmatpush1.bf16.msra.mxu0 %v6047_v60  ;;  %v6079_v18 = vld [vmem:[%s7020_s5 + $0x184] ss:$16 sps:$4 sm:$0xff]   ;;  %v6083_v20 = vld [vmem:[%s7020_s5 + $0x180] ss:$16 sps:$4 sm:$0xff]  }
 0x663   : > { %3945 = vmatpush1.bf16.msra.mxu1 %v6048_v61  ;;  %3903 = vmatprep.subr.bf16.mxu0 %v6049_v62  ;;  %v6081_v19 = vld [vmem:[%s7020_s5 + $0x384] ss:$16 sps:$4 sm:$0xff]   ;;  %v6084_v21 = vld [vmem:[%s7020_s5 + $0x380] ss:$16 sps:$4 sm:$0xff]  }
 0x664   : > { %3946 = vmatprep.subr.bf16.mxu1 %v6051_v63  ;;  %v2285_v22 = vld [vmem:[%s7563_s0] sm:$0xff]  ;;  %v2286_v25 = vld [vmem:[%s7563_s0 + $0x8] sm:$0xff] }
 0x665   : > { %v2289_v23 = vld [vmem:[%s7563_s0 + $0x20] sm:$0xff]  ;;  %v2290_v26 = vld [vmem:[%s7563_s0 + $0x28] sm:$0xff] }
 0x666   : > { %3904 = vmatpush1.bf16.msra.mxu0 %v6053_v0  ;;  %v6085_v27 = vld [vmem:[%s7020_s5 + $0x164] ss:$16 sps:$4 sm:$0xff]   ;;  %v7183_v28 = vcombine.high %v2285_v22, %v2289_v23  ;;  %v7186_v30 = vcombine.high %v2286_v25, %v2290_v26  ;;  %v6089_v31 = vld [vmem:[%s7020_s5 + $0x160] ss:$16 sps:$4 sm:$0xff]   ;;  %v7206_v46 = vcombine.low %v2285_v22, %v2289_v23  ;;  %v7208_v47 = vcombine.low %v2286_v25, %v2290_v26 }
 0x667   : > { %3947 = vmatpush1.bf16.msra.mxu1 %v6054_v1  ;;  %3905 = vmatprep.subr.bf16.mxu0 %v6055_v2  ;;  %v6087_v29 = vld [vmem:[%s7020_s5 + $0x364] ss:$16 sps:$4 sm:$0xff]   ;;  %v6090_v32 = vld [vmem:[%s7020_s5 + $0x360] ss:$16 sps:$4 sm:$0xff]  }
 0x668   : > { %3948 = vmatprep.subr.bf16.mxu1 %v6057_v3  ;;  %3923 = vmatprep.mubr.bf16.mxu0 %v7183_v28  ;;  %v6091_v33 = vld [vmem:[%s7020_s5 + $0x144] ss:$16 sps:$4 sm:$0xff]   ;;  %v6095_v35 = vld [vmem:[%s7020_s5 + $0x140] ss:$16 sps:$4 sm:$0xff]  }
 0x669   : > { %3966 = vmatprep.mubr.bf16.mxu1 %v7186_v30  ;;  %v6093_v34 = vld [vmem:[%s7020_s5 + $0x344] ss:$16 sps:$4 sm:$0xff]   ;;  %v6096_v36 = vld [vmem:[%s7020_s5 + $0x340] ss:$16 sps:$4 sm:$0xff]  }
 0x66a   : > { %3906 = vmatpush1.bf16.msra.mxu0 %v6059_v4  ;;  %v6097_v37 = vld [vmem:[%s7020_s5 + $0x124] ss:$16 sps:$4 sm:$0xff]   ;;  %v6101_v24 = vld [vmem:[%s7020_s5 + $0x120] ss:$16 sps:$4 sm:$0xff]  }
 0x66b   : > { %3949 = vmatpush1.bf16.msra.mxu1 %v6060_v5  ;;  %3907 = vmatprep.subr.bf16.mxu0 %v6061_v6  ;;  %v6099_v38 = vld [vmem:[%s7020_s5 + $0x324] ss:$16 sps:$4 sm:$0xff]   ;;  %v6102_v39 = vld [vmem:[%s7020_s5 + $0x320] ss:$16 sps:$4 sm:$0xff]  }
 0x66c   : > { %3950 = vmatprep.subr.bf16.mxu1 %v6063_v7  ;;  %v6103_v40 = vld [vmem:[%s7020_s5 + $0x104] ss:$16 sps:$4 sm:$0xff]   ;;  %v6107_v42 = vld [vmem:[%s7020_s5 + $0x100] ss:$16 sps:$4 sm:$0xff]  }
 0x66d   : > { %v6105_v41 = vld [vmem:[%s7020_s5 + $0x304] ss:$16 sps:$4 sm:$0xff]   ;;  %v6108_v43 = vld [vmem:[%s7020_s5 + $0x300] ss:$16 sps:$4 sm:$0xff]  }
 0x66e   : > { %3908 = vmatpush2.bf16.msra.mxu0 %v6065_v8  ;;  %v6111_v44 = vld [vmem:[%s7020_s5 + $0x4e4] ss:$16 sps:$4 sm:$0xff]   ;;  %v6109_v48 = vld [vmem:[%s7020_s5 + $0x4e0] ss:$16 sps:$4 sm:$0xff]  }
 0x66f   : > { %3951 = vmatpush2.bf16.msra.mxu1 %v6066_v9  ;;  %3909 = vmatprep.subr.bf16.mxu0 %v6067_v10  ;;  %v6114_v45 = vld [vmem:[%s7020_s5 + $0x6e4] ss:$16 sps:$4 sm:$0xff]   ;;  %v6112_v49 = vld [vmem:[%s7020_s5 + $0x6e0] ss:$16 sps:$4 sm:$0xff]  }
 0x670   : > { %3952 = vmatprep.subr.bf16.mxu1 %v6069_v11  ;;  %v6117_v50 = vld [vmem:[%s7020_s5 + $0x4c4] ss:$16 sps:$4 sm:$0xff]   ;;  %v6115_v52 = vld [vmem:[%s7020_s5 + $0x4c0] ss:$16 sps:$4 sm:$0xff]  }
 0x671   : > { %v6120_v51 = vld [vmem:[%s7020_s5 + $0x6c4] ss:$16 sps:$4 sm:$0xff]   ;;  %v6118_v53 = vld [vmem:[%s7020_s5 + $0x6c0] ss:$16 sps:$4 sm:$0xff]  }
 0x672   : > { %3910 = vmatpush2.bf16.msra.mxu0 %v6071_v12  ;;  %v6123_v54 = vld [vmem:[%s7020_s5 + $0x4a4] ss:$16 sps:$4 sm:$0xff]   ;;  %v6121_v56 = vld [vmem:[%s7020_s5 + $0x4a0] ss:$16 sps:$4 sm:$0xff]  }
 0x673   : > { %3953 = vmatpush2.bf16.msra.mxu1 %v6072_v13  ;;  %3911 = vmatprep.subr.bf16.mxu0 %v6073_v14  ;;  %v6126_v55 = vld [vmem:[%s7020_s5 + $0x6a4] ss:$16 sps:$4 sm:$0xff]   ;;  %v6124_v57 = vld [vmem:[%s7020_s5 + $0x6a0] ss:$16 sps:$4 sm:$0xff]  }
 0x674   : > { %3954 = vmatprep.subr.bf16.mxu1 %v6075_v15  ;;  %v6129_v58 = vld [vmem:[%s7020_s5 + $0x484] ss:$16 sps:$4 sm:$0xff]   ;;  %v6127_v60 = vld [vmem:[%s7020_s5 + $0x480] ss:$16 sps:$4 sm:$0xff]  }
 0x675   : > { %v6132_v59 = vld [vmem:[%s7020_s5 + $0x684] ss:$16 sps:$4 sm:$0xff]   ;;  %v6130_v61 = vld [vmem:[%s7020_s5 + $0x680] ss:$16 sps:$4 sm:$0xff]  }
 0x676   : > { %3912 = vmatpush2.bf16.msra.mxu0 %v6077_v16  ;;  %v6135_v62 = vld [vmem:[%s7020_s5 + $0x464] ss:$16 sps:$4 sm:$0xff]   ;;  %v6133_v0 = vld [vmem:[%s7020_s5 + $0x460] ss:$16 sps:$4 sm:$0xff]  }
 0x677   : > { %3955 = vmatpush2.bf16.msra.mxu1 %v6078_v17  ;;  %3913 = vmatprep.subr.bf16.mxu0 %v6079_v18  ;;  %v6138_v63 = vld [vmem:[%s7020_s5 + $0x664] ss:$16 sps:$4 sm:$0xff]   ;;  %v6136_v1 = vld [vmem:[%s7020_s5 + $0x660] ss:$16 sps:$4 sm:$0xff]  }
 0x678   : > { %3956 = vmatprep.subr.bf16.mxu1 %v6081_v19  ;;  %v6141_v2 = vld [vmem:[%s7020_s5 + $0x444] ss:$16 sps:$4 sm:$0xff]   ;;  %v6139_v4 = vld [vmem:[%s7020_s5 + $0x440] ss:$16 sps:$4 sm:$0xff]  }
 0x679   : > { %v6144_v3 = vld [vmem:[%s7020_s5 + $0x644] ss:$16 sps:$4 sm:$0xff]   ;;  %v6142_v5 = vld [vmem:[%s7020_s5 + $0x640] ss:$16 sps:$4 sm:$0xff]  }
 0x67a   : > { %3914 = vmatpush2.bf16.msra.mxu0 %v6083_v20  ;;  %v6147_v6 = vld [vmem:[%s7020_s5 + $0x424] ss:$16 sps:$4 sm:$0xff]   ;;  %v6145_v8 = vld [vmem:[%s7020_s5 + $0x420] ss:$16 sps:$4 sm:$0xff]  }
 0x67b   : > { %3957 = vmatpush2.bf16.msra.mxu1 %v6084_v21  ;;  %3915 = vmatprep.subr.bf16.mxu0 %v6085_v27  ;;  %v6150_v7 = vld [vmem:[%s7020_s5 + $0x624] ss:$16 sps:$4 sm:$0xff]   ;;  %v6148_v9 = vld [vmem:[%s7020_s5 + $0x620] ss:$16 sps:$4 sm:$0xff]  }
 0x67c   : > { %3958 = vmatprep.subr.bf16.mxu1 %v6087_v29  ;;  %v7241_v10 = vld [vmem:[%s7563_s0 + $0x10] sm:$0xff]  ;;  %v7251_v12 = vld [vmem:[%s7563_s0 + $0x18] sm:$0xff] }
 0x67d   : > { %v7246_v11 = vld [vmem:[%s7563_s0 + $0x30] sm:$0xff]  ;;  %v7256_v13 = vld [vmem:[%s7563_s0 + $0x38] sm:$0xff] }
 0x67e   : > { %3916 = vmatpush2.bf16.msra.mxu0 %v6089_v31  ;;  %v6153_v14 = vld [vmem:[%s7020_s5 + $0x404] ss:$16 sps:$4 sm:$0xff]   ;;  %v7261_v15 = vcombine.high %v7241_v10, %v7246_v11  ;;  %v7266_v17 = vcombine.high %v7251_v12, %v7256_v13  ;;  %v6151_v18 = vld [vmem:[%s7020_s5 + $0x400] ss:$16 sps:$4 sm:$0xff]  }
 0x67f   : > { %3959 = vmatpush2.bf16.msra.mxu1 %v6090_v32  ;;  %3917 = vmatprep.subr.bf16.mxu0 %v6091_v33  ;;  %v6156_v16 = vld [vmem:[%s7020_s5 + $0x604] ss:$16 sps:$4 sm:$0xff]   ;;  %v6154_v19 = vld [vmem:[%s7020_s5 + $0x600] ss:$16 sps:$4 sm:$0xff]  }
 0x680   : > { %3960 = vmatprep.subr.bf16.mxu1 %v6093_v34  ;;  %v6159_v20 = vld [vmem:[%s7020_s5 + $0x5e4] ss:$16 sps:$4 sm:$0xff]   ;;  %v6157_v22 = vld [vmem:[%s7020_s5 + $0x5e0] ss:$16 sps:$4 sm:$0xff]  }
 0x681   : > { %v6162_v21 = vld [vmem:[%s7020_s5 + $0x7e4] ss:$16 sps:$4 sm:$0xff]   ;;  %v6160_v23 = vld [vmem:[%s7020_s5 + $0x7e0] ss:$16 sps:$4 sm:$0xff]  }
 0x682   : > { %3918 = vmatpush2.bf16.msra.mxu0 %v6095_v35  ;;  %v6165_v25 = vld [vmem:[%s7020_s5 + $0x5c4] ss:$16 sps:$4 sm:$0xff]   ;;  %v6163_v27 = vld [vmem:[%s7020_s5 + $0x5c0] ss:$16 sps:$4 sm:$0xff]  }
 0x683   : > { %3961 = vmatpush2.bf16.msra.mxu1 %v6096_v36  ;;  %3919 = vmatprep.subr.bf16.mxu0 %v6097_v37  ;;  %v6168_v26 = vld [vmem:[%s7020_s5 + $0x7c4] ss:$16 sps:$4 sm:$0xff]   ;;  %v6166_v29 = vld [vmem:[%s7020_s5 + $0x7c0] ss:$16 sps:$4 sm:$0xff]  }
 0x684   : > { %3962 = vmatprep.subr.bf16.mxu1 %v6099_v38  ;;  %v6171_v31 = vld [vmem:[%s7020_s5 + $0x5a4] ss:$16 sps:$4 sm:$0xff]   ;;  %v6169_v33 = vld [vmem:[%s7020_s5 + $0x5a0] ss:$16 sps:$4 sm:$0xff]  }
 0x685   : > { %v6174_v32 = vld [vmem:[%s7020_s5 + $0x7a4] ss:$16 sps:$4 sm:$0xff]   ;;  %v6172_v34 = vld [vmem:[%s7020_s5 + $0x7a0] ss:$16 sps:$4 sm:$0xff]  }
 0x686   : > { %3920 = vmatpush2.bf16.msra.mxu0 %v6101_v24  ;;  %v6177_v35 = vld [vmem:[%s7020_s5 + $0x584] ss:$16 sps:$4 sm:$0xff]   ;;  %v6175_v37 = vld [vmem:[%s7020_s5 + $0x580] ss:$16 sps:$4 sm:$0xff]  }
 0x687   : > { %3963 = vmatpush2.bf16.msra.mxu1 %v6102_v39  ;;  %3921 = vmatprep.subr.bf16.mxu0 %v6103_v40  ;;  %v6180_v36 = vld [vmem:[%s7020_s5 + $0x784] ss:$16 sps:$4 sm:$0xff]   ;;  %v6178_v38 = vld [vmem:[%s7020_s5 + $0x780] ss:$16 sps:$4 sm:$0xff]  }
 0x688   : > { %3964 = vmatprep.subr.bf16.mxu1 %v6105_v41  ;;  %v6183_v24 = vld [vmem:[%s7020_s5 + $0x564] ss:$16 sps:$4 sm:$0xff]   ;;  %v6181_v40 = vld [vmem:[%s7020_s5 + $0x560] ss:$16 sps:$4 sm:$0xff]  }
 0x689   : > { %v6186_v39 = vld [vmem:[%s7020_s5 + $0x764] ss:$16 sps:$4 sm:$0xff]   ;;  %v6184_v41 = vld [vmem:[%s7020_s5 + $0x760] ss:$16 sps:$4 sm:$0xff]  }
 0x68a   : > { %3922 = vmatpush2.bf16.msra.mxu0 %v6107_v42  ;;  %v6189_v42 = vld [vmem:[%s7020_s5 + $0x544] ss:$16 sps:$4 sm:$0xff]  }
 0x68b   : > { %3965 = vmatpush2.bf16.msra.mxu1 %v6108_v43  ;;  %3977 = vmatprep.subr.bf16.mxu0 %v6111_v44  ;;  %v6192_v43 = vld [vmem:[%s7020_s5 + $0x744] ss:$16 sps:$4 sm:$0xff]   ;;  %v6187_v44 = vld [vmem:[%s7020_s5 + $0x540] ss:$16 sps:$4 sm:$0xff]  }
 0x68c   : > { %4020 = vmatprep.subr.bf16.mxu1 %v6114_v45  ;;  %v6190_v45 = vld [vmem:[%s7020_s5 + $0x740] ss:$16 sps:$4 sm:$0xff]  }
 0x68d   : > { %3924 = vmatmul.mubr.bf16.vlgmr.msra.gmra.mxu0 %v7206_v46 }
 0x68e   : > { %3967 = vmatmul.mubr.bf16.vlgmr.msra.gmra.mxu1 %v7208_v47  ;;  %3978 = vmatpush1.bf16.msra.mxu0 %v6109_v48  ;;  %v6195_v48 = vld [vmem:[%s7020_s5 + $0x524] ss:$16 sps:$4 sm:$0xff]  }
 0x68f   : > { %4021 = vmatpush1.bf16.msra.mxu1 %v6112_v49  ;;  %3979 = vmatprep.subr.bf16.mxu0 %v6117_v50  ;;  %v6198_v49 = vld [vmem:[%s7020_s5 + $0x724] ss:$16 sps:$4 sm:$0xff]   ;;  %v6193_v50 = vld [vmem:[%s7020_s5 + $0x520] ss:$16 sps:$4 sm:$0xff]  }
 0x690   : > { %4022 = vmatprep.subr.bf16.mxu1 %v6120_v51  ;;  %4009 = vmatprep.mubr.bf16.mxu0 %v7261_v15  ;;  %v6196_v51 = vld [vmem:[%s7020_s5 + $0x720] ss:$16 sps:$4 sm:$0xff]  }
 0x691   : > { %4052 = vmatprep.mubr.bf16.mxu1 %v7266_v17 }
 0x692   : > { %3980 = vmatpush1.bf16.msra.mxu0 %v6115_v52  ;;  %v6201_v52 = vld [vmem:[%s7020_s5 + $0x504] ss:$16 sps:$4 sm:$0xff]  }
 0x693   : > { %4023 = vmatpush1.bf16.msra.mxu1 %v6118_v53  ;;  %3981 = vmatprep.subr.bf16.mxu0 %v6123_v54  ;;  %v6204_v53 = vld [vmem:[%s7020_s5 + $0x704] ss:$16 sps:$4 sm:$0xff]   ;;  %v6199_v54 = vld [vmem:[%s7020_s5 + $0x500] ss:$16 sps:$4 sm:$0xff]  }
 0x694   : > { %4024 = vmatprep.subr.bf16.mxu1 %v6126_v55  ;;  %v6202_v55 = vld [vmem:[%s7020_s5 + $0x700] ss:$16 sps:$4 sm:$0xff]  }
 0x696   : > { %3982 = vmatpush1.bf16.msra.mxu0 %v6121_v56  ;;  %v6207_v56 = vld [vmem:[%s7020_s5 + $0xec] ss:$16 sps:$4 sm:$0xff]  }
 0x697   : > { %4025 = vmatpush1.bf16.msra.mxu1 %v6124_v57  ;;  %3983 = vmatprep.subr.bf16.mxu0 %v6129_v58  ;;  %v6210_v57 = vld [vmem:[%s7020_s5 + $0x2ec] ss:$16 sps:$4 sm:$0xff]   ;;  %v7308_v58 = vcombine.low %v7241_v10, %v7246_v11  ;;  %v6229_v10 = vld [vmem:[%s7020_s5 + $0x68] ss:$16 sps:$4 sm:$0xff]  }
 0x698   : > { %4026 = vmatprep.subr.bf16.mxu1 %v6132_v59  ;;  %v7312_v59 = vcombine.low %v7251_v12, %v7256_v13  ;;  %v6232_v11 = vld [vmem:[%s7020_s5 + $0x268] ss:$16 sps:$4 sm:$0xff]   ;;  %v6237_v12 = vld [vmem:[%s7020_s5 + $0x4c] ss:$16 sps:$4 sm:$0xff]  }
 0x699   : > { %v6240_v13 = vld [vmem:[%s7020_s5 + $0x24c] ss:$16 sps:$4 sm:$0xff]  }
 0x69a   : > { %3984 = vmatpush1.bf16.msra.mxu0 %v6127_v60  ;;  %v6205_v60 = vld [vmem:[%s7020_s5 + $0xe8] ss:$16 sps:$4 sm:$0xff]  }
 0x69b   : > { %4027 = vmatpush1.bf16.msra.mxu1 %v6130_v61  ;;  %3985 = vmatprep.subr.bf16.mxu0 %v6135_v62  ;;  %v6208_v61 = vld [vmem:[%s7020_s5 + $0x2e8] ss:$16 sps:$4 sm:$0xff]   ;;  %v6213_v62 = vld [vmem:[%s7020_s5 + $0xcc] ss:$16 sps:$4 sm:$0xff]  }
 0x69c   : > { %4028 = vmatprep.subr.bf16.mxu1 %v6138_v63  ;;  %v6216_v63 = vld [vmem:[%s7020_s5 + $0x2cc] ss:$16 sps:$4 sm:$0xff]  }
 0x69e   : > { %3986 = vmatpush1.bf16.msra.mxu0 %v6133_v0  ;;  %v6211_v0 = vld [vmem:[%s7020_s5 + $0xc8] ss:$16 sps:$4 sm:$0xff]  }
 0x69f   : > { %4029 = vmatpush1.bf16.msra.mxu1 %v6136_v1  ;;  %3987 = vmatprep.subr.bf16.mxu0 %v6141_v2  ;;  %v6214_v1 = vld [vmem:[%s7020_s5 + $0x2c8] ss:$16 sps:$4 sm:$0xff]   ;;  %v6219_v2 = vld [vmem:[%s7020_s5 + $0xac] ss:$16 sps:$4 sm:$0xff]  }
 0x6a0   : > { %4030 = vmatprep.subr.bf16.mxu1 %v6144_v3  ;;  %v6222_v3 = vld [vmem:[%s7020_s5 + $0x2ac] ss:$16 sps:$4 sm:$0xff]  }
 0x6a2   : > { %3988 = vmatpush1.bf16.msra.mxu0 %v6139_v4  ;;  %v6217_v4 = vld [vmem:[%s7020_s5 + $0xa8] ss:$16 sps:$4 sm:$0xff]  }
 0x6a3   : > { %4031 = vmatpush1.bf16.msra.mxu1 %v6142_v5  ;;  %3989 = vmatprep.subr.bf16.mxu0 %v6147_v6  ;;  %v6220_v5 = vld [vmem:[%s7020_s5 + $0x2a8] ss:$16 sps:$4 sm:$0xff]   ;;  %v6225_v6 = vld [vmem:[%s7020_s5 + $0x8c] ss:$16 sps:$4 sm:$0xff]  }
 0x6a4   : > { %4032 = vmatprep.subr.bf16.mxu1 %v6150_v7  ;;  %v6228_v7 = vld [vmem:[%s7020_s5 + $0x28c] ss:$16 sps:$4 sm:$0xff]  }
 0x6a6   : > { %3990 = vmatpush1.bf16.msra.mxu0 %v6145_v8  ;;  %v6223_v8 = vld [vmem:[%s7020_s5 + $0x88] ss:$16 sps:$4 sm:$0xff]  }
 0x6a7   : > { %4033 = vmatpush1.bf16.msra.mxu1 %v6148_v9  ;;  %3991 = vmatprep.subr.bf16.mxu0 %v6153_v14  ;;  %v6226_v9 = vld [vmem:[%s7020_s5 + $0x288] ss:$16 sps:$4 sm:$0xff]  }
 0x6a8   : > { %4034 = vmatprep.subr.bf16.mxu1 %v6156_v16  ;;  %v6235_v14 = vld [vmem:[%s7020_s5 + $0x48] ss:$16 sps:$4 sm:$0xff]  }
 0x6a9   : > { %v6238_v16 = vld [vmem:[%s7020_s5 + $0x248] ss:$16 sps:$4 sm:$0xff]  }
 0x6aa   : > { %3992 = vmatpush1.bf16.msra.mxu0 %v6151_v18  ;;  %v6243_v18 = vld [vmem:[%s7020_s5 + $0x2c] ss:$16 sps:$4 sm:$0xff]  }
 0x6ab   : > { %4035 = vmatpush1.bf16.msra.mxu1 %v6154_v19  ;;  %3993 = vmatprep.subr.bf16.mxu0 %v6159_v20  ;;  %v6246_v19 = vld [vmem:[%s7020_s5 + $0x22c] ss:$16 sps:$4 sm:$0xff]   ;;  %v6241_v20 = vld [vmem:[%s7020_s5 + $0x28] ss:$16 sps:$4 sm:$0xff]  }
 0x6ac   : > { %4036 = vmatprep.subr.bf16.mxu1 %v6162_v21  ;;  %v6244_v21 = vld [vmem:[%s7020_s5 + $0x228] ss:$16 sps:$4 sm:$0xff]  }
 0x6ae   : > { %3994 = vmatpush2.bf16.msra.mxu0 %v6157_v22  ;;  %v6249_v22 = vld [vmem:[%s7020_s5 + $0xc] ss:$16 sps:$4 sm:$0xff]  }
 0x6af   : > { %4037 = vmatpush2.bf16.msra.mxu1 %v6160_v23  ;;  %3995 = vmatprep.subr.bf16.mxu0 %v6165_v25  ;;  %v6252_v23 = vld [vmem:[%s7020_s5 + $0x20c] ss:$16 sps:$4 sm:$0xff]   ;;  %v6247_v25 = vld [vmem:[%s7020_s5 + $0x8] ss:$16 sps:$4 sm:$0xff]  }
 0x6b0   : > { %4038 = vmatprep.subr.bf16.mxu1 %v6168_v26  ;;  %v6250_v26 = vld [vmem:[%s7020_s5 + $0x208] ss:$16 sps:$4 sm:$0xff]  }
 0x6b2   : > { %3996 = vmatpush2.bf16.msra.mxu0 %v6163_v27  ;;  %v6255_v27 = vld [vmem:[%s7020_s5 + $0x1ec] ss:$16 sps:$4 sm:$0xff]  }
 0x6b3   : > { %4039 = vmatpush2.bf16.msra.mxu1 %v6166_v29  ;;  %3997 = vmatprep.subr.bf16.mxu0 %v6171_v31  ;;  %v6258_v29 = vld [vmem:[%s7020_s5 + $0x3ec] ss:$16 sps:$4 sm:$0xff]   ;;  %v6253_v31 = vld [vmem:[%s7020_s5 + $0x1e8] ss:$16 sps:$4 sm:$0xff]  }
 0x6b4   : > { %4040 = vmatprep.subr.bf16.mxu1 %v6174_v32  ;;  %v6256_v32 = vld [vmem:[%s7020_s5 + $0x3e8] ss:$16 sps:$4 sm:$0xff]  }
 0x6b6   : > { %3998 = vmatpush2.bf16.msra.mxu0 %v6169_v33  ;;  %v6261_v33 = vld [vmem:[%s7020_s5 + $0x1cc] ss:$16 sps:$4 sm:$0xff]  }
 0x6b7   : > { %4041 = vmatpush2.bf16.msra.mxu1 %v6172_v34  ;;  %3999 = vmatprep.subr.bf16.mxu0 %v6177_v35  ;;  %v6264_v34 = vld [vmem:[%s7020_s5 + $0x3cc] ss:$16 sps:$4 sm:$0xff]   ;;  %v6259_v35 = vld [vmem:[%s7020_s5 + $0x1c8] ss:$16 sps:$4 sm:$0xff]  }
 0x6b8   : > { %4042 = vmatprep.subr.bf16.mxu1 %v6180_v36  ;;  %v6262_v36 = vld [vmem:[%s7020_s5 + $0x3c8] ss:$16 sps:$4 sm:$0xff]  }
 0x6ba   : > { %4000 = vmatpush2.bf16.msra.mxu0 %v6175_v37  ;;  %v6267_v37 = vld [vmem:[%s7020_s5 + $0x1ac] ss:$16 sps:$4 sm:$0xff]  }
 0x6bb   : > { %4043 = vmatpush2.bf16.msra.mxu1 %v6178_v38  ;;  %4001 = vmatprep.subr.bf16.mxu0 %v6183_v24  ;;  %v6270_v38 = vld [vmem:[%s7020_s5 + $0x3ac] ss:$16 sps:$4 sm:$0xff]   ;;  %v6265_v24 = vld [vmem:[%s7020_s5 + $0x1a8] ss:$16 sps:$4 sm:$0xff]  }
 0x6bc   : > { %4044 = vmatprep.subr.bf16.mxu1 %v6186_v39  ;;  %v6268_v39 = vld [vmem:[%s7020_s5 + $0x3a8] ss:$16 sps:$4 sm:$0xff]  }
 0x6be   : > { %4002 = vmatpush2.bf16.msra.mxu0 %v6181_v40  ;;  %v6273_v40 = vld [vmem:[%s7020_s5 + $0x18c] ss:$16 sps:$4 sm:$0xff]  }
 0x6bf   : > { %4045 = vmatpush2.bf16.msra.mxu1 %v6184_v41  ;;  %4003 = vmatprep.subr.bf16.mxu0 %v6189_v42  ;;  %v6276_v41 = vld [vmem:[%s7020_s5 + $0x38c] ss:$16 sps:$4 sm:$0xff]   ;;  %v6271_v42 = vld [vmem:[%s7020_s5 + $0x188] ss:$16 sps:$4 sm:$0xff]  }
 0x6c0   : > { %4046 = vmatprep.subr.bf16.mxu1 %v6192_v43  ;;  %v6274_v43 = vld [vmem:[%s7020_s5 + $0x388] ss:$16 sps:$4 sm:$0xff]  }
 0x6c2   : > { %4004 = vmatpush2.bf16.msra.mxu0 %v6187_v44  ;;  %v6279_v44 = vld [vmem:[%s7020_s5 + $0x16c] ss:$16 sps:$4 sm:$0xff]  }
 0x6c3   : > { %4047 = vmatpush2.bf16.msra.mxu1 %v6190_v45  ;;  %4005 = vmatprep.subr.bf16.mxu0 %v6195_v48  ;;  %v6282_v45 = vld [vmem:[%s7020_s5 + $0x36c] ss:$16 sps:$4 sm:$0xff]   ;;  %v6277_v48 = vld [vmem:[%s7020_s5 + $0x168] ss:$16 sps:$4 sm:$0xff]  }
 0x6c4   : > { %4048 = vmatprep.subr.bf16.mxu1 %v6198_v49  ;;  %v6280_v49 = vld [vmem:[%s7020_s5 + $0x368] ss:$16 sps:$4 sm:$0xff]  }
 0x6c6   : > { %4006 = vmatpush2.bf16.msra.mxu0 %v6193_v50  ;;  %v6285_v50 = vld [vmem:[%s7020_s5 + $0x14c] ss:$16 sps:$4 sm:$0xff]  }
 0x6c7   : > { %4049 = vmatpush2.bf16.msra.mxu1 %v6196_v51  ;;  %4007 = vmatprep.subr.bf16.mxu0 %v6201_v52  ;;  %v6288_v51 = vld [vmem:[%s7020_s5 + $0x34c] ss:$16 sps:$4 sm:$0xff]   ;;  %v6283_v52 = vld [vmem:[%s7020_s5 + $0x148] ss:$16 sps:$4 sm:$0xff]  }
 0x6c8   : > { %4050 = vmatprep.subr.bf16.mxu1 %v6204_v53  ;;  %v6286_v53 = vld [vmem:[%s7020_s5 + $0x348] ss:$16 sps:$4 sm:$0xff]  }
 0x6ca   : > { %4008 = vmatpush2.bf16.msra.mxu0 %v6199_v54  ;;  %v6291_v54 = vld [vmem:[%s7020_s5 + $0x12c] ss:$16 sps:$4 sm:$0xff]  }
 0x6cb   : > { %4051 = vmatpush2.bf16.msra.mxu1 %v6202_v55  ;;  %4063 = vmatprep.subr.bf16.mxu0 %v6207_v56  ;;  %v6294_v55 = vld [vmem:[%s7020_s5 + $0x32c] ss:$16 sps:$4 sm:$0xff]   ;;  %v6289_v56 = vld [vmem:[%s7020_s5 + $0x128] ss:$16 sps:$4 sm:$0xff]  }
 0x6cc   : > { %4106 = vmatprep.subr.bf16.mxu1 %v6210_v57  ;;  %v6292_v57 = vld [vmem:[%s7020_s5 + $0x328] ss:$16 sps:$4 sm:$0xff]  }
 0x6cd   : > { %4010 = vmatmul.mubr.bf16.vlgmr.msra.gmra.mxu0 %v7308_v58 }
 0x6ce   : > { %4053 = vmatmul.mubr.bf16.vlgmr.msra.gmra.mxu1 %v7312_v59  ;;  %4064 = vmatpush1.bf16.msra.mxu0 %v6205_v60  ;;  %v6297_v60 = vld [vmem:[%s7020_s5 + $0x10c] ss:$16 sps:$4 sm:$0xff]  }
 0x6cf   : > { %4107 = vmatpush1.bf16.msra.mxu1 %v6208_v61  ;;  %4065 = vmatprep.subr.bf16.mxu0 %v6213_v62  ;;  %v6300_v61 = vld [vmem:[%s7020_s5 + $0x30c] ss:$16 sps:$4 sm:$0xff]   ;;  %v6295_v62 = vld [vmem:[%s7020_s5 + $0x108] ss:$16 sps:$4 sm:$0xff]  }
 0x6d0   : > { %4108 = vmatprep.subr.bf16.mxu1 %v6216_v63  ;;  %4095 = vmatprep.mubr.bf16.mxu0 %v7183_v28  ;;  %v6231_v28 = vld [vmem:[%s7020_s5 + $0x6c] ss:$16 sps:$4 sm:$0xff]   ;;  %v6298_v63 = vld [vmem:[%s7020_s5 + $0x308] ss:$16 sps:$4 sm:$0xff]  }
 0x6d1   : > { %4138 = vmatprep.mubr.bf16.mxu1 %v7186_v30  ;;  %v6234_v30 = vld [vmem:[%s7020_s5 + $0x26c] ss:$16 sps:$4 sm:$0xff]  }
 0x6d2   : > { %4066 = vmatpush1.bf16.msra.mxu0 %v6211_v0  ;;  %v6303_v0 = vld [vmem:[%s7020_s5 + $0x4ec] ss:$16 sps:$4 sm:$0xff]  }
 0x6d3   : > { %4109 = vmatpush1.bf16.msra.mxu1 %v6214_v1  ;;  %4067 = vmatprep.subr.bf16.mxu0 %v6219_v2  ;;  %v6306_v1 = vld [vmem:[%s7020_s5 + $0x6ec] ss:$16 sps:$4 sm:$0xff]   ;;  %v6301_v2 = vld [vmem:[%s7020_s5 + $0x4e8] ss:$16 sps:$4 sm:$0xff]  }
 0x6d4   : > { %4110 = vmatprep.subr.bf16.mxu1 %v6222_v3  ;;  %v6304_v3 = vld [vmem:[%s7020_s5 + $0x6e8] ss:$16 sps:$4 sm:$0xff]  }
 0x6d6   : > { %4068 = vmatpush1.bf16.msra.mxu0 %v6217_v4  ;;  %v6309_v4 = vld [vmem:[%s7020_s5 + $0x4cc] ss:$16 sps:$4 sm:$0xff]  }
 0x6d7   : > { %4111 = vmatpush1.bf16.msra.mxu1 %v6220_v5  ;;  %4069 = vmatprep.subr.bf16.mxu0 %v6225_v6  ;;  %v6312_v5 = vld [vmem:[%s7020_s5 + $0x6cc] ss:$16 sps:$4 sm:$0xff]   ;;  %v6307_v6 = vld [vmem:[%s7020_s5 + $0x4c8] ss:$16 sps:$4 sm:$0xff]  }
 0x6d8   : > { %4112 = vmatprep.subr.bf16.mxu1 %v6228_v7  ;;  %v6310_v7 = vld [vmem:[%s7020_s5 + $0x6c8] ss:$16 sps:$4 sm:$0xff]  }
 0x6da   : > { %4070 = vmatpush1.bf16.msra.mxu0 %v6223_v8  ;;  %v6315_v8 = vld [vmem:[%s7020_s5 + $0x4ac] ss:$16 sps:$4 sm:$0xff]  }
 0x6db   : > { %4113 = vmatpush1.bf16.msra.mxu1 %v6226_v9  ;;  %4071 = vmatprep.subr.bf16.mxu0 %v6231_v28  ;;  %v6318_v9 = vld [vmem:[%s7020_s5 + $0x6ac] ss:$16 sps:$4 sm:$0xff]   ;;  %v6313_v28 = vld [vmem:[%s7020_s5 + $0x4a8] ss:$16 sps:$4 sm:$0xff]  }
 0x6dc   : > { %4114 = vmatprep.subr.bf16.mxu1 %v6234_v30  ;;  %v6316_v30 = vld [vmem:[%s7020_s5 + $0x6a8] ss:$16 sps:$4 sm:$0xff]  }
 0x6de   : > { %4072 = vmatpush1.bf16.msra.mxu0 %v6229_v10  ;;  %v6319_v10 = vld [vmem:[%s7020_s5 + $0x488] ss:$16 sps:$4 sm:$0xff]  }
 0x6df   : > { %4115 = vmatpush1.bf16.msra.mxu1 %v6232_v11  ;;  %4073 = vmatprep.subr.bf16.mxu0 %v6237_v12  ;;  %v6322_v11 = vld [vmem:[%s7020_s5 + $0x688] ss:$16 sps:$4 sm:$0xff]  }
 0x6e0   : > { %4116 = vmatprep.subr.bf16.mxu1 %v6240_v13  ;;  %v6325_v12 = vld [vmem:[%s7020_s5 + $0x468] ss:$16 sps:$4 sm:$0xff]  }
 0x6e1   : > { %v6328_v13 = vld [vmem:[%s7020_s5 + $0x668] ss:$16 sps:$4 sm:$0xff]  }
 0x6e2   : > { %4074 = vmatpush1.bf16.msra.mxu0 %v6235_v14  ;;  %v6333_v14 = vld [vmem:[%s7020_s5 + $0x44c] ss:$16 sps:$4 sm:$0xff]  }
 0x6e3   : > { %4117 = vmatpush1.bf16.msra.mxu1 %v6238_v16  ;;  %4075 = vmatprep.subr.bf16.mxu0 %v6243_v18  ;;  %v6336_v16 = vld [vmem:[%s7020_s5 + $0x64c] ss:$16 sps:$4 sm:$0xff]   ;;  %v6331_v18 = vld [vmem:[%s7020_s5 + $0x448] ss:$16 sps:$4 sm:$0xff]  }
 0x6e4   : > { %4118 = vmatprep.subr.bf16.mxu1 %v6246_v19  ;;  %v6334_v19 = vld [vmem:[%s7020_s5 + $0x648] ss:$16 sps:$4 sm:$0xff]  }
 0x6e6   : > { %4076 = vmatpush1.bf16.msra.mxu0 %v6241_v20  ;;  %v6339_v20 = vld [vmem:[%s7020_s5 + $0x42c] ss:$16 sps:$4 sm:$0xff]  }
 0x6e7   : > { %4119 = vmatpush1.bf16.msra.mxu1 %v6244_v21  ;;  %4077 = vmatprep.subr.bf16.mxu0 %v6249_v22  ;;  %v6342_v21 = vld [vmem:[%s7020_s5 + $0x62c] ss:$16 sps:$4 sm:$0xff]   ;;  %v6337_v22 = vld [vmem:[%s7020_s5 + $0x428] ss:$16 sps:$4 sm:$0xff]  }
 0x6e8   : > { %4120 = vmatprep.subr.bf16.mxu1 %v6252_v23  ;;  %v6340_v23 = vld [vmem:[%s7020_s5 + $0x628] ss:$16 sps:$4 sm:$0xff]  }
 0x6ea   : > { %4078 = vmatpush1.bf16.msra.mxu0 %v6247_v25  ;;  %v6345_v25 = vld [vmem:[%s7020_s5 + $0x40c] ss:$16 sps:$4 sm:$0xff]  }
 0x6eb   : > { %4121 = vmatpush1.bf16.msra.mxu1 %v6250_v26  ;;  %4079 = vmatprep.subr.bf16.mxu0 %v6255_v27  ;;  %v6348_v26 = vld [vmem:[%s7020_s5 + $0x60c] ss:$16 sps:$4 sm:$0xff]   ;;  %v6343_v27 = vld [vmem:[%s7020_s5 + $0x408] ss:$16 sps:$4 sm:$0xff]  }
 0x6ec   : > { %4122 = vmatprep.subr.bf16.mxu1 %v6258_v29  ;;  %v6346_v29 = vld [vmem:[%s7020_s5 + $0x608] ss:$16 sps:$4 sm:$0xff]  }
 0x6ee   : > { %4080 = vmatpush2.bf16.msra.mxu0 %v6253_v31  ;;  %v6351_v31 = vld [vmem:[%s7020_s5 + $0x5ec] ss:$16 sps:$4 sm:$0xff]  }
 0x6ef   : > { %4123 = vmatpush2.bf16.msra.mxu1 %v6256_v32  ;;  %4081 = vmatprep.subr.bf16.mxu0 %v6261_v33  ;;  %v6354_v32 = vld [vmem:[%s7020_s5 + $0x7ec] ss:$16 sps:$4 sm:$0xff]   ;;  %v6349_v33 = vld [vmem:[%s7020_s5 + $0x5e8] ss:$16 sps:$4 sm:$0xff]  }
 0x6f0   : > { %4124 = vmatprep.subr.bf16.mxu1 %v6264_v34  ;;  %v6352_v34 = vld [vmem:[%s7020_s5 + $0x7e8] ss:$16 sps:$4 sm:$0xff]  }
 0x6f2   : > { %4082 = vmatpush2.bf16.msra.mxu0 %v6259_v35  ;;  %v6357_v35 = vld [vmem:[%s7020_s5 + $0x5cc] ss:$16 sps:$4 sm:$0xff]  }
 0x6f3   : > { %4125 = vmatpush2.bf16.msra.mxu1 %v6262_v36  ;;  %4083 = vmatprep.subr.bf16.mxu0 %v6267_v37  ;;  %v6360_v36 = vld [vmem:[%s7020_s5 + $0x7cc] ss:$16 sps:$4 sm:$0xff]   ;;  %v6355_v37 = vld [vmem:[%s7020_s5 + $0x5c8] ss:$16 sps:$4 sm:$0xff]  }
 0x6f4   : > { %4126 = vmatprep.subr.bf16.mxu1 %v6270_v38  ;;  %v6358_v38 = vld [vmem:[%s7020_s5 + $0x7c8] ss:$16 sps:$4 sm:$0xff]  }
 0x6f6   : > { %4084 = vmatpush2.bf16.msra.mxu0 %v6265_v24  ;;  %v6363_v24 = vld [vmem:[%s7020_s5 + $0x5ac] ss:$16 sps:$4 sm:$0xff]  }
 0x6f7   : > { %4127 = vmatpush2.bf16.msra.mxu1 %v6268_v39  ;;  %4085 = vmatprep.subr.bf16.mxu0 %v6273_v40  ;;  %v6366_v39 = vld [vmem:[%s7020_s5 + $0x7ac] ss:$16 sps:$4 sm:$0xff]   ;;  %v6361_v40 = vld [vmem:[%s7020_s5 + $0x5a8] ss:$16 sps:$4 sm:$0xff]  }
 0x6f8   : > { %4128 = vmatprep.subr.bf16.mxu1 %v6276_v41  ;;  %v6364_v41 = vld [vmem:[%s7020_s5 + $0x7a8] ss:$16 sps:$4 sm:$0xff]  }
 0x6fa   : > { %4086 = vmatpush2.bf16.msra.mxu0 %v6271_v42  ;;  %v6369_v42 = vld [vmem:[%s7020_s5 + $0x58c] ss:$16 sps:$4 sm:$0xff]  }
 0x6fb   : > { %4129 = vmatpush2.bf16.msra.mxu1 %v6274_v43  ;;  %4087 = vmatprep.subr.bf16.mxu0 %v6279_v44  ;;  %v6372_v43 = vld [vmem:[%s7020_s5 + $0x78c] ss:$16 sps:$4 sm:$0xff]   ;;  %v6367_v44 = vld [vmem:[%s7020_s5 + $0x588] ss:$16 sps:$4 sm:$0xff]  }
 0x6fc   : > { %4130 = vmatprep.subr.bf16.mxu1 %v6282_v45  ;;  %v6370_v45 = vld [vmem:[%s7020_s5 + $0x788] ss:$16 sps:$4 sm:$0xff]  }
 0x6fe   : > { %4088 = vmatpush2.bf16.msra.mxu0 %v6277_v48  ;;  %v6375_v48 = vld [vmem:[%s7020_s5 + $0x56c] ss:$16 sps:$4 sm:$0xff]  }
 0x6ff   : > { %4131 = vmatpush2.bf16.msra.mxu1 %v6280_v49  ;;  %4089 = vmatprep.subr.bf16.mxu0 %v6285_v50  ;;  %v6378_v49 = vld [vmem:[%s7020_s5 + $0x76c] ss:$16 sps:$4 sm:$0xff]   ;;  %v6373_v50 = vld [vmem:[%s7020_s5 + $0x568] ss:$16 sps:$4 sm:$0xff]  }
 0x700   : > { %4132 = vmatprep.subr.bf16.mxu1 %v6288_v51  ;;  %v6376_v51 = vld [vmem:[%s7020_s5 + $0x768] ss:$16 sps:$4 sm:$0xff]  }
 0x702   : > { %4090 = vmatpush2.bf16.msra.mxu0 %v6283_v52  ;;  %v6381_v52 = vld [vmem:[%s7020_s5 + $0x54c] ss:$16 sps:$4 sm:$0xff]  }
 0x703   : > { %4133 = vmatpush2.bf16.msra.mxu1 %v6286_v53  ;;  %4091 = vmatprep.subr.bf16.mxu0 %v6291_v54  ;;  %v6384_v53 = vld [vmem:[%s7020_s5 + $0x74c] ss:$16 sps:$4 sm:$0xff]   ;;  %v6379_v54 = vld [vmem:[%s7020_s5 + $0x548] ss:$16 sps:$4 sm:$0xff]  }
 0x704   : > { %4134 = vmatprep.subr.bf16.mxu1 %v6294_v55  ;;  %v6382_v55 = vld [vmem:[%s7020_s5 + $0x748] ss:$16 sps:$4 sm:$0xff]  }
 0x706   : > { %4092 = vmatpush2.bf16.msra.mxu0 %v6289_v56  ;;  %v6387_v56 = vld [vmem:[%s7020_s5 + $0x52c] ss:$16 sps:$4 sm:$0xff]  }
 0x707   : > { %4135 = vmatpush2.bf16.msra.mxu1 %v6292_v57  ;;  %4093 = vmatprep.subr.bf16.mxu0 %v6297_v60  ;;  %v6390_v57 = vld [vmem:[%s7020_s5 + $0x72c] ss:$16 sps:$4 sm:$0xff]   ;;  %v6385_v60 = vld [vmem:[%s7020_s5 + $0x528] ss:$16 sps:$4 sm:$0xff]  }
 0x708   : > { %4136 = vmatprep.subr.bf16.mxu1 %v6300_v61  ;;  %v6388_v61 = vld [vmem:[%s7020_s5 + $0x728] ss:$16 sps:$4 sm:$0xff]  }
 0x70a   : > { %4094 = vmatpush2.bf16.msra.mxu0 %v6295_v62  ;;  %v6393_v62 = vld [vmem:[%s7020_s5 + $0x50c] ss:$16 sps:$4 sm:$0xff]  }
 0x70b   : > { %4137 = vmatpush2.bf16.msra.mxu1 %v6298_v63  ;;  %4149 = vmatprep.subr.bf16.mxu0 %v6303_v0  ;;  %v6396_v63 = vld [vmem:[%s7020_s5 + $0x70c] ss:$16 sps:$4 sm:$0xff]   ;;  %v6391_v0 = vld [vmem:[%s7020_s5 + $0x508] ss:$16 sps:$4 sm:$0xff]  }
 0x70c   : > { %4192 = vmatprep.subr.bf16.mxu1 %v6306_v1  ;;  %v6394_v1 = vld [vmem:[%s7020_s5 + $0x708] ss:$16 sps:$4 sm:$0xff]  }
 0x70d   : > { %4096 = vmatmul.mubr.bf16.vlgmr.msra.gmra.mxu0 %v7206_v46  ;;  %v6321_v46 = vld [vmem:[%s7020_s5 + $0x48c] ss:$16 sps:$4 sm:$0xff]  }
 0x70e   : > { %4139 = vmatmul.mubr.bf16.vlgmr.msra.gmra.mxu1 %v7208_v47  ;;  %4150 = vmatpush1.bf16.msra.mxu0 %v6301_v2  ;;  %v6324_v47 = vld [vmem:[%s7020_s5 + $0x68c] ss:$16 sps:$4 sm:$0xff]  }
 0x70f   : > { %4193 = vmatpush1.bf16.msra.mxu1 %v6304_v3  ;;  %4151 = vmatprep.subr.bf16.mxu0 %v6309_v4  ;;  %v6399_v2 = vld [vmem:[%s7028_s2 + $0x74] ss:$8 sps:$4 sm:$0xff]   ;;  %v6397_v3 = vld [vmem:[%s7028_s2 + $0x70] ss:$8 sps:$4 sm:$0xff]   ;;  %v6402_v4 = vld [vmem:[%s7028_s2 + $0x64] ss:$8 sps:$4 sm:$0xff]  }
 0x710   : > { %4194 = vmatprep.subr.bf16.mxu1 %v6312_v5  ;;  %4181 = vmatprep.mubr.bf16.mxu0 %v7261_v15  ;;  %v6327_v15 = vld [vmem:[%s7020_s5 + $0x46c] ss:$16 sps:$4 sm:$0xff]   ;;  %v6400_v5 = vld [vmem:[%s7028_s2 + $0x60] ss:$8 sps:$4 sm:$0xff]  }
 0x711   : > { %4224 = vmatprep.mubr.bf16.mxu1 %v7266_v17  ;;  %v6330_v17 = vld [vmem:[%s7020_s5 + $0x66c] ss:$16 sps:$4 sm:$0xff]   ;;  %s6755_s5 = smov (!%p5504_p12), 64  }
 0x712   : > { %4152 = vmatpush1.bf16.msra.mxu0 %v6307_v6  ;;  %v6405_v6 = vld [vmem:[%s7028_s2 + $0x54] ss:$8 sps:$4 sm:$0xff]  }
 0x713   : > { %4195 = vmatpush1.bf16.msra.mxu1 %v6310_v7  ;;  %4153 = vmatprep.subr.bf16.mxu0 %v6315_v8  ;;  %v6403_v7 = vld [vmem:[%s7028_s2 + $0x50] ss:$8 sps:$4 sm:$0xff]   ;;  %v6408_v8 = vld [vmem:[%s7028_s2 + $0x44] ss:$8 sps:$4 sm:$0xff]  }
 0x714   : > { %4196 = vmatprep.subr.bf16.mxu1 %v6318_v9  ;;  %v6406_v9 = vld [vmem:[%s7028_s2 + $0x40] ss:$8 sps:$4 sm:$0xff]  }
 0x716   : > { %4154 = vmatpush1.bf16.msra.mxu0 %v6313_v28  ;;  %v6445_v28 = vld [vmem:[%s7028_s2 + $0x170] ss:$8 sps:$4 sm:$0xff]  }
 0x717   : > { %4197 = vmatpush1.bf16.msra.mxu1 %v6316_v30  ;;  %4155 = vmatprep.subr.bf16.mxu0 %v6321_v46  ;;  %v6450_v30 = vld [vmem:[%s7028_s2 + $0x164] ss:$8 sps:$4 sm:$0xff]   ;;  %v6448_v46 = vld [vmem:[%s7028_s2 + $0x160] ss:$8 sps:$4 sm:$0xff]  }
 0x718   : > { %4198 = vmatprep.subr.bf16.mxu1 %v6324_v47  ;;  %v6409_v47 = vld [vmem:[%s7028_s2 + $0x30] ss:$8 sps:$4 sm:$0xff]  }
 0x71a   : > { %4156 = vmatpush1.bf16.msra.mxu0 %v6319_v10  ;;  %v6453_v10 = vld [vmem:[%s7028_s2 + $0x154] ss:$8 sps:$4 sm:$0xff]  }
 0x71b   : > { %4199 = vmatpush1.bf16.msra.mxu1 %v6322_v11  ;;  %4157 = vmatprep.subr.bf16.mxu0 %v6327_v15  ;;  %v6414_v11 = vld [vmem:[%s7028_s2 + $0x24] ss:$8 sps:$4 sm:$0xff]   ;;  %v6451_v15 = vld [vmem:[%s7028_s2 + $0x150] ss:$8 sps:$4 sm:$0xff]  }
 0x71c   : > { %4200 = vmatprep.subr.bf16.mxu1 %v6330_v17  ;;  %v6412_v17 = vld [vmem:[%s7028_s2 + $0x20] ss:$8 sps:$4 sm:$0xff]  }
 0x71e   : > { %4158 = vmatpush1.bf16.msra.mxu0 %v6325_v12  ;;  %v6456_v12 = vld [vmem:[%s7028_s2 + $0x144] ss:$8 sps:$4 sm:$0xff]  }
 0x71f   : > { %4201 = vmatpush1.bf16.msra.mxu1 %v6328_v13  ;;  %4159 = vmatprep.subr.bf16.mxu0 %v6333_v14  ;;  %v6417_v13 = vld [vmem:[%s7028_s2 + $0x14] ss:$8 sps:$4 sm:$0xff]   ;;  %v6454_v14 = vld [vmem:[%s7028_s2 + $0x140] ss:$8 sps:$4 sm:$0xff]  }
 0x720   : > { %4202 = vmatprep.subr.bf16.mxu1 %v6336_v16  ;;  %v6415_v16 = vld [vmem:[%s7028_s2 + $0x10] ss:$8 sps:$4 sm:$0xff]  }
 0x722   : > { %4160 = vmatpush1.bf16.msra.mxu0 %v6331_v18  ;;  %v6459_v18 = vld [vmem:[%s7028_s2 + $0x134] ss:$8 sps:$4 sm:$0xff]  }
 0x723   : > { %4203 = vmatpush1.bf16.msra.mxu1 %v6334_v19  ;;  %4161 = vmatprep.subr.bf16.mxu0 %v6339_v20  ;;  %v6420_v19 = vld [vmem:[%s7028_s2 + $0x4] ss:$8 sps:$4 sm:$0xff]   ;;  %v6457_v20 = vld [vmem:[%s7028_s2 + $0x130] ss:$8 sps:$4 sm:$0xff]  }
 0x724   : > { %4204 = vmatprep.subr.bf16.mxu1 %v6342_v21  ;;  %v6418_v21 = vld [vmem:[%s7028_s2] ss:$8 sps:$4 sm:$0xff]  }
 0x726   : > { %4162 = vmatpush1.bf16.msra.mxu0 %v6337_v22  ;;  %v6462_v22 = vld [vmem:[%s7028_s2 + $0x124] ss:$8 sps:$4 sm:$0xff]  }
 0x727   : > { %4205 = vmatpush1.bf16.msra.mxu1 %v6340_v23  ;;  %4163 = vmatprep.subr.bf16.mxu0 %v6345_v25  ;;  %v6423_v23 = vld [vmem:[%s7028_s2 + $0xf4] ss:$8 sps:$4 sm:$0xff]   ;;  %v6460_v25 = vld [vmem:[%s7028_s2 + $0x120] ss:$8 sps:$4 sm:$0xff]  }
 0x728   : > { %4206 = vmatprep.subr.bf16.mxu1 %v6348_v26  ;;  %v6421_v26 = vld [vmem:[%s7028_s2 + $0xf0] ss:$8 sps:$4 sm:$0xff]  }
 0x72a   : > { %4164 = vmatpush1.bf16.msra.mxu0 %v6343_v27  ;;  %v6465_v27 = vld [vmem:[%s7028_s2 + $0x114] ss:$8 sps:$4 sm:$0xff]  }
 0x72b   : > { %4207 = vmatpush1.bf16.msra.mxu1 %v6346_v29  ;;  %4165 = vmatprep.subr.bf16.mxu0 %v6351_v31  ;;  %v6426_v29 = vld [vmem:[%s7028_s2 + $0xe4] ss:$8 sps:$4 sm:$0xff]   ;;  %v6463_v31 = vld [vmem:[%s7028_s2 + $0x110] ss:$8 sps:$4 sm:$0xff]  }
 0x72c   : > { %4208 = vmatprep.subr.bf16.mxu1 %v6354_v32  ;;  %v6424_v32 = vld [vmem:[%s7028_s2 + $0xe0] ss:$8 sps:$4 sm:$0xff]  }
 0x72e   : > { %4166 = vmatpush2.bf16.msra.mxu0 %v6349_v33  ;;  %v6468_v33 = vld [vmem:[%s7028_s2 + $0x104] ss:$8 sps:$4 sm:$0xff]  }
 0x72f   : > { %4209 = vmatpush2.bf16.msra.mxu1 %v6352_v34  ;;  %4167 = vmatprep.subr.bf16.mxu0 %v6357_v35  ;;  %v6429_v34 = vld [vmem:[%s7028_s2 + $0xd4] ss:$8 sps:$4 sm:$0xff]   ;;  %v6466_v35 = vld [vmem:[%s7028_s2 + $0x100] ss:$8 sps:$4 sm:$0xff]  }
 0x730   : > { %4210 = vmatprep.subr.bf16.mxu1 %v6360_v36  ;;  %v6427_v36 = vld [vmem:[%s7028_s2 + $0xd0] ss:$8 sps:$4 sm:$0xff]  }
 0x732   : > { %4168 = vmatpush2.bf16.msra.mxu0 %v6355_v37  ;;  %v6471_v37 = vld [vmem:[%s7028_s2 + $0x1f4] ss:$8 sps:$4 sm:$0xff]  }
 0x733   : > { %4211 = vmatpush2.bf16.msra.mxu1 %v6358_v38  ;;  %4169 = vmatprep.subr.bf16.mxu0 %v6363_v24  ;;  %v6432_v38 = vld [vmem:[%s7028_s2 + $0xc4] ss:$8 sps:$4 sm:$0xff]   ;;  %v6469_v24 = vld [vmem:[%s7028_s2 + $0x1f0] ss:$8 sps:$4 sm:$0xff]  }
 0x734   : > { %4212 = vmatprep.subr.bf16.mxu1 %v6366_v39  ;;  %v6430_v39 = vld [vmem:[%s7028_s2 + $0xc0] ss:$8 sps:$4 sm:$0xff]  }
 0x736   : > { %4170 = vmatpush2.bf16.msra.mxu0 %v6361_v40  ;;  %v6474_v40 = vld [vmem:[%s7028_s2 + $0x1e4] ss:$8 sps:$4 sm:$0xff]  }
 0x737   : > { %4213 = vmatpush2.bf16.msra.mxu1 %v6364_v41  ;;  %4171 = vmatprep.subr.bf16.mxu0 %v6369_v42  ;;  %v6435_v41 = vld [vmem:[%s7028_s2 + $0xb4] ss:$8 sps:$4 sm:$0xff]   ;;  %v6472_v42 = vld [vmem:[%s7028_s2 + $0x1e0] ss:$8 sps:$4 sm:$0xff]  }
 0x738   : > { %4214 = vmatprep.subr.bf16.mxu1 %v6372_v43  ;;  %v2551_v43 = vlaneseq }
 0x73a   : > { %4172 = vmatpush2.bf16.msra.mxu0 %v6367_v44  ;;  %v6433_v44 = vld [vmem:[%s7028_s2 + $0xb0] ss:$8 sps:$4 sm:$0xff]  }
 0x73b   : > { %4215 = vmatpush2.bf16.msra.mxu1 %v6370_v45  ;;  %4173 = vmatprep.subr.bf16.mxu0 %v6375_v48  ;;  %v6477_v45 = vld [vmem:[%s7028_s2 + $0x1d4] ss:$8 sps:$4 sm:$0xff]   ;;  %v6438_v48 = vld [vmem:[%s7028_s2 + $0xa4] ss:$8 sps:$4 sm:$0xff]  }
 0x73c   : > { %4216 = vmatprep.subr.bf16.mxu1 %v6378_v49  ;;  %v6475_v49 = vld [vmem:[%s7028_s2 + $0x1d0] ss:$8 sps:$4 sm:$0xff]  }
 0x73e   : > { %4174 = vmatpush2.bf16.msra.mxu0 %v6373_v50  ;;  %v7499_v50 = vshrl.u32 %v2551_v43, 7 }
 0x73f   : > { %4217 = vmatpush2.bf16.msra.mxu1 %v6376_v51  ;;  %4175 = vmatprep.subr.bf16.mxu0 %v6381_v52  ;;  %v6436_v51 = vld [vmem:[%s7028_s2 + $0xa0] ss:$8 sps:$4 sm:$0xff]   ;;  %v6480_v52 = vld [vmem:[%s7028_s2 + $0x1c4] ss:$8 sps:$4 sm:$0xff]  }
 0x740   : > { %4218 = vmatprep.subr.bf16.mxu1 %v6384_v53 }
 0x742   : > { %4176 = vmatpush2.bf16.msra.mxu0 %v6379_v54 }
 0x743   : > { %4219 = vmatpush2.bf16.msra.mxu1 %v6382_v55  ;;  %4177 = vmatprep.subr.bf16.mxu0 %v6387_v56  ;;  %v6441_v55 = vld [vmem:[%s7028_s2 + $0x94] ss:$8 sps:$4 sm:$0xff]   ;;  %v6478_v56 = vld [vmem:[%s7028_s2 + $0x1c0] ss:$8 sps:$4 sm:$0xff]  }
 0x744   : > { %4220 = vmatprep.subr.bf16.mxu1 %v6390_v57  ;;  %v7506_v57 = vsub.s32 1, %v7499_v50 }
 0x746   : > { %4178 = vmatpush2.bf16.msra.mxu0 %v6385_v60  ;;  %v6439_v60 = vld [vmem:[%s7028_s2 + $0x90] ss:$8 sps:$4 sm:$0xff]  }
 0x747   : > { %4221 = vmatpush2.bf16.msra.mxu1 %v6388_v61  ;;  %4179 = vmatprep.subr.bf16.mxu0 %v6393_v62  ;;  %v7510_v61 = vld [vmem:[%s7026_s11] sm:$0xf]  ;;  %v7513_v62 = vsub.s32 0, %v7499_v50 }
 0x748   : > { %4222 = vmatprep.subr.bf16.mxu1 %v6396_v63 }
 0x74a   : > { %4180 = vmatpush2.bf16.msra.mxu0 %v6391_v0 }
 0x74b   : > { %4223 = vmatpush2.bf16.msra.mxu1 %v6394_v1  ;;  %4635 = vmatprep.subr.bf16.mxu0 %v6399_v2  ;;  %v6444_v1 = vld [vmem:[%s7028_s2 + $0x84] ss:$8 sps:$4 sm:$0xff]   ;;  %v2558_v2 = vrot.slane %v7510_v61, %v7506_v57 }
 0x74d   : > { %4182 = vmatmul.mubr.bf16.vlgmr.msra.gmra.mxu0 %v7308_v58  ;;  %v6447_v58 = vld [vmem:[%s7028_s2 + $0x174] ss:$8 sps:$4 sm:$0xff]   ;;  %v3925_v53 = vpop.f32.mrf.mxu0 }
 0x74e   : > { %4225 = vmatmul.mubr.bf16.vlgmr.msra.gmra.mxu1 %v7312_v59  ;;  %4636 = vmatpush1.bf16.msra.mxu0 %v6397_v3  ;;  %v6411_v59 = vld [vmem:[%s7028_s2 + $0x34] ss:$8 sps:$4 sm:$0xff]   ;;  %v3968_v54 = vpop.f32.mrf.mxu1  ;;  %v6442_v3 = vld [vmem:[%s7028_s2 + $0x80] ss:$8 sps:$4 sm:$0xff]  }
 0x74f   : > { %4637 = vmatprep.subr.bf16.mxu0 %v6402_v4  ;;  %4678 = vmatprep.subr.bf16.mxu1 %v6447_v58  ;;  %v3927_v63 = vpop.f32.mrf.mxu0  ;;  %v2554_v4 = vrot.slane %v7510_v61, %v7513_v62  ;;  %v6483_v58 = vld [vmem:[%s7028_s2 + $0x1b4] ss:$8 sps:$4 sm:$0xff]  }
 0x750   : > { %4679 = vmatpush1.bf16.msra.mxu1 %v6445_v28  ;;  %v3970_v0 = vpop.f32.mrf.mxu1 }
 0x751   : > { %4680 = vmatprep.subr.bf16.mxu1 %v6450_v30  ;;  %v6481_v30 = vld [vmem:[%s7028_s2 + $0x1b0] ss:$8 sps:$4 sm:$0xff]  }
 0x752   : > { %4638 = vmatpush1.bf16.msra.mxu0 %v6400_v5  ;;  %v3929_v5 = vpop.f32.mrf.mxu0 }
 0x753   : > { %4639 = vmatprep.subr.bf16.mxu0 %v6405_v6  ;;  %v3972_v6 = vpop.f32.mrf.mxu1 }
 0x754   : > { %4681 = vmatpush1.bf16.msra.mxu1 %v6448_v46 }
 0x755   : > { %4682 = vmatprep.subr.bf16.mxu1 %v6453_v10  ;;  %v3974_v28 = vpop.f32.mrf.mxu1 }
 0x756   : > { %4640 = vmatpush1.bf16.msra.mxu0 %v6403_v7  ;;  %v3928_v7 = vadd.f32 %v3927_v63, %v2558_v2 }
 0x757   : > { %4641 = vmatprep.subr.bf16.mxu0 %v6408_v8  ;;  %v3926_v8 = vadd.f32 %v3925_v53, %v2554_v4 }
 0x758   : > { %4683 = vmatpush1.bf16.msra.mxu1 %v6451_v15  ;;  %v3971_v10 = vadd.f32 %v3970_v0, %v3928_v7 }
 0x759   : > { %4684 = vmatprep.subr.bf16.mxu1 %v6456_v12  ;;  %v3969_v15 = vadd.f32 %v3968_v54, %v3926_v8 }
 0x75a   : > { %4642 = vmatpush1.bf16.msra.mxu0 %v6406_v9  ;;  %v3931_v9 = vpop.f32.mrf.mxu0 }
 0x75b   : > { %4643 = vmatprep.subr.bf16.mxu0 %v6411_v59  ;;  %v3930_v59 = vadd.f32 %v3929_v5, %v2554_v4 }
 0x75c   : > { %4685 = vmatpush1.bf16.msra.mxu1 %v6454_v14 }
 0x75d   : > { %4686 = vmatprep.subr.bf16.mxu1 %v6459_v18  ;;  %v3973_v14 = vadd.f32 %v3972_v6, %v3930_v59  ;;  %v6484_v18 = vld [vmem:[%s7028_s2 + $0x1a0] ss:$8 sps:$4 sm:$0xff]  }
 0x75e   : > { %4644 = vmatpush1.bf16.msra.mxu0 %v6409_v47 }
 0x75f   : > { %4645 = vmatprep.subr.bf16.mxu0 %v6414_v11  ;;  %v3932_v11 = vadd.f32 %v3931_v9, %v2558_v2 }
 0x760   : > { %4687 = vmatpush1.bf16.msra.mxu1 %v6457_v20 }
 0x761   : > { %4688 = vmatprep.subr.bf16.mxu1 %v6462_v22  ;;  %v3975_v22 = vadd.f32 %v3974_v28, %v3932_v11 }
 0x762   : > { %4646 = vmatpush1.bf16.msra.mxu0 %v6412_v17 }
 0x763   : > { %4647 = vmatprep.subr.bf16.mxu0 %v6417_v13  ;;  %v6486_v13 = vld [vmem:[%s7028_s2 + $0x1a4] ss:$8 sps:$4 sm:$0xff]  }
 0x764   : > { %4689 = vmatpush1.bf16.msra.mxu1 %v6460_v25 }
 0x765   : > { %4690 = vmatprep.subr.bf16.mxu1 %v6465_v27 }
 0x766   : > { %4648 = vmatpush1.bf16.msra.mxu0 %v6415_v16 }
 0x767   : > { %4649 = vmatprep.subr.bf16.mxu0 %v6420_v19 }
 0x768   : > { %4691 = vmatpush1.bf16.msra.mxu1 %v6463_v31 }
 0x769   : > { %4692 = vmatprep.subr.bf16.mxu1 %v6468_v33 }
 0x76a   : > { %4650 = vmatpush1.bf16.msra.mxu0 %v6418_v21 }
 0x76b   : > { %4651 = vmatprep.subr.bf16.mxu0 %v6423_v23 }
 0x76c   : > { %4693 = vmatpush1.bf16.msra.mxu1 %v6466_v35 }
 0x76d   : > { %4694 = vmatprep.subr.bf16.mxu1 %v6471_v37  ;;  %v6492_v37 = vld [vmem:[%s7028_s2 + $0x184] ss:$8 sps:$4 sm:$0xff]  }
 0x76e   : > { %4652 = vmatpush2.bf16.msra.mxu0 %v6421_v26  ;;  %v6489_v26 = vld [vmem:[%s7028_s2 + $0x194] ss:$8 sps:$4 sm:$0xff]  }
 0x76f   : > { %4653 = vmatprep.subr.bf16.mxu0 %v6426_v29 }
 0x770   : > { %4695 = vmatpush2.bf16.msra.mxu1 %v6469_v24 }
 0x771   : > { %4696 = vmatprep.subr.bf16.mxu1 %v6474_v40 }
 0x772   : > { %4654 = vmatpush2.bf16.msra.mxu0 %v6424_v32  ;;  %v6487_v32 = vld [vmem:[%s7028_s2 + $0x190] ss:$8 sps:$4 sm:$0xff]  }
 0x773   : > { %4655 = vmatprep.subr.bf16.mxu0 %v6429_v34 }
 0x774   : > { %4697 = vmatpush2.bf16.msra.mxu1 %v6472_v42 }
 0x775   : > { %4698 = vmatprep.subr.bf16.mxu1 %v6477_v45  ;;  %v2565_v45 = vsub.s32 3, %v7499_v50 }
 0x776   : > { %4656 = vmatpush2.bf16.msra.mxu0 %v6427_v36 }
 0x777   : > { %4657 = vmatprep.subr.bf16.mxu0 %v6432_v38 }
 0x778   : > { %4699 = vmatpush2.bf16.msra.mxu1 %v6475_v49 }
 0x779   : > { %4700 = vmatprep.subr.bf16.mxu1 %v6480_v52  ;;  %v2566_v52 = vrot.slane %v7510_v61, %v2565_v45 }
 0x77a   : > { %4658 = vmatpush2.bf16.msra.mxu0 %v6430_v39  ;;  %v6490_v39 = vld [vmem:[%s7028_s2 + $0x180] ss:$8 sps:$4 sm:$0xff]  }
 0x77b   : > { %4659 = vmatprep.subr.bf16.mxu0 %v6435_v41 }
 0x77c   : > { %4701 = vmatpush2.bf16.msra.mxu1 %v6478_v56 }
 0x77d   : > { %4702 = vmatprep.subr.bf16.mxu1 %v6483_v58 }
 0x77e   : > { %4660 = vmatpush2.bf16.msra.mxu0 %v6433_v44 }
 0x77f   : > { %4661 = vmatprep.subr.bf16.mxu0 %v6438_v48  ;;  %v2561_v48 = vsub.s32 2, %v7499_v50 }
 0x780   : > { %4703 = vmatpush2.bf16.msra.mxu1 %v6481_v30 }
 0x781   : > { %4704 = vmatprep.subr.bf16.mxu1 %v6486_v13  ;;  %v2562_v53 = vrot.slane %v7510_v61, %v2561_v48 }
 0x782   : > { %4662 = vmatpush2.bf16.msra.mxu0 %v6436_v51 }
 0x783   : > { %4663 = vmatprep.subr.bf16.mxu0 %v6441_v55 }
 0x784   : > { %4705 = vmatpush2.bf16.msra.mxu1 %v6484_v18 }
 0x785   : > { %4706 = vmatprep.subr.bf16.mxu1 %v6489_v26 }
 0x786   : > { %4664 = vmatpush2.bf16.msra.mxu0 %v6439_v60 }
 0x787   : > { %4665 = vmatprep.subr.bf16.mxu0 %v6444_v1 }
 0x788   : > { %4707 = vmatpush2.bf16.msra.mxu1 %v6487_v32 }
 0x789   : > { %4708 = vmatprep.subr.bf16.mxu1 %v6492_v37 }
 0x78a   : > { %4666 = vmatpush2.bf16.msra.mxu0 %v6442_v3 }
 0x78c   : > { %4709 = vmatpush2.bf16.msra.mxu1 %v6490_v39 }
 0x78d   : > { %v4011_v46 = vpop.f32.mrf.mxu0 }
 0x78e   : > { %v4054_v47 = vpop.f32.mrf.mxu1  ;;  %v4012_v19 = vadd.f32 %v4011_v46, %v3969_v15 }
 0x78f   : > { %v4013_v17 = vpop.f32.mrf.mxu0 }
 0x790   : > { %v4056_v12 = vpop.f32.mrf.mxu1  ;;  %v4014_v16 = vadd.f32 %v4013_v17, %v3971_v10  ;;  %v4055_v33 = vadd.f32 %v4054_v47, %v4012_v19 }
 0x791   : > { %v4015_v20 = vpop.f32.mrf.mxu0 }
 0x792   : > { %v4058_v21 = vpop.f32.mrf.mxu1  ;;  %v4016_v23 = vadd.f32 %v4015_v20, %v3973_v14  ;;  %v4057_v27 = vadd.f32 %v4056_v12, %v4014_v16  ;;  %v4235_v40 = vmax.f32 %v4055_v33, 0.0 }
 0x793   : > { %v4017_v25 = vpop.f32.mrf.mxu0 }
 0x794   : > { %v4059_v29 = vadd.f32 %v4058_v21, %v4016_v23  ;;  %v4018_v31 = vadd.f32 %v4017_v25, %v3975_v22  ;;  %v4060_v34 = vpop.f32.mrf.mxu1  ;;  %v4236_v38 = vmax.f32 %v4057_v27, 0.0  ;;  %v4243_v23 = vld [vmem:[#allocation2 + $0x10] sm:$0xff] }
 0x796   : > { %v4061_v35 = vadd.f32 %v4060_v34, %v4018_v31  ;;  %v4239_v36 = vmax.f32 %v4059_v29, 0.0  ;;  %v4244_v29 = vld [vmem:[#allocation2] sm:$0xff]  ;;  %v4245_v34 = vld [vmem:[#allocation2 + $0x18] sm:$0xff] }
 0x798   : > { %v4240_v24 = vmax.f32 %v4061_v35, 0.0  ;;  %v4247_v42 = vpack.c.bf16 %v4239_v36, %v4235_v40 }
 0x79a   : > { %v4248_v41 = vpack.c.bf16 %v4240_v24, %v4236_v38  ;;  %v4246_v24 = vld [vmem:[#allocation2 + $0x8] sm:$0xff] }
 0x79c   : > { %4667 = vmatprep.mubr.bf16.mxu0 %v4248_v41 }
 0x79d   : > { %4668 = vmatmul.mubr.bf16.vlgmr.msra.gmra.mxu0 %v4247_v42 }
 0x7cd   : > { %v4097_v43 = vpop.f32.mrf.mxu0 }
 0x7ce   : > { %v4140_v44 = vpop.f32.mrf.mxu1  ;;  %v4098_v60 = vadd.f32 %v4097_v43, %v2562_v53 }
 0x7cf   : > { %v4099_v49 = vpop.f32.mrf.mxu0 }
 0x7d0   : > { %v4142_v51 = vpop.f32.mrf.mxu1  ;;  %v4100_v56 = vadd.f32 %v4099_v49, %v2566_v52  ;;  %v4141_v6 = vadd.f32 %v4140_v44, %v4098_v60 }
 0x7d1   : > { %v4101_v54 = vpop.f32.mrf.mxu0 }
 0x7d2   : > { %v4144_v55 = vpop.f32.mrf.mxu1  ;;  %v4102_v1 = vadd.f32 %v4101_v54, %v2562_v53  ;;  %v4143_v4 = vadd.f32 %v4142_v51, %v4100_v56 }
 0x7d3   : > { %v4103_v63 = vpop.f32.mrf.mxu0 }
 0x7d4   : > { %v4146_v0 = vpop.f32.mrf.mxu1  ;;  %v4104_v5 = vadd.f32 %v4103_v63, %v2566_v52  ;;  %v4145_v8 = vadd.f32 %v4144_v55, %v4102_v1 }
 0x7d6   : > { %v4147_v61 = vadd.f32 %v4146_v0, %v4104_v5 }
 0x80d   : > { %v4183_v2 = vpop.f32.mrf.mxu0 }
 0x80e   : > { %v4226_v3 = vpop.f32.mrf.mxu1  ;;  %v4184_v28 = vadd.f32 %v4183_v2, %v4141_v6 }
 0x80f   : > { %v4185_v7 = vpop.f32.mrf.mxu0 }
 0x810   : > { %v4228_v50 = vpop.f32.mrf.mxu1  ;;  %v4186_v9 = vadd.f32 %v4185_v7, %v4143_v4  ;;  %v4227_v15 = vadd.f32 %v4226_v3, %v4184_v28 }
 0x811   : > { %v4187_v58 = vpop.f32.mrf.mxu0 }
 0x812   : > { %v4230_v59 = vpop.f32.mrf.mxu1  ;;  %v4188_v30 = vadd.f32 %v4187_v58, %v4145_v8  ;;  %v4229_v47 = vadd.f32 %v4228_v50, %v4186_v9  ;;  %v4237_v18 = vmax.f32 %v4227_v15, 0.0 }
 0x813   : > { %v4189_v46 = vpop.f32.mrf.mxu0 }
 0x814   : > { %v4231_v10 = vadd.f32 %v4230_v59, %v4188_v30  ;;  %v4190_v11 = vadd.f32 %v4189_v46, %v4147_v61  ;;  %v4232_v17 = vpop.f32.mrf.mxu1  ;;  %v4238_v14 = vmax.f32 %v4229_v47, 0.0 }
 0x816   : > { %v4233_v12 = vadd.f32 %v4232_v17, %v4190_v11  ;;  %v4241_v13 = vmax.f32 %v4231_v10, 0.0 }
 0x818   : > { %v4242_v16 = vmax.f32 %v4233_v12, 0.0  ;;  %v4249_v20 = vpack.c.bf16 %v4241_v13, %v4237_v18 }
 0x81a   : > { %v4250_v19 = vpack.c.bf16 %v4242_v16, %v4238_v14 }
 0x81c   : > { %4710 = vmatprep.mubr.bf16.mxu1 %v4250_v19 }
 0x81d   : > { %4711 = vmatmul.mubr.bf16.vlgmr.msra.gmra.mxu1 %v4249_v20 }
 0x85d   : > { %v4669_v21 = vpop.f32.mrf.mxu0 }
 0x85f   : > { %v4671_v22 = vpop.f32.mrf.mxu0 }
 0x861   : > { %v4673_v27 = vpop.f32.mrf.mxu0 }
 0x863   : > { %v4675_v38 = vpop.f32.mrf.mxu0 }
 0x8dd   : > { %v4712_v25 = vpop.f32.mrf.mxu1 }
 0x8de   : > { %v4713_v26 = vadd.f32 %v4712_v25, %v4669_v21 }
 0x8df   : > { %v4714_v31 = vpop.f32.mrf.mxu1 }
 0x8e0   : > { %v4721_v32 = vadd.f32 %v4713_v26, %v4243_v23  ;;  %v4715_v33 = vadd.f32 %v4714_v31, %v4671_v22 }
 0x8e1   : > { %v4716_v35 = vpop.f32.mrf.mxu1 }
 0x8e2   : > { %4725 = vst [vmem:[#allocation2 + $0x10] sm:$0xff] %v4721_v32  ;;  %v4722_v36 = vadd.f32 %v4715_v33, %v4244_v29  ;;  %v4717_v37 = vadd.f32 %v4716_v35, %v4673_v27 }
 0x8e3   : > { %v4718_v39 = vpop.f32.mrf.mxu1 }
 0x8e4   : > { %4726 = vst [vmem:[#allocation2] sm:$0xff] %v4722_v36  ;;  %v4723_v40 = vadd.f32 %v4717_v37, %v4245_v34  ;;  %v4719_v41 = vadd.f32 %v4718_v39, %v4675_v38  ;;  %4732 = sbr.rel (%p5504_p12) target bundleno = 2809 (0xaf9), region = 96 }
 0x8e6   : > { %4727 = vst [vmem:[#allocation2 + $0x18] sm:$0xff] %v4723_v40  ;;  %v4724_v42 = vadd.f32 %v4719_v41, %v4246_v24 }
 0x8e8   : > { %4728 = vst [vmem:[#allocation2 + $0x8] sm:$0xff] %v4724_v42 }
 0x8e9   : > { %v4733_v43 = vld [vmem:[#allocation9 + $0x1] sm:$0x3]  ;;  %v4734_v44 = vld [vmem:[#allocation9 + $0x3] sm:$0x3]  ;;  %v4736_v45 = vld [vmem:[#allocation2 + $0x10] sm:$0xff]  ;;  %vm4809_vm10 = vcmask 7168  }
 0x8ea   : > { %v4744_v49 = vrot.slane %v4733_v43, %v7513_v62  ;;  %v4748_v51 = vrot.slane %v4733_v43, %v7506_v57  ;;  %v4763_v54 = vrot.slane %v4734_v44, %v7513_v62  ;;  %v4767_v55 = vrot.slane %v4734_v44, %v7506_v57  ;;  %v5505_v28 = vld [vmem:[#allocation9] ss:$0 sm:$0xff] }
 0x8eb   : > { %v4737_v48 = vld [vmem:[#allocation2] sm:$0xff]  ;;  %vm4860_vm11 = vcmask 0  }
 0x8ec   : > { %v4751_v56 = vadd.f32 %v4744_v49, %v4736_v45  ;;  %v4752_v60 = vadd.f32 %v4748_v51, %v4737_v48 }
 0x8ed   : > { %v4738_v52 = vld [vmem:[#allocation2 + $0x18] sm:$0xff] }
 0x8ee   : > { %v4753_v63 = vadd.f32 %v4744_v49, %v4738_v52  ;;  %v4755_v1 = vmax.f32 %v4751_v56, 0.0  ;;  %v4756_v2 = vmax.f32 %v4752_v60, 0.0 }
 0x8ef   : > { %v4739_v53 = vld [vmem:[#allocation2 + $0x8] sm:$0xff] }
 0x8f0   : > { %v4754_v0 = vadd.f32 %v4748_v51, %v4739_v53  ;;  %v4757_v3 = vmax.f32 %v4753_v63, 0.0  ;;  %v4770_v5 = vmul.f32 %v4763_v54, %v4755_v1  ;;  %v4771_v6 = vmul.f32 %v4767_v55, %v4756_v2 }
 0x8f2   : > { %v4758_v4 = vmax.f32 %v4754_v0, 0.0  ;;  %v4772_v7 = vmul.f32 %v4763_v54, %v4757_v3  ;;  %v4774_v8 = vadd.f32 %v4771_v6, %v4770_v5 }
 0x8f4   : > { %v4773_v50 = vmul.f32 %v4767_v55, %v4758_v4  ;;  %4775 = vadd.xlane.f32.xlu0 %v4774_v8 }
 0x8f6   : > { %v4777_v9 = vadd.f32 %v4773_v50, %v4772_v7  ;;  %v4858_v7 = vld [vmem:[#allocation3] sm:$0x1] }
 0x8f8   : > { %4778 = vadd.xlane.f32.xlu0 %v4777_v9 }
 0x97d   : > { %v4776_v62 = vpop.xlane.xlu0 %4775 }
 0x97e   : > { %v4786_v58 = vadd.f32 %v5505_v28, %v4776_v62 }
 0x980   : > { %v4788_v57 = vsub.f32 0.0, %v4786_v58 }
 0x981   : > { %v4779_v59 = vpop.xlane.xlu0 %4778 }
 0x982   : > { %v4790_v61 = vand.u32 2147483647, %v4788_v57  ;;  %v4787_v30 = vadd.f32 %v5505_v28, %v4779_v59  ;;  %v4789_v29 = vmax.f32 %v4788_v57, 0.0 }
 0x984   : > { %v4791_v46 = vsub.f32 0.0, %v4790_v61  ;;  %v4824_v47 = vand.u32 2147483647, %v4787_v30  ;;  %v4823_v34 = vmax.f32 %v4787_v30, 0.0 }
 0x986   : > { %v4792_v10 = vmul.f32 1.442695, %v4791_v46  ;;  %v4825_v11 = vsub.f32 0.0, %v4824_v47 }
 0x988   : > { %6493 = vpow2.f32 %v4792_v10  ;;  %v4826_v15 = vmul.f32 1.442695, %v4825_v11 }
 0x98a   : > { %6495 = vpow2.f32 %v4826_v15 }
 0x995   : > { %v6494_v17 = vpop.eup %6493 }
 0x996   : > { %v4794_v12 = vadd.f32 1.0, %v6494_v17  ;;  %v4797_v16 = vmul.f32 -0.5, %v6494_v17  ;;  %v4800_v20 = vand.u32 2147483647, %v6494_v17 }
 0x997   : > { %v6496_v13 = vpop.eup %6495 }
 0x998   : > { %6497 = vlog2.f32 %v4794_v12  ;;  %v4828_v14 = vadd.f32 1.0, %v6496_v13  ;;  %v4831_v18 = vmul.f32 -0.5, %v6496_v13  ;;  %v4798_v19 = vadd.f32 1.0, %v4797_v16 }
 0x999   : > { %v4834_v23 = vand.u32 2147483647, %v6496_v13  ;;  %vm4801_vm8 = vcmp.lt.f32.partialorder %v4800_v20, 0.0004427343 }
 0x99a   : > { %6499 = vlog2.f32 %v4828_v14  ;;  %v4832_v21 = vadd.f32 1.0, %v4831_v18  ;;  %v4799_v26 = vmul.f32 %v6494_v17, %v4798_v19 }
 0x99b   : > { %vm4835_vm9 = vcmp.lt.f32.partialorder %v4834_v23, 0.0004427343 }
 0x99c   : > { %v4833_v33 = vmul.f32 %v6496_v13, %v4832_v21 }
 0x9a5   : > { %v6498_v22 = vpop.eup %6497 }
 0x9a6   : > { %v4796_v25 = vmul.f32 0.6931472, %v6498_v22 }
 0x9a7   : > { %v6500_v27 = vpop.eup %6499 }
 0x9a8   : > { %v4802_v31 = vsel %vm4801_vm8, %v4799_v26, %v4796_v25  ;;  %v4830_v32 = vmul.f32 0.6931472, %v6500_v27 }
 0x9a9   : > { %v4803_v35 = vadd.f32 %v4802_v31, %v4789_v29 }
 0x9aa   : > { %v4836_v36 = vsel %vm4835_vm9, %v4833_v33, %v4830_v32 }
 0x9ab   : > { %v4804_v37 = vsub.f32 0.0, %v4803_v35  ;;  %v4837_v38 = vadd.f32 %v4836_v36, %v4823_v34 }
 0x9ad   : > { %4806 = vrot.lane.b32.xlu1 %v4804_v37, %s6755_s5  ;;  %v4838_v24 = vsub.f32 0.0, %v4837_v38 }
 0x9b1   : > { %4840 = vrot.lane.b32.xlu1 %v4838_v24, %s6755_s5 }
 0xa1f   : > { %v4807_v39 = vpop.permute.xlu1 %4806 }
 0xa20   : > { %v4810_v40 = vsel %vm4809_vm10, %v4807_v39, 0.0 }
 0xa21   : > { %4811 = vadd.xlane.f32.xlu0 %v4810_v40 }
 0xa23   : > { %v4841_v41 = vpop.permute.xlu1 %4840 }
 0xa24   : > { %v4843_v42 = vsel %vm4809_vm10, %v4841_v41, 0.0 }
 0xa25   : > { %4844 = vadd.xlane.f32.xlu1 %v4843_v42 }
 0xaaa   : > { %v4812_v43 = vpop.xlane.xlu0 %4811 }
 0xaab   : > { %v4813_v44 = vrot.slane %v4812_v43, 4 }
 0xaad   : > { %v4814_v45 = vadd.f32 %v4813_v44, %v4812_v43 }
 0xaae   : > { %v4845_v48 = vpop.xlane.xlu1 %4844 }
 0xaaf   : > { %v4815_v49 = vrot.slane %v4814_v45, 2  ;;  %v4846_v51 = vrot.slane %v4845_v48, 4 }
 0xab1   : > { %v4847_v52 = vadd.f32 %v4846_v51, %v4845_v48  ;;  %v4816_v53 = vadd.f32 %v4815_v49, %v4814_v45 }
 0xab3   : > { %v4848_v54 = vrot.slane %v4847_v52, 2  ;;  %v4817_v55 = vrot.slane %v4816_v53, 1 }
 0xab5   : > { %v4849_v56 = vadd.f32 %v4848_v54, %v4847_v52  ;;  %v4818_v60 = vadd.f32 %v4817_v55, %v4816_v53 }
 0xab7   : > { %5747 = vpush %v4818_v60  ;;  %v4850_v63 = vrot.slane %v4849_v56, 1 }
 0xab9   : > { %v4851_v0 = vadd.f32 %v4850_v63, %v4849_v56 }
 0xabb   : > { %5749 = vpush %v4851_v0 }
 0xae8   : > { %s5748_s11 = spop %5747 }
 0xae9   : > { %v4820_v1 = vstv %s5748_s11 }
 0xaea   : > { %v4822_v3 = vmul.f32 0.125, %v4820_v1 }
 0xaec   : > { %s5750_s2 = spop %5749 }
 0xaed   : > { %v4853_v2 = vstv %s5750_s2 }
 0xaee   : > { %v4854_v4 = vmul.f32 0.125, %v4853_v2 }
 0xaf0   : > { %v4855_v5 = vadd.f32 %v4854_v4, %v4822_v3 }
 0xaf2   : > { %v4856_v6 = vsub.f32 0.0, %v4855_v5 }
 0xaf4   : > { %v4857_v50 = vmul.f32 0.1, %v4856_v6 }
 0xaf6   : > { %v4859_v8 = vadd.f32 %v4858_v7, %v4857_v50 }
 0xaf8   : > { %4861 = vst.msk [vmem:[#allocation15] sm:$0x1] %vm4860_vm11, %v4859_v8 }
 0xaf9 PF: > { %p5800_p1 = scmp.eq.s32.totalorder %s6836_s21, 1  ;;  %s6756_s30 = smov [#allocation15]  }
 0xafa   : > { %s4869_s28 = sshll.u32 %s6756_s30, 4  ;;  %s4870_s28 = int_to_ptr.vmem [resolvable:$true] %s4869_s28 }
 0xafb   : > { %s6663_s25 = scalar_lea.vmem %s4870_s28, 16  ;;  %s6669_s24 = scalar_lea.vmem %s4870_s28, 32 }
 0xafc   : > { %p6664_p2 = scmp.ne.s32.totalorder %s4870_s28, %s6663_s25  ;;  %p6670_p7 = scmp.lt.s32.totalorder %s4870_s28, %s4870_s28 }
 0xafd   : > { %p6671_p8 = scmp.lt.s32.totalorder %s6669_s24, %s6663_s25 }
 0xafe   : > { %p6665_p3 = pnand %p6664_p2, %p5800_p1 }
 0xaff   : > { %p6672_p5 = por %p6671_p8, %p6670_p7 }
 0xb00   : > { %p6666_p6 = pneg %p6665_p3 }
 0xb02   : > { %p6673_p11 = pnand %p6672_p5, %p6666_p6 }
 0xb04   : > { %6676 = shalt.err (!%p6673_p11)
}
 0xb05   : > { %s7614_s16 = sld [smem:[#allocation27_spill]] }
 0xb0b   : > { %5770 = dma.vmem_to_hbm [thread:$0]  (%p5800_p1), %s4870_s28, 16, %s7614_s16, [#allocation6]  }
 0xb0c   : > { %6720 = dma.done.wait (%p5800_p1), [#allocation6], 16  }
 0xb0d   : > { %6722 = vsyncadd (%p5800_p1), [#allocation6], 4294967280 }
 0xb0e PF: > { %s7615_s20 = sld [smem:[#allocation22_spill]]  ;;  %s7618_s17 = smov %s6729_s18 }
 0xb0f   : > { %s7616_s19 = sld [smem:[#allocation21_spill]] }
 0xb10   : > { %s7617_s23 = sld [smem:[#allocation23_spill]] }
 0xb14   : > { %p27_p4 = scmp.ge.s32.totalorder %s7615_s20, 4  }
 0xb15   : > { %s7619_s18 = smov %s7616_s19 }
 0xb16   : > { %s7620_s19 = smov %s7617_s23  ;;  %29 = sbr.rel (!%p27_p4) target bundleno = 13 (0xd), region = 146 }
 0xb1b   :  { %4882 = vsyncpa [#allocation5], 1 }
 0xb1c   :  { %4884 = vsyncpa [#allocation5 + $0x1], 1 }
 0xb1d   :  { %4885 = vsyncpa [#allocation8], 1 }
 0xb1e   :  { %4886 = vsyncpa [#allocation11], 1 }
 0xb1f   :  { %4888 = vsyncpa [#allocation11 + $0x1], 1 }
 0xb20   :  { %4889 = vsyncpa [#allocation14], 1 }
 0xb21   :  { %4891 = vsyncpa [#allocation14 + $0x1], 1 }
 0xb22   :  { %4892 = vsyncpa [#allocation6], 1 }
 0xb23   :  { %4894 = vsyncpa [#allocation6 + $0x1], 1 }

</bundles_post_ra>
